<compile_context>
chip_gen: v7x
topology: tpu7x:2x2x1
jax: 0.10.0
libtpu: 0.0.40
codegen_flags: <defaults>
</compile_context>

<pallas_src>
import math

import jax
import jax.numpy as jnp
from jax.experimental import pallas as pl
from jax.experimental.pallas import tpu as pltpu


# ----------------------------------------------------------------------------
# tiling helpers
# ----------------------------------------------------------------------------
def _round_up(x, m):
    return (x + m - 1) // m * m


def _pick_tn(C):
    """Output-channel tile: fill the 256-wide MXU when possible."""
    if C % 256 == 0:
        return 256
    if C % 128 == 0:
        return 128
    return C


def _pick_rows_per_tile(hrows, wp, max_flat_rows=128):
    """Largest image-row count r dividing hrows with r*wp <= max_flat_rows."""
    best = 1
    for r in range(1, hrows + 1):
        if hrows % r == 0 and r * wp <= max_flat_rows:
            best = r
    return best


# ----------------------------------------------------------------------------
# Fused 1x1-conv GEMM kernel:
#   out = relu( A @ W + b  [+ Xd @ Wd + bd (fused downsample)]  [+ R] )
# A/W/Xd/Wd are bf16 MXU operands; accumulation + epilogue in f32.
# ----------------------------------------------------------------------------
def _make_matmul_kernel(relu, mode):
    # mode: "plain" | "residual" | "downsample"
    def kernel(*refs):
        if mode == "downsample":
            a_ref, w_ref, b_ref, xd_ref, wd_ref, bd_ref, o_ref = refs
        elif mode == "residual":
            a_ref, w_ref, b_ref, r_ref, o_ref = refs
        else:
            a_ref, w_ref, b_ref, o_ref = refs
        acc = jnp.dot(a_ref[...], w_ref[...], preferred_element_type=jnp.float32)
        acc = acc + b_ref[...]
        if mode == "downsample":
            acc = acc + jnp.dot(xd_ref[...], wd_ref[...],
                                preferred_element_type=jnp.float32) + bd_ref[...]
        elif mode == "residual":
            acc = acc + r_ref[...].astype(jnp.float32)
        if relu:
            acc = jnp.maximum(acc, 0.0)
        o_ref[...] = acc.astype(o_ref.dtype)

    return kernel


def matmul_bn(a, w, bias, *, relu=True, residual=None, downsample=None,
              out_dtype=jnp.bfloat16):
    """(M, K) @ (K, C) + bias with optional fused residual add or fused
    downsample branch (xd @ wd + bd), optional ReLU.  No explicit M padding:
    partial edge blocks are handled by Pallas."""
    M, K = a.shape
    C = w.shape[1]
    tm = 256 if M >= 512 else 128
    tn = _pick_tn(C)

    bias2 = bias.reshape(1, C).astype(jnp.float32)
    in_specs = [
        pl.BlockSpec((tm, K), lambda i, j: (i, 0)),
        pl.BlockSpec((K, tn), lambda i, j: (0, j)),
        pl.BlockSpec((1, tn), lambda i, j: (0, j)),
    ]
    args = [a.astype(jnp.bfloat16), w.astype(jnp.bfloat16), bias2]

    if downsample is not None:
        xd, wd, bd = downsample
        Kd = xd.shape[1]
        in_specs += [
            pl.BlockSpec((tm, Kd), lambda i, j: (i, 0)),
            pl.BlockSpec((Kd, tn), lambda i, j: (0, j)),
            pl.BlockSpec((1, tn), lambda i, j: (0, j)),
        ]
        args += [xd.astype(jnp.bfloat16), wd.astype(jnp.bfloat16),
                 bd.reshape(1, C).astype(jnp.float32)]
        mode = "downsample"
    elif residual is not None:
        in_specs.append(pl.BlockSpec((tm, tn), lambda i, j: (i, j)))
        args.append(residual.astype(jnp.bfloat16))
        mode = "residual"
    else:
        mode = "plain"

    return pl.pallas_call(
        _make_matmul_kernel(relu, mode),
        out_shape=jax.ShapeDtypeStruct((M, C), out_dtype),
        grid=(pl.cdiv(M, tm), C // tn),
        in_specs=in_specs,
        out_specs=pl.BlockSpec((tm, tn), lambda i, j: (i, j)),
        compiler_params=pltpu.CompilerParams(
            dimension_semantics=("parallel", "parallel")),
    )(*args)


# ----------------------------------------------------------------------------
# Fused direct 3x3 conv kernel (padding=1), no HBM im2col.
#
# taps: list of (x_slot, flat_row_offset, weight_tap_index).  The kernel loops
# over static row sub-tiles of Ls flat rows so the f32 accumulator stays small
# (register resident), accumulating the 9 shifted matmuls, then applies
# bias / residual / ReLU and stores the sub-tile.
# ----------------------------------------------------------------------------
def _make_conv3x3_kernel(taps, n_x, Ls, n_sub, relu, has_residual):
    def kernel(*refs):
        x_refs = refs[:n_x]
        w_ref = refs[n_x]
        b_ref = refs[n_x + 1]
        r_ref = refs[n_x + 2] if has_residual else None
        o_ref = refs[-1]
        bias = b_ref[...]                       # hoisted, reused by every tile
        for s in range(n_sub):
            base = s * Ls
            slot0, off0, t0 = taps[0]
            acc = jnp.dot(x_refs[slot0][0, off0 + base:off0 + base + Ls, :],
                          w_ref[t0], preferred_element_type=jnp.float32)
            for slot, off, t in taps[1:]:
                acc = acc + jnp.dot(
                    x_refs[slot][0, off + base:off + base + Ls, :],
                    w_ref[t], preferred_element_type=jnp.float32)
            acc = acc + bias
            if has_residual:
                acc = acc + r_ref[0, base:base + Ls, :].astype(jnp.float32)
            if relu:
                acc = jnp.maximum(acc, 0.0)
            o_ref[0, base:base + Ls, :] = acc.astype(o_ref.dtype)

    return kernel


def conv3x3_bn(x, w9, bias, *, stride=1, relu=True, residual=None,
               out_dtype=jnp.bfloat16):
    """Fused 3x3 conv (padding=1) + BN bias + optional residual + ReLU.

    x: (N, H, W, Cin) NHWC.  w9: (9, Cin, Cout) with BN scale pre-folded,
    tap index t = kh*3 + kw.
    stride=1: classic flat-shift (offsets dy*Wp + dx).
    stride=2: even/odd row-plane split so only the Ho needed output rows are
    computed (2x less MXU work); odd columns are dropped after the kernel.
    residual (stride=1 only): (N, H, W, Cout), fused add before ReLU.
    """
    N, H, W, Cin = x.shape
    Cout = w9.shape[-1]
    Wp = _round_up(W + 2, 8)        # sublane-aligned padded row width
    padR = Wp - 1 - W               # right pad after the 1-col left pad
    xb = x.astype(jnp.bfloat16)

    if stride == 1:
        Hrows = H
        Lflat = (H + 3) * Wp        # 1 top pad row + 2 bottom halo rows
        xflat = jnp.pad(xb, ((0, 0), (1, 2), (1, padR), (0, 0))
                        ).reshape(N, Lflat, Cin)
        x_args = [xflat]
        x_lens = [Lflat]
        taps = [(0, dy * Wp + dx, dy * 3 + dx)
                for dy in range(3) for dx in range(3)]
    else:
        assert stride == 2, "only stride 1 / 2 are used by this module"
        Ho = -(-H // 2)
        Hrows = Ho
        xp = jnp.pad(xb, ((0, 0), (1, 3), (1, padR), (0, 0)))   # (N, H+4, Wp, C)
        ev = xp[:, 0::2][:, :Ho + 2].reshape(N, (Ho + 2) * Wp, Cin)
        od = xp[:, 1::2][:, :Ho + 1].reshape(N, (Ho + 1) * Wp, Cin)
        x_args = [ev, od]
        x_lens = [(Ho + 2) * Wp, (Ho + 1) * Wp]
        # dy=0 -> even plane, dy=1 -> odd plane, dy=2 -> even plane (+Wp)
        taps = ([(0, dx, dx) for dx in range(3)]
                + [(1, dx, 3 + dx) for dx in range(3)]
                + [(0, Wp + dx, 6 + dx) for dx in range(3)])

    Lout = Hrows * Wp
    rs = _pick_rows_per_tile(Hrows, Wp, 128)    # image rows per sub-tile
    Ls = rs * Wp
    n_sub = Hrows // rs
    tn = _pick_tn(Cout)
    if tn > 128 and Ls * tn * 4 > 64 * 1024:    # keep acc <= ~16 vregs
        tn = 128

    bias2 = bias.reshape(1, Cout).astype(jnp.float32)
    in_specs = [pl.BlockSpec((1, L, Cin), lambda n, j: (n, 0, 0))
                for L in x_lens]
    in_specs += [pl.BlockSpec((9, Cin, tn), lambda n, j: (0, 0, j)),
                 pl.BlockSpec((1, tn), lambda n, j: (0, j))]
    args = x_args + [w9.astype(jnp.bfloat16), bias2]

    has_res = residual is not None
    if has_res:
        assert stride == 1, "fused residual only supported for stride-1 conv"
        rflat = jnp.pad(residual.astype(jnp.bfloat16),
                        ((0, 0), (0, 0), (0, Wp - W), (0, 0))
                        ).reshape(N, Lout, Cout)
        args.append(rflat)
        in_specs.append(pl.BlockSpec((1, Lout, tn), lambda n, j: (n, 0, j)))

    out = pl.pallas_call(
        _make_conv3x3_kernel(taps, len(x_args), Ls, n_sub, relu, has_res),
        out_shape=jax.ShapeDtypeStruct((N, Lout, Cout), out_dtype),
        grid=(N, Cout // tn),
        in_specs=in_specs,
        out_specs=pl.BlockSpec((1, Lout, tn), lambda n, j: (n, 0, j)),
        compiler_params=pltpu.CompilerParams(
            dimension_semantics=("parallel", "parallel")),
    )(*args)

    y = out.reshape(N, Hrows, Wp, Cout)
    if stride == 1:
        return y[:, :, :W, :]                   # drop wrap-around columns
    return y[:, :, 0:W:2, :]                    # drop odd + wrap-around cols


# ----------------------------------------------------------------------------
# Parameter init (kaiming fan_out + fresh BN), BN scale folded into W.
# ----------------------------------------------------------------------------
def _kaiming(key, cout, cin, kh, kw):
    std = math.sqrt(2.0 / (cout * kh * kw))
    return jax.random.normal(key, (cout, cin, kh, kw), jnp.float32) * std


def _bn_affine(c, eps=1e-5):
    gamma = jnp.ones((c,), jnp.float32)
    beta = jnp.zeros((c,), jnp.float32)
    mean = jnp.zeros((c,), jnp.float32)
    var = jnp.ones((c,), jnp.float32)
    scale = gamma / jnp.sqrt(var + eps)
    shift = beta - mean * scale
    return scale, shift


def _fold1x1(w, scale):
    # (Cout, Cin, 1, 1) -> (Cin, Cout), BN scale folded into output columns.
    w2 = w.reshape(w.shape[0], w.shape[1]).T * scale[None, :]
    return w2.astype(jnp.bfloat16)


def _fold3x3(w, scale):
    # (Cout, Cin, 3, 3) -> (9, Cin, Cout) with tap index t = kh*3 + kw.
    w2 = jnp.transpose(w, (2, 3, 1, 0)).reshape(9, w.shape[1], w.shape[0])
    return (w2 * scale[None, None, :]).astype(jnp.bfloat16)


def init_bottleneck(key, inplanes, planes, stride, expansion=4):
    width = planes
    outp = planes * expansion
    k1, k2, k3, kd = jax.random.split(key, 4)
    p = {"kind": "bottleneck", "stride": stride}
    s1, p["b1"] = _bn_affine(width)
    p["w1"] = _fold1x1(_kaiming(k1, width, inplanes, 1, 1), s1)
    s2, p["b2"] = _bn_affine(width)
    p["w2"] = _fold3x3(_kaiming(k2, width, width, 3, 3), s2)
    s3, p["b3"] = _bn_affine(outp)
    p["w3"] = _fold1x1(_kaiming(k3, outp, width, 1, 1), s3)
    if stride != 1 or inplanes != outp:
        sd, p["bd"] = _bn_affine(outp)
        p["wd"] = _fold1x1(_kaiming(kd, outp, inplanes, 1, 1), sd)
    return p, outp


def init_basicblock(key, inplanes, planes, stride, expansion=1):
    k1, k2, kd = jax.random.split(key, 3)
    p = {"kind": "basic", "stride": stride}
    s1, p["b1"] = _bn_affine(planes)
    p["w1"] = _fold3x3(_kaiming(k1, planes, inplanes, 3, 3), s1)
    s2, p["b2"] = _bn_affine(planes)
    p["w2"] = _fold3x3(_kaiming(k2, planes, planes, 3, 3), s2)
    if stride != 1 or inplanes != planes:
        sd, p["bd"] = _bn_affine(planes)
        p["wd"] = _fold1x1(_kaiming(kd, planes, inplanes, 1, 1), sd)
    return p, planes


# ----------------------------------------------------------------------------
# Block forward passes (NHWC, bf16 activations)
# ----------------------------------------------------------------------------
def bottleneck_forward(x, p):
    N, H, W, Cin = x.shape
    stride = p["stride"]
    width = p["w1"].shape[1]
    outp = p["w3"].shape[1]

    # conv1x1 -> bn1 -> relu
    out = matmul_bn(x.reshape(N * H * W, Cin), p["w1"], p["b1"], relu=True)
    out = out.reshape(N, H, W, width)
    # conv3x3(stride) -> bn2 -> relu   (fused direct conv, stride-2 row split)
    out = conv3x3_bn(out, p["w2"], p["b2"], stride=stride, relu=True)
    _, Ho, Wo, _ = out.shape
    Mo = N * Ho * Wo
    out2 = out.reshape(Mo, width)
    # conv1x1 -> bn3 -> (+ identity | fused downsample conv1x1+bn) -> relu
    if "wd" in p:
        xs = x[:, ::stride, ::stride, :].reshape(Mo, Cin)
        y = matmul_bn(out2, p["w3"], p["b3"], relu=True,
                      downsample=(xs, p["wd"], p["bd"]))
    else:
        y = matmul_bn(out2, p["w3"], p["b3"], relu=True,
                      residual=x.reshape(Mo, outp))
    return y.reshape(N, Ho, Wo, outp)


def basicblock_forward(x, p):
    N, H, W, Cin = x.shape
    stride = p["stride"]
    planes = p["b1"].shape[-1]

    # conv3x3(stride) -> bn1 -> relu
    out = conv3x3_bn(x, p["w1"], p["b1"], stride=stride, relu=True)
    _, Ho, Wo, _ = out.shape
    # identity / downsample path
    if "wd" in p:
        xs = x[:, ::stride, ::stride, :].reshape(N * Ho * Wo, Cin)
        identity = matmul_bn(xs, p["wd"], p["bd"], relu=False)
        identity = identity.reshape(N, Ho, Wo, planes)
    else:
        identity = x
    # conv3x3 -> bn2 -> (+identity) -> relu   (residual fused into the conv)
    out = conv3x3_bn(out, p["w2"], p["b2"], stride=1, relu=True,
                     residual=identity)
    return out


# ----------------------------------------------------------------------------
# ResNet_Refine: layer4 (stride-2 first block) + global avg pool + flatten
# ----------------------------------------------------------------------------
def init_resnet_refine(key, block="bottleneck", layers=2, inplanes=64, planes=32):
    # NOTE: the PyTorch module hard-codes inplanes=1024, planes=512; widths are
    # configurable here so the demo runs at small shapes - structure identical.
    keys = jax.random.split(key, layers)
    init_fn = init_bottleneck if block == "bottleneck" else init_basicblock
    params, cur = [], inplanes
    for i in range(layers):
        stride = 2 if i == 0 else 1          # _make_layer(..., stride=2)
        p, cur = init_fn(keys[i], cur, planes, stride)
        params.append(p)
    return params


def resnet_refine_forward(x_nchw, params, is_local=True):
    x = jnp.transpose(x_nchw, (0, 2, 3, 1)).astype(jnp.bfloat16)   # NCHW -> NHWC
    for p in params:
        x = bottleneck_forward(x, p) if p["kind"] == "bottleneck" \
            else basicblock_forward(x, p)
    xf = x.astype(jnp.float32)
    # AdaptiveAvgPool2d((1,1)) + flatten: tiny reduction, plain JAX.
    pool_x = jnp.mean(xf, axis=(1, 2))
    x_out = jnp.transpose(xf, (0, 3, 1, 2))   # back to NCHW like PyTorch output
    # Both is_local branches of the reference module return (x, pool_x).
    return x_out, pool_x


if __name__ == "__main__":
    key = jax.random.PRNGKey(0)
    kx, kp = jax.random.split(key)

    N, C, H, W = 2, 64, 16, 16          # small stand-in for (N, 1024, 14, 14)
    planes, layers = 32, 2              # expansion 4 -> 128 output channels
    x = jax.random.normal(kx, (N, C, H, W), jnp.float32)

    params = init_resnet_refine(kp, block="bottleneck", layers=layers,
                                inplanes=C, planes=planes)

    # jit the whole forward so the remaining JAX-side glue (pads / crops /
    # transposes) is fused by XLA around the pallas_calls.
    fwd = jax.jit(lambda xx: resnet_refine_forward(xx, params, is_local=True))
    feat, pooled = fwd(x)
    jax.block_until_ready(feat)
    jax.block_until_ready(pooled)

    assert feat.shape == (N, planes * 4, H // 2, W // 2), feat.shape
    assert pooled.shape == (N, planes * 4), pooled.shape
    assert feat.dtype == jnp.float32 and pooled.dtype == jnp.float32
    print("KERNEL_OK")
</pallas_src>

<mosaic_0001>
module attributes {stable_mosaic.version = 11 : i64} {
  func.func @kernel(%arg0: i32, %arg1: i32, %arg2: memref<256x64xbf16, #tpu.memory_space<vmem>>, %arg3: memref<64x32xbf16, #tpu.memory_space<vmem>>, %arg4: memref<1x32xf32, #tpu.memory_space<vmem>>, %arg5: memref<256x32xbf16, #tpu.memory_space<vmem>>) attributes {dimension_semantics = [#tpu.dimension_semantics<parallel>, #tpu.dimension_semantics<parallel>], iteration_bounds = array<i64: 2, 1>, scalar_prefetch = 0 : i64, scratch_operands = 0 : i64, tpu.core_type = #tpu.core_type<tc>, window_params = [{transform_indices = @transform_0, window_bounds = array<i64: 256, 64>}, {transform_indices = @transform_1, window_bounds = array<i64: 64, 32>}, {transform_indices = @transform_2, window_bounds = array<i64: 1, 32>}, {transform_indices = @transform_3, window_bounds = array<i64: 256, 32>}]} {
    %c0 = arith.constant 0 : index
    %c0_0 = arith.constant 0 : index
    %0 = vector.load %arg2[%c0, %c0_0] : memref<256x64xbf16, #tpu.memory_space<vmem>>, vector<256x64xbf16>
    %c0_1 = arith.constant 0 : index
    %c0_2 = arith.constant 0 : index
    %1 = vector.load %arg3[%c0_1, %c0_2] : memref<64x32xbf16, #tpu.memory_space<vmem>>, vector<64x32xbf16>
    %cst = arith.constant dense<0.000000e+00> : vector<256x32xf32>
    %2 = tpu.matmul %0, %1, %cst {dimension_numbers = #tpu.dot_dimension_numbers<[1], [0], [0], [1], [0, 0, 1, 1], [], []>} : vector<256x64xbf16>, vector<64x32xbf16>, vector<256x32xf32> -> vector<256x32xf32>
    %c0_3 = arith.constant 0 : index
    %c0_4 = arith.constant 0 : index
    %3 = vector.load %arg4[%c0_3, %c0_4] : memref<1x32xf32, #tpu.memory_space<vmem>>, vector<1x32xf32>
    %4 = vector.broadcast %3 : vector<1x32xf32> to vector<256x32xf32>
    %5 = arith.addf %2, %4 : vector<256x32xf32>
    %cst_5 = arith.constant 0.000000e+00 : f32
    %6 = vector.broadcast %cst_5 : f32 to vector<256x32xf32>
    %7 = arith.maximumf %5, %6 : vector<256x32xf32>
    %8 = arith.truncf %7 : vector<256x32xf32> to vector<256x32xbf16>
    %c0_6 = arith.constant 0 : index
    %c0_7 = arith.constant 0 : index
    %9 = vector.load %arg5[%c0_6, %c0_7] : memref<256x32xbf16, #tpu.memory_space<vmem>>, vector<256x32xbf16>
    tpu.vector_store %arg5[%c0_6, %c0_7], %8 {strides = array<i32>} : memref<256x32xbf16, #tpu.memory_space<vmem>>, vector<256x32xbf16>,
    return
  }
  func.func @transform_0(%arg0: i32, %arg1: i32) -> (i32, i32) {
    %c0_i32 = arith.constant 0 : i32
    %c0_i32_0 = arith.constant 0 : i32
    return %arg0, %c0_i32 : i32, i32
  }
  func.func @transform_1(%arg0: i32, %arg1: i32) -> (i32, i32) {
    %c0_i32 = arith.constant 0 : i32
    %c0_i32_0 = arith.constant 0 : i32
    return %c0_i32, %arg1 : i32, i32
  }
  func.func @transform_2(%arg0: i32, %arg1: i32) -> (i32, i32) {
    %c0_i32 = arith.constant 0 : i32
    %c0_i32_0 = arith.constant 0 : i32
    return %c0_i32, %arg1 : i32, i32
  }
  func.func @transform_3(%arg0: i32, %arg1: i32) -> (i32, i32) {
    %c0_i32 = arith.constant 0 : i32
    return %arg0, %arg1 : i32, i32
  }
}

module attributes {stable_mosaic.version = 11 : i64} {
  func.func @kernel(%arg0: i32, %arg1: i32, %arg2: memref<1x240x32xbf16, #tpu.memory_space<vmem>>, %arg3: memref<1x216x32xbf16, #tpu.memory_space<vmem>>, %arg4: memref<9x32x32xbf16, #tpu.memory_space<vmem>>, %arg5: memref<1x32xf32, #tpu.memory_space<vmem>>, %arg6: memref<1x192x32xbf16, #tpu.memory_space<vmem>>) attributes {dimension_semantics = [#tpu.dimension_semantics<parallel>, #tpu.dimension_semantics<parallel>], iteration_bounds = array<i64: 2, 1>, scalar_prefetch = 0 : i64, scratch_operands = 0 : i64, tpu.core_type = #tpu.core_type<tc>, window_params = [{transform_indices = @transform_0, window_bounds = array<i64: 1, 240, 32>}, {transform_indices = @transform_1, window_bounds = array<i64: 1, 216, 32>}, {transform_indices = @transform_2, window_bounds = array<i64: 9, 32, 32>}, {transform_indices = @transform_3, window_bounds = array<i64: 1, 32>}, {transform_indices = @transform_4, window_bounds = array<i64: 1, 192, 32>}]} {
    %c0 = arith.constant 0 : index
    %c0_0 = arith.constant 0 : index
    %0 = vector.load %arg5[%c0, %c0_0] : memref<1x32xf32, #tpu.memory_space<vmem>>, vector<1x32xf32>
    %c0_1 = arith.constant 0 : index
    %c0_2 = arith.constant 0 : index
    %c0_3 = arith.constant 0 : index
    %1 = vector.load %arg2[%c0_1, %c0_2, %c0_3] : memref<1x240x32xbf16, #tpu.memory_space<vmem>>, vector<1x96x32xbf16>
    %2 = vector.shape_cast %1 : vector<1x96x32xbf16> to vector<96x32xbf16>
    %c0_4 = arith.constant 0 : index
    %c0_5 = arith.constant 0 : index
    %c0_6 = arith.constant 0 : index
    %3 = vector.load %arg4[%c0_4, %c0_5, %c0_6] : memref<9x32x32xbf16, #tpu.memory_space<vmem>>, vector<1x32x32xbf16>
    %4 = vector.shape_cast %3 : vector<1x32x32xbf16> to vector<32x32xbf16>
    %cst = arith.constant dense<0.000000e+00> : vector<96x32xf32>
    %5 = tpu.matmul %2, %4, %cst {dimension_numbers = #tpu.dot_dimension_numbers<[1], [0], [0], [1], [0, 0, 1, 1], [], []>} : vector<96x32xbf16>, vector<32x32xbf16>, vector<96x32xf32> -> vector<96x32xf32>
    %c0_7 = arith.constant 0 : index
    %c1 = arith.constant 1 : index
    %c0_8 = arith.constant 0 : index
    %6 = vector.load %arg2[%c0_7, %c1, %c0_8] : memref<1x240x32xbf16, #tpu.memory_space<vmem>>, vector<1x96x32xbf16>
    %7 = vector.shape_cast %6 : vector<1x96x32xbf16> to vector<96x32xbf16>
    %c1_9 = arith.constant 1 : index
    %c0_10 = arith.constant 0 : index
    %c0_11 = arith.constant 0 : index
    %8 = vector.load %arg4[%c1_9, %c0_10, %c0_11] : memref<9x32x32xbf16, #tpu.memory_space<vmem>>, vector<1x32x32xbf16>
    %9 = vector.shape_cast %8 : vector<1x32x32xbf16> to vector<32x32xbf16>
    %cst_12 = arith.constant dense<0.000000e+00> : vector<96x32xf32>
    %10 = tpu.matmul %7, %9, %cst_12 {dimension_numbers = #tpu.dot_dimension_numbers<[1], [0], [0], [1], [0, 0, 1, 1], [], []>} : vector<96x32xbf16>, vector<32x32xbf16>, vector<96x32xf32> -> vector<96x32xf32>
    %11 = arith.addf %5, %10 : vector<96x32xf32>
    %c0_13 = arith.constant 0 : index
    %c2 = arith.constant 2 : index
    %c0_14 = arith.constant 0 : index
    %12 = vector.load %arg2[%c0_13, %c2, %c0_14] : memref<1x240x32xbf16, #tpu.memory_space<vmem>>, vector<1x96x32xbf16>
    %13 = vector.shape_cast %12 : vector<1x96x32xbf16> to vector<96x32xbf16>
    %c2_15 = arith.constant 2 : index
    %c0_16 = arith.constant 0 : index
    %c0_17 = arith.constant 0 : index
    %14 = vector.load %arg4[%c2_15, %c0_16, %c0_17] : memref<9x32x32xbf16, #tpu.memory_space<vmem>>, vector<1x32x32xbf16>
    %15 = vector.shape_cast %14 : vector<1x32x32xbf16> to vector<32x32xbf16>
    %cst_18 = arith.constant dense<0.000000e+00> : vector<96x32xf32>
    %16 = tpu.matmul %13, %15, %cst_18 {dimension_numbers = #tpu.dot_dimension_numbers<[1], [0], [0], [1], [0, 0, 1, 1], [], []>} : vector<96x32xbf16>, vector<32x32xbf16>, vector<96x32xf32> -> vector<96x32xf32>
    %17 = arith.addf %11, %16 : vector<96x32xf32>
    %c0_19 = arith.constant 0 : index
    %c0_20 = arith.constant 0 : index
    %c0_21 = arith.constant 0 : index
    %18 = vector.load %arg3[%c0_19, %c0_20, %c0_21] : memref<1x216x32xbf16, #tpu.memory_space<vmem>>, vector<1x96x32xbf16>
    %19 = vector.shape_cast %18 : vector<1x96x32xbf16> to vector<96x32xbf16>
    %c3 = arith.constant 3 : index
    %c0_22 = arith.constant 0 : index
    %c0_23 = arith.constant 0 : index
    %20 = vector.load %arg4[%c3, %c0_22, %c0_23] : memref<9x32x32xbf16, #tpu.memory_space<vmem>>, vector<1x32x32xbf16>
    %21 = vector.shape_cast %20 : vector<1x32x32xbf16> to vector<32x32xbf16>
    %cst_24 = arith.constant dense<0.000000e+00> : vector<96x32xf32>
    %22 = tpu.matmul %19, %21, %cst_24 {dimension_numbers = #tpu.dot_dimension_numbers<[1], [0], [0], [1], [0, 0, 1, 1], [], []>} : vector<96x32xbf16>, vector<32x32xbf16>, vector<96x32xf32> -> vector<96x32xf32>
    %23 = arith.addf %17, %22 : vector<96x32xf32>
    %c0_25 = arith.constant 0 : index
    %c1_26 = arith.constant 1 : index
    %c0_27 = arith.constant 0 : index
    %24 = vector.load %arg3[%c0_25, %c1_26, %c0_27] : memref<1x216x32xbf16, #tpu.memory_space<vmem>>, vector<1x96x32xbf16>
    %25 = vector.shape_cast %24 : vector<1x96x32xbf16> to vector<96x32xbf16>
    %c4 = arith.constant 4 : index
    %c0_28 = arith.constant 0 : index
    %c0_29 = arith.constant 0 : index
    %26 = vector.load %arg4[%c4, %c0_28, %c0_29] : memref<9x32x32xbf16, #tpu.memory_space<vmem>>, vector<1x32x32xbf16>
    %27 = vector.shape_cast %26 : vector<1x32x32xbf16> to vector<32x32xbf16>
    %cst_30 = arith.constant dense<0.000000e+00> : vector<96x32xf32>
    %28 = tpu.matmul %25, %27, %cst_30 {dimension_numbers = #tpu.dot_dimension_numbers<[1], [0], [0], [1], [0, 0, 1, 1], [], []>} : vector<96x32xbf16>, vector<32x32xbf16>, vector<96x32xf32> -> vector<96x32xf32>
    %29 = arith.addf %23, %28 : vector<96x32xf32>
    %c0_31 = arith.constant 0 : index
    %c2_32 = arith.constant 2 : index
    %c0_33 = arith.constant 0 : index
    %30 = vector.load %arg3[%c0_31, %c2_32, %c0_33] : memref<1x216x32xbf16, #tpu.memory_space<vmem>>, vector<1x96x32xbf16>
    %31 = vector.shape_cast %30 : vector<1x96x32xbf16> to vector<96x32xbf16>
    %c5 = arith.constant 5 : index
    %c0_34 = arith.constant 0 : index
    %c0_35 = arith.constant 0 : index
    %32 = vector.load %arg4[%c5, %c0_34, %c0_35] : memref<9x32x32xbf16, #tpu.memory_space<vmem>>, vector<1x32x32xbf16>
    %33 = vector.shape_cast %32 : vector<1x32x32xbf16> to vector<32x32xbf16>
    %cst_36 = arith.constant dense<0.000000e+00> : vector<96x32xf32>
    %34 = tpu.matmul %31, %33, %cst_36 {dimension_numbers = #tpu.dot_dimension_numbers<[1], [0], [0], [1], [0, 0, 1, 1], [], []>} : vector<96x32xbf16>, vector<32x32xbf16>, vector<96x32xf32> -> vector<96x32xf32>
    %35 = arith.addf %29, %34 : vector<96x32xf32>
    %c0_37 = arith.constant 0 : index
    %c24 = arith.constant 24 : index
    %c0_38 = arith.constant 0 : index
    %36 = vector.load %arg2[%c0_37, %c24, %c0_38] : memref<1x240x32xbf16, #tpu.memory_space<vmem>>, vector<1x96x32xbf16>
    %37 = vector.shape_cast %36 : vector<1x96x32xbf16> to vector<96x32xbf16>
    %c6 = arith.constant 6 : index
    %c0_39 = arith.constant 0 : index
    %c0_40 = arith.constant 0 : index
    %38 = vector.load %arg4[%c6, %c0_39, %c0_40] : memref<9x32x32xbf16, #tpu.memory_space<vmem>>, vector<1x32x32xbf16>
    %39 = vector.shape_cast %38 : vector<1x32x32xbf16> to vector<32x32xbf16>
    %cst_41 = arith.constant dense<0.000000e+00> : vector<96x32xf32>
    %40 = tpu.matmul %37, %39, %cst_41 {dimension_numbers = #tpu.dot_dimension_numbers<[1], [0], [0], [1], [0, 0, 1, 1], [], []>} : vector<96x32xbf16>, vector<32x32xbf16>, vector<96x32xf32> -> vector<96x32xf32>
    %41 = arith.addf %35, %40 : vector<96x32xf32>
    %c0_42 = arith.constant 0 : index
    %c25 = arith.constant 25 : index
    %c0_43 = arith.constant 0 : index
    %42 = vector.load %arg2[%c0_42, %c25, %c0_43] : memref<1x240x32xbf16, #tpu.memory_space<vmem>>, vector<1x96x32xbf16>
    %43 = vector.shape_cast %42 : vector<1x96x32xbf16> to vector<96x32xbf16>
    %c7 = arith.constant 7 : index
    %c0_44 = arith.constant 0 : index
    %c0_45 = arith.constant 0 : index
    %44 = vector.load %arg4[%c7, %c0_44, %c0_45] : memref<9x32x32xbf16, #tpu.memory_space<vmem>>, vector<1x32x32xbf16>
    %45 = vector.shape_cast %44 : vector<1x32x32xbf16> to vector<32x32xbf16>
    %cst_46 = arith.constant dense<0.000000e+00> : vector<96x32xf32>
    %46 = tpu.matmul %43, %45, %cst_46 {dimension_numbers = #tpu.dot_dimension_numbers<[1], [0], [0], [1], [0, 0, 1, 1], [], []>} : vector<96x32xbf16>, vector<32x32xbf16>, vector<96x32xf32> -> vector<96x32xf32>
    %47 = arith.addf %41, %46 : vector<96x32xf32>
    %c0_47 = arith.constant 0 : index
    %c26 = arith.constant 26 : index
    %c0_48 = arith.constant 0 : index
    %48 = vector.load %arg2[%c0_47, %c26, %c0_48] : memref<1x240x32xbf16, #tpu.memory_space<vmem>>, vector<1x96x32xbf16>
    %49 = vector.shape_cast %48 : vector<1x96x32xbf16> to vector<96x32xbf16>
    %c8 = arith.constant 8 : index
    %c0_49 = arith.constant 0 : index
    %c0_50 = arith.constant 0 : index
    %50 = vector.load %arg4[%c8, %c0_49, %c0_50] : memref<9x32x32xbf16, #tpu.memory_space<vmem>>, vector<1x32x32xbf16>
    %51 = vector.shape_cast %50 : vector<1x32x32xbf16> to vector<32x32xbf16>
    %cst_51 = arith.constant dense<0.000000e+00> : vector<96x32xf32>
    %52 = tpu.matmul %49, %51, %cst_51 {dimension_numbers = #tpu.dot_dimension_numbers<[1], [0], [0], [1], [0, 0, 1, 1], [], []>} : vector<96x32xbf16>, vector<32x32xbf16>, vector<96x32xf32> -> vector<96x32xf32>
    %53 = arith.addf %47, %52 : vector<96x32xf32>
    %54 = vector.broadcast %0 : vector<1x32xf32> to vector<96x32xf32>
    %55 = arith.addf %53, %54 : vector<96x32xf32>
    %cst_52 = arith.constant 0.000000e+00 : f32
    %56 = vector.broadcast %cst_52 : f32 to vector<96x32xf32>
    %57 = arith.maximumf %55, %56 : vector<96x32xf32>
    %58 = arith.truncf %57 : vector<96x32xf32> to vector<96x32xbf16>
    %c0_53 = arith.constant 0 : index
    %c0_54 = arith.constant 0 : index
    %c0_55 = arith.constant 0 : index
    %59 = vector.load %arg6[%c0_53, %c0_54, %c0_55] : memref<1x192x32xbf16, #tpu.memory_space<vmem>>, vector<1x96x32xbf16>
    %60 = vector.shape_cast %59 : vector<1x96x32xbf16> to vector<96x32xbf16>
    %61 = vector.shape_cast %58 : vector<96x32xbf16> to vector<1x96x32xbf16>
    tpu.vector_store %arg6[%c0_53, %c0_54, %c0_55], %61 {strides = array<i32>} : memref<1x192x32xbf16, #tpu.memory_space<vmem>>, vector<1x96x32xbf16>,
    %c0_56 = arith.constant 0 : index
    %c96 = arith.constant 96 : index
    %c0_57 = arith.constant 0 : index
    %62 = vector.load %arg2[%c0_56, %c96, %c0_57] : memref<1x240x32xbf16, #tpu.memory_space<vmem>>, vector<1x96x32xbf16>
    %63 = vector.shape_cast %62 : vector<1x96x32xbf16> to vector<96x32xbf16>
    %c0_58 = arith.constant 0 : index
    %c0_59 = arith.constant 0 : index
    %c0_60 = arith.constant 0 : index
    %64 = vector.load %arg4[%c0_58, %c0_59, %c0_60] : memref<9x32x32xbf16, #tpu.memory_space<vmem>>, vector<1x32x32xbf16>
    %65 = vector.shape_cast %64 : vector<1x32x32xbf16> to vector<32x32xbf16>
    %cst_61 = arith.constant dense<0.000000e+00> : vector<96x32xf32>
    %66 = tpu.matmul %63, %65, %cst_61 {dimension_numbers = #tpu.dot_dimension_numbers<[1], [0], [0], [1], [0, 0, 1, 1], [], []>} : vector<96x32xbf16>, vector<32x32xbf16>, vector<96x32xf32> -> vector<96x32xf32>
    %c0_62 = arith.constant 0 : index
    %c97 = arith.constant 97 : index
    %c0_63 = arith.constant 0 : index
    %67 = vector.load %arg2[%c0_62, %c97, %c0_63] : memref<1x240x32xbf16, #tpu.memory_space<vmem>>, vector<1x96x32xbf16>
    %68 = vector.shape_cast %67 : vector<1x96x32xbf16> to vector<96x32xbf16>
    %c1_64 = arith.constant 1 : index
    %c0_65 = arith.constant 0 : index
    %c0_66 = arith.constant 0 : index
    %69 = vector.load %arg4[%c1_64, %c0_65, %c0_66] : memref<9x32x32xbf16, #tpu.memory_space<vmem>>, vector<1x32x32xbf16>
    %70 = vector.shape_cast %69 : vector<1x32x32xbf16> to vector<32x32xbf16>
    %cst_67 = arith.constant dense<0.000000e+00> : vector<96x32xf32>
    %71 = tpu.matmul %68, %70, %cst_67 {dimension_numbers = #tpu.dot_dimension_numbers<[1], [0], [0], [1], [0, 0, 1, 1], [], []>} : vector<96x32xbf16>, vector<32x32xbf16>, vector<96x32xf32> -> vector<96x32xf32>
    %72 = arith.addf %66, %71 : vector<96x32xf32>
    %c0_68 = arith.constant 0 : index
    %c98 = arith.constant 98 : index
    %c0_69 = arith.constant 0 : index
    %73 = vector.load %arg2[%c0_68, %c98, %c0_69] : memref<1x240x32xbf16, #tpu.memory_space<vmem>>, vector<1x96x32xbf16>
    %74 = vector.shape_cast %73 : vector<1x96x32xbf16> to vector<96x32xbf16>
    %c2_70 = arith.constant 2 : index
    %c0_71 = arith.constant 0 : index
    %c0_72 = arith.constant 0 : index
    %75 = vector.load %arg4[%c2_70, %c0_71, %c0_72] : memref<9x32x32xbf16, #tpu.memory_space<vmem>>, vector<1x32x32xbf16>
    %76 = vector.shape_cast %75 : vector<1x32x32xbf16> to vector<32x32xbf16>
    %cst_73 = arith.constant dense<0.000000e+00> : vector<96x32xf32>
    %77 = tpu.matmul %74, %76, %cst_73 {dimension_numbers = #tpu.dot_dimension_numbers<[1], [0], [0], [1], [0, 0, 1, 1], [], []>} : vector<96x32xbf16>, vector<32x32xbf16>, vector<96x32xf32> -> vector<96x32xf32>
    %78 = arith.addf %72, %77 : vector<96x32xf32>
    %c0_74 = arith.constant 0 : index
    %c96_75 = arith.constant 96 : index
    %c0_76 = arith.constant 0 : index
    %79 = vector.load %arg3[%c0_74, %c96_75, %c0_76] : memref<1x216x32xbf16, #tpu.memory_space<vmem>>, vector<1x96x32xbf16>
    %80 = vector.shape_cast %79 : vector<1x96x32xbf16> to vector<96x32xbf16>
    %c3_77 = arith.constant 3 : index
    %c0_78 = arith.constant 0 : index
    %c0_79 = arith.constant 0 : index
    %81 = vector.load %arg4[%c3_77, %c0_78, %c0_79] : memref<9x32x32xbf16, #tpu.memory_space<vmem>>, vector<1x32x32xbf16>
    %82 = vector.shape_cast %81 : vector<1x32x32xbf16> to vector<32x32xbf16>
    %cst_80 = arith.constant dense<0.000000e+00> : vector<96x32xf32>
    %83 = tpu.matmul %80, %82, %cst_80 {dimension_numbers = #tpu.dot_dimension_numbers<[1], [0], [0], [1], [0, 0, 1, 1], [], []>} : vector<96x32xbf16>, vector<32x32xbf16>, vector<96x32xf32> -> vector<96x32xf32>
    %84 = arith.addf %78, %83 : vector<96x32xf32>
    %c0_81 = arith.constant 0 : index
    %c97_82 = arith.constant 97 : index
    %c0_83 = arith.constant 0 : index
    %85 = vector.load %arg3[%c0_81, %c97_82, %c0_83] : memref<1x216x32xbf16, #tpu.memory_space<vmem>>, vector<1x96x32xbf16>
    %86 = vector.shape_cast %85 : vector<1x96x32xbf16> to vector<96x32xbf16>
    %c4_84 = arith.constant 4 : index
    %c0_85 = arith.constant 0 : index
    %c0_86 = arith.constant 0 : index
    %87 = vector.load %arg4[%c4_84, %c0_85, %c0_86] : memref<9x32x32xbf16, #tpu.memory_space<vmem>>, vector<1x32x32xbf16>
    %88 = vector.shape_cast %87 : vector<1x32x32xbf16> to vector<32x32xbf16>
    %cst_87 = arith.constant dense<0.000000e+00> : vector<96x32xf32>
    %89 = tpu.matmul %86, %88, %cst_87 {dimension_numbers = #tpu.dot_dimension_numbers<[1], [0], [0], [1], [0, 0, 1, 1], [], []>} : vector<96x32xbf16>, vector<32x32xbf16>, vector<96x32xf32> -> vector<96x32xf32>
    %90 = arith.addf %84, %89 : vector<96x32xf32>
    %c0_88 = arith.constant 0 : index
    %c98_89 = arith.constant 98 : index
    %c0_90 = arith.constant 0 : index
    %91 = vector.load %arg3[%c0_88, %c98_89, %c0_90] : memref<1x216x32xbf16, #tpu.memory_space<vmem>>, vector<1x96x32xbf16>
    %92 = vector.shape_cast %91 : vector<1x96x32xbf16> to vector<96x32xbf16>
    %c5_91 = arith.constant 5 : index
    %c0_92 = arith.constant 0 : index
    %c0_93 = arith.constant 0 : index
    %93 = vector.load %arg4[%c5_91, %c0_92, %c0_93] : memref<9x32x32xbf16, #tpu.memory_space<vmem>>, vector<1x32x32xbf16>
    %94 = vector.shape_cast %93 : vector<1x32x32xbf16> to vector<32x32xbf16>
    %cst_94 = arith.constant dense<0.000000e+00> : vector<96x32xf32>
    %95 = tpu.matmul %92, %94, %cst_94 {dimension_numbers = #tpu.dot_dimension_numbers<[1], [0], [0], [1], [0, 0, 1, 1], [], []>} : vector<96x32xbf16>, vector<32x32xbf16>, vector<96x32xf32> -> vector<96x32xf32>
    %96 = arith.addf %90, %95 : vector<96x32xf32>
    %c0_95 = arith.constant 0 : index
    %c120 = arith.constant 120 : index
    %c0_96 = arith.constant 0 : index
    %97 = vector.load %arg2[%c0_95, %c120, %c0_96] : memref<1x240x32xbf16, #tpu.memory_space<vmem>>, vector<1x96x32xbf16>
    %98 = vector.shape_cast %97 : vector<1x96x32xbf16> to vector<96x32xbf16>
    %c6_97 = arith.constant 6 : index
    %c0_98 = arith.constant 0 : index
    %c0_99 = arith.constant 0 : index
    %99 = vector.load %arg4[%c6_97, %c0_98, %c0_99] : memref<9x32x32xbf16, #tpu.memory_space<vmem>>, vector<1x32x32xbf16>
    %100 = vector.shape_cast %99 : vector<1x32x32xbf16> to vector<32x32xbf16>
    %cst_100 = arith.constant dense<0.000000e+00> : vector<96x32xf32>
    %101 = tpu.matmul %98, %100, %cst_100 {dimension_numbers = #tpu.dot_dimension_numbers<[1], [0], [0], [1], [0, 0, 1, 1], [], []>} : vector<96x32xbf16>, vector<32x32xbf16>, vector<96x32xf32> -> vector<96x32xf32>
    %102 = arith.addf %96, %101 : vector<96x32xf32>
    %c0_101 = arith.constant 0 : index
    %c121 = arith.constant 121 : index
    %c0_102 = arith.constant 0 : index
    %103 = vector.load %arg2[%c0_101, %c121, %c0_102] : memref<1x240x32xbf16, #tpu.memory_space<vmem>>, vector<1x96x32xbf16>
    %104 = vector.shape_cast %103 : vector<1x96x32xbf16> to vector<96x32xbf16>
    %c7_103 = arith.constant 7 : index
    %c0_104 = arith.constant 0 : index
    %c0_105 = arith.constant 0 : index
    %105 = vector.load %arg4[%c7_103, %c0_104, %c0_105] : memref<9x32x32xbf16, #tpu.memory_space<vmem>>, vector<1x32x32xbf16>
    %106 = vector.shape_cast %105 : vector<1x32x32xbf16> to vector<32x32xbf16>
    %cst_106 = arith.constant dense<0.000000e+00> : vector<96x32xf32>
    %107 = tpu.matmul %104, %106, %cst_106 {dimension_numbers = #tpu.dot_dimension_numbers<[1], [0], [0], [1], [0, 0, 1, 1], [], []>} : vector<96x32xbf16>, vector<32x32xbf16>, vector<96x32xf32> -> vector<96x32xf32>
    %108 = arith.addf %102, %107 : vector<96x32xf32>
    %c0_107 = arith.constant 0 : index
    %c122 = arith.constant 122 : index
    %c0_108 = arith.constant 0 : index
    %109 = vector.load %arg2[%c0_107, %c122, %c0_108] : memref<1x240x32xbf16, #tpu.memory_space<vmem>>, vector<1x96x32xbf16>
    %110 = vector.shape_cast %109 : vector<1x96x32xbf16> to vector<96x32xbf16>
    %c8_109 = arith.constant 8 : index
    %c0_110 = arith.constant 0 : index
    %c0_111 = arith.constant 0 : index
    %111 = vector.load %arg4[%c8_109, %c0_110, %c0_111] : memref<9x32x32xbf16, #tpu.memory_space<vmem>>, vector<1x32x32xbf16>
    %112 = vector.shape_cast %111 : vector<1x32x32xbf16> to vector<32x32xbf16>
    %cst_112 = arith.constant dense<0.000000e+00> : vector<96x32xf32>
    %113 = tpu.matmul %110, %112, %cst_112 {dimension_numbers = #tpu.dot_dimension_numbers<[1], [0], [0], [1], [0, 0, 1, 1], [], []>} : vector<96x32xbf16>, vector<32x32xbf16>, vector<96x32xf32> -> vector<96x32xf32>
    %114 = arith.addf %108, %113 : vector<96x32xf32>
    %115 = vector.broadcast %0 : vector<1x32xf32> to vector<96x32xf32>
    %116 = arith.addf %114, %115 : vector<96x32xf32>
    %cst_113 = arith.constant 0.000000e+00 : f32
    %117 = vector.broadcast %cst_113 : f32 to vector<96x32xf32>
    %118 = arith.maximumf %116, %117 : vector<96x32xf32>
    %119 = arith.truncf %118 : vector<96x32xf32> to vector<96x32xbf16>
    %c0_114 = arith.constant 0 : index
    %c96_115 = arith.constant 96 : index
    %c0_116 = arith.constant 0 : index
    %120 = vector.load %arg6[%c0_114, %c96_115, %c0_116] : memref<1x192x32xbf16, #tpu.memory_space<vmem>>, vector<1x96x32xbf16>
    %121 = vector.shape_cast %120 : vector<1x96x32xbf16> to vector<96x32xbf16>
    %122 = vector.shape_cast %119 : vector<96x32xbf16> to vector<1x96x32xbf16>
    tpu.vector_store %arg6[%c0_114, %c96_115, %c0_116], %122 {strides = array<i32>} : memref<1x192x32xbf16, #tpu.memory_space<vmem>>, vector<1x96x32xbf16>,
    return
  }
  func.func @transform_0(%arg0: i32, %arg1: i32) -> (i32, i32, i32) {
    %c0_i32 = arith.constant 0 : i32
    %c0_i32_0 = arith.constant 0 : i32
    %c0_i32_1 = arith.constant 0 : i32
    return %arg0, %c0_i32, %c0_i32_0 : i32, i32, i32
  }
  func.func @transform_1(%arg0: i32, %arg1: i32) -> (i32, i32, i32) {
    %c0_i32 = arith.constant 0 : i32
    %c0_i32_0 = arith.constant 0 : i32
    %c0_i32_1 = arith.constant 0 : i32
    return %arg0, %c0_i32, %c0_i32_0 : i32, i32, i32
  }
  func.func @transform_2(%arg0: i32, %arg1: i32) -> (i32, i32, i32) {
    %c0_i32 = arith.constant 0 : i32
    %c0_i32_0 = arith.constant 0 : i32
    %c0_i32_1 = arith.constant 0 : i32
    return %c0_i32, %c0_i32_0, %arg1 : i32, i32, i32
  }
  func.func @transform_3(%arg0: i32, %arg1: i32) -> (i32, i32) {
    %c0_i32 = arith.constant 0 : i32
    %c0_i32_0 = arith.constant 0 : i32
    return %c0_i32, %arg1 : i32, i32
  }
  func.func @transform_4(%arg0: i32, %arg1: i32) -> (i32, i32, i32) {
    %c0_i32 = arith.constant 0 : i32
    %c0_i32_0 = arith.constant 0 : i32
    return %arg0, %c0_i32, %arg1 : i32, i32, i32
  }
}

module attributes {stable_mosaic.version = 11 : i64} {
  func.func @kernel(%arg0: i32, %arg1: i32, %arg2: memref<128x32xbf16, #tpu.memory_space<vmem>>, %arg3: memref<32x128xbf16, #tpu.memory_space<vmem>>, %arg4: memref<1x128xf32, #tpu.memory_space<vmem>>, %arg5: memref<128x64xbf16, #tpu.memory_space<vmem>>, %arg6: memref<64x128xbf16, #tpu.memory_space<vmem>>, %arg7: memref<1x128xf32, #tpu.memory_space<vmem>>, %arg8: memref<128x128xbf16, #tpu.memory_space<vmem>>) attributes {dimension_semantics = [#tpu.dimension_semantics<parallel>, #tpu.dimension_semantics<parallel>], iteration_bounds = array<i64: 1, 1>, scalar_prefetch = 0 : i64, scratch_operands = 0 : i64, tpu.core_type = #tpu.core_type<tc>, window_params = [{transform_indices = @transform_0, window_bounds = array<i64: 128, 32>}, {transform_indices = @transform_1, window_bounds = array<i64: 32, 128>}, {transform_indices = @transform_2, window_bounds = array<i64: 1, 128>}, {transform_indices = @transform_3, window_bounds = array<i64: 128, 64>}, {transform_indices = @transform_4, window_bounds = array<i64: 64, 128>}, {transform_indices = @transform_5, window_bounds = array<i64: 1, 128>}, {transform_indices = @transform_6, window_bounds = array<i64: 128, 128>}]} {
    %c0 = arith.constant 0 : index
    %c0_0 = arith.constant 0 : index
    %0 = vector.load %arg2[%c0, %c0_0] : memref<128x32xbf16, #tpu.memory_space<vmem>>, vector<128x32xbf16>
    %c0_1 = arith.constant 0 : index
    %c0_2 = arith.constant 0 : index
    %1 = vector.load %arg3[%c0_1, %c0_2] : memref<32x128xbf16, #tpu.memory_space<vmem>>, vector<32x128xbf16>
    %cst = arith.constant dense<0.000000e+00> : vector<128x128xf32>
    %2 = tpu.matmul %0, %1, %cst {dimension_numbers = #tpu.dot_dimension_numbers<[1], [0], [0], [1], [0, 0, 1, 1], [], []>} : vector<128x32xbf16>, vector<32x128xbf16>, vector<128x128xf32> -> vector<128x128xf32>
    %c0_3 = arith.constant 0 : index
    %c0_4 = arith.constant 0 : index
    %3 = vector.load %arg4[%c0_3, %c0_4] : memref<1x128xf32, #tpu.memory_space<vmem>>, vector<1x128xf32>
    %4 = vector.broadcast %3 : vector<1x128xf32> to vector<128x128xf32>
    %5 = arith.addf %2, %4 : vector<128x128xf32>
    %c0_5 = arith.constant 0 : index
    %c0_6 = arith.constant 0 : index
    %6 = vector.load %arg5[%c0_5, %c0_6] : memref<128x64xbf16, #tpu.memory_space<vmem>>, vector<128x64xbf16>
    %c0_7 = arith.constant 0 : index
    %c0_8 = arith.constant 0 : index
    %7 = vector.load %arg6[%c0_7, %c0_8] : memref<64x128xbf16, #tpu.memory_space<vmem>>, vector<64x128xbf16>
    %cst_9 = arith.constant dense<0.000000e+00> : vector<128x128xf32>
    %8 = tpu.matmul %6, %7, %cst_9 {dimension_numbers = #tpu.dot_dimension_numbers<[1], [0], [0], [1], [0, 0, 1, 1], [], []>} : vector<128x64xbf16>, vector<64x128xbf16>, vector<128x128xf32> -> vector<128x128xf32>
    %9 = arith.addf %5, %8 : vector<128x128xf32>
    %c0_10 = arith.constant 0 : index
    %c0_11 = arith.constant 0 : index
    %10 = vector.load %arg7[%c0_10, %c0_11] : memref<1x128xf32, #tpu.memory_space<vmem>>, vector<1x128xf32>
    %11 = vector.broadcast %10 : vector<1x128xf32> to vector<128x128xf32>
    %12 = arith.addf %9, %11 : vector<128x128xf32>
    %cst_12 = arith.constant 0.000000e+00 : f32
    %13 = vector.broadcast %cst_12 : f32 to vector<128x128xf32>
    %14 = arith.maximumf %12, %13 : vector<128x128xf32>
    %15 = arith.truncf %14 : vector<128x128xf32> to vector<128x128xbf16>
    %c0_13 = arith.constant 0 : index
    %c0_14 = arith.constant 0 : index
    %16 = vector.load %arg8[%c0_13, %c0_14] : memref<128x128xbf16, #tpu.memory_space<vmem>>, vector<128x128xbf16>
    tpu.vector_store %arg8[%c0_13, %c0_14], %15 {strides = array<i32>} : memref<128x128xbf16, #tpu.memory_space<vmem>>, vector<128x128xbf16>,
    return
  }
  func.func @transform_0(%arg0: i32, %arg1: i32) -> (i32, i32) {
    %c0_i32 = arith.constant 0 : i32
    %c0_i32_0 = arith.constant 0 : i32
    return %arg0, %c0_i32 : i32, i32
  }
  func.func @transform_1(%arg0: i32, %arg1: i32) -> (i32, i32) {
    %c0_i32 = arith.constant 0 : i32
    %c0_i32_0 = arith.constant 0 : i32
    return %c0_i32, %arg1 : i32, i32
  }
  func.func @transform_2(%arg0: i32, %arg1: i32) -> (i32, i32) {
    %c0_i32 = arith.constant 0 : i32
    %c0_i32_0 = arith.constant 0 : i32
    return %c0_i32, %arg1 : i32, i32
  }
  func.func @transform_3(%arg0: i32, %arg1: i32) -> (i32, i32) {
    %c0_i32 = arith.constant 0 : i32
    %c0_i32_0 = arith.constant 0 : i32
    return %arg0, %c0_i32 : i32, i32
  }
  func.func @transform_4(%arg0: i32, %arg1: i32) -> (i32, i32) {
    %c0_i32 = arith.constant 0 : i32
    %c0_i32_0 = arith.constant 0 : i32
    return %c0_i32, %arg1 : i32, i32
  }
  func.func @transform_5(%arg0: i32, %arg1: i32) -> (i32, i32) {
    %c0_i32 = arith.constant 0 : i32
    %c0_i32_0 = arith.constant 0 : i32
    return %c0_i32, %arg1 : i32, i32
  }
  func.func @transform_6(%arg0: i32, %arg1: i32) -> (i32, i32) {
    %c0_i32 = arith.constant 0 : i32
    return %arg0, %arg1 : i32, i32
  }
}

module attributes {stable_mosaic.version = 11 : i64} {
  func.func @kernel(%arg0: i32, %arg1: i32, %arg2: memref<128x128xbf16, #tpu.memory_space<vmem>>, %arg3: memref<128x32xbf16, #tpu.memory_space<vmem>>, %arg4: memref<1x32xf32, #tpu.memory_space<vmem>>, %arg5: memref<128x32xbf16, #tpu.memory_space<vmem>>) attributes {dimension_semantics = [#tpu.dimension_semantics<parallel>, #tpu.dimension_semantics<parallel>], iteration_bounds = array<i64: 1, 1>, scalar_prefetch = 0 : i64, scratch_operands = 0 : i64, tpu.core_type = #tpu.core_type<tc>, window_params = [{transform_indices = @transform_0, window_bounds = array<i64: 128, 128>}, {transform_indices = @transform_1, window_bounds = array<i64: 128, 32>}, {transform_indices = @transform_2, window_bounds = array<i64: 1, 32>}, {transform_indices = @transform_3, window_bounds = array<i64: 128, 32>}]} {
    %c0 = arith.constant 0 : index
    %c0_0 = arith.constant 0 : index
    %0 = vector.load %arg2[%c0, %c0_0] : memref<128x128xbf16, #tpu.memory_space<vmem>>, vector<128x128xbf16>
    %c0_1 = arith.constant 0 : index
    %c0_2 = arith.constant 0 : index
    %1 = vector.load %arg3[%c0_1, %c0_2] : memref<128x32xbf16, #tpu.memory_space<vmem>>, vector<128x32xbf16>
    %cst = arith.constant dense<0.000000e+00> : vector<128x32xf32>
    %2 = tpu.matmul %0, %1, %cst {dimension_numbers = #tpu.dot_dimension_numbers<[1], [0], [0], [1], [0, 0, 1, 1], [], []>} : vector<128x128xbf16>, vector<128x32xbf16>, vector<128x32xf32> -> vector<128x32xf32>
    %c0_3 = arith.constant 0 : index
    %c0_4 = arith.constant 0 : index
    %3 = vector.load %arg4[%c0_3, %c0_4] : memref<1x32xf32, #tpu.memory_space<vmem>>, vector<1x32xf32>
    %4 = vector.broadcast %3 : vector<1x32xf32> to vector<128x32xf32>
    %5 = arith.addf %2, %4 : vector<128x32xf32>
    %cst_5 = arith.constant 0.000000e+00 : f32
    %6 = vector.broadcast %cst_5 : f32 to vector<128x32xf32>
    %7 = arith.maximumf %5, %6 : vector<128x32xf32>
    %8 = arith.truncf %7 : vector<128x32xf32> to vector<128x32xbf16>
    %c0_6 = arith.constant 0 : index
    %c0_7 = arith.constant 0 : index
    %9 = vector.load %arg5[%c0_6, %c0_7] : memref<128x32xbf16, #tpu.memory_space<vmem>>, vector<128x32xbf16>
    tpu.vector_store %arg5[%c0_6, %c0_7], %8 {strides = array<i32>} : memref<128x32xbf16, #tpu.memory_space<vmem>>, vector<128x32xbf16>,
    return
  }
  func.func @transform_0(%arg0: i32, %arg1: i32) -> (i32, i32) {
    %c0_i32 = arith.constant 0 : i32
    %c0_i32_0 = arith.constant 0 : i32
    return %arg0, %c0_i32 : i32, i32
  }
  func.func @transform_1(%arg0: i32, %arg1: i32) -> (i32, i32) {
    %c0_i32 = arith.constant 0 : i32
    %c0_i32_0 = arith.constant 0 : i32
    return %c0_i32, %arg1 : i32, i32
  }
  func.func @transform_2(%arg0: i32, %arg1: i32) -> (i32, i32) {
    %c0_i32 = arith.constant 0 : i32
    %c0_i32_0 = arith.constant 0 : i32
    return %c0_i32, %arg1 : i32, i32
  }
  func.func @transform_3(%arg0: i32, %arg1: i32) -> (i32, i32) {
    %c0_i32 = arith.constant 0 : i32
    return %arg0, %arg1 : i32, i32
  }
}

module attributes {stable_mosaic.version = 11 : i64} {
  func.func @kernel(%arg0: i32, %arg1: i32, %arg2: memref<128x32xbf16, #tpu.memory_space<vmem>>, %arg3: memref<32x128xbf16, #tpu.memory_space<vmem>>, %arg4: memref<1x128xf32, #tpu.memory_space<vmem>>, %arg5: memref<128x128xbf16, #tpu.memory_space<vmem>>, %arg6: memref<128x128xbf16, #tpu.memory_space<vmem>>) attributes {dimension_semantics = [#tpu.dimension_semantics<parallel>, #tpu.dimension_semantics<parallel>], iteration_bounds = array<i64: 1, 1>, scalar_prefetch = 0 : i64, scratch_operands = 0 : i64, tpu.core_type = #tpu.core_type<tc>, window_params = [{transform_indices = @transform_0, window_bounds = array<i64: 128, 32>}, {transform_indices = @transform_1, window_bounds = array<i64: 32, 128>}, {transform_indices = @transform_2, window_bounds = array<i64: 1, 128>}, {transform_indices = @transform_3, window_bounds = array<i64: 128, 128>}, {transform_indices = @transform_4, window_bounds = array<i64: 128, 128>}]} {
    %c0 = arith.constant 0 : index
    %c0_0 = arith.constant 0 : index
    %0 = vector.load %arg2[%c0, %c0_0] : memref<128x32xbf16, #tpu.memory_space<vmem>>, vector<128x32xbf16>
    %c0_1 = arith.constant 0 : index
    %c0_2 = arith.constant 0 : index
    %1 = vector.load %arg3[%c0_1, %c0_2] : memref<32x128xbf16, #tpu.memory_space<vmem>>, vector<32x128xbf16>
    %cst = arith.constant dense<0.000000e+00> : vector<128x128xf32>
    %2 = tpu.matmul %0, %1, %cst {dimension_numbers = #tpu.dot_dimension_numbers<[1], [0], [0], [1], [0, 0, 1, 1], [], []>} : vector<128x32xbf16>, vector<32x128xbf16>, vector<128x128xf32> -> vector<128x128xf32>
    %c0_3 = arith.constant 0 : index
    %c0_4 = arith.constant 0 : index
    %3 = vector.load %arg4[%c0_3, %c0_4] : memref<1x128xf32, #tpu.memory_space<vmem>>, vector<1x128xf32>
    %4 = vector.broadcast %3 : vector<1x128xf32> to vector<128x128xf32>
    %5 = arith.addf %2, %4 : vector<128x128xf32>
    %c0_5 = arith.constant 0 : index
    %c0_6 = arith.constant 0 : index
    %6 = vector.load %arg5[%c0_5, %c0_6] : memref<128x128xbf16, #tpu.memory_space<vmem>>, vector<128x128xbf16>
    %7 = arith.extf %6 : vector<128x128xbf16> to vector<128x128xf32>
    %8 = arith.addf %5, %7 : vector<128x128xf32>
    %cst_7 = arith.constant 0.000000e+00 : f32
    %9 = vector.broadcast %cst_7 : f32 to vector<128x128xf32>
    %10 = arith.maximumf %8, %9 : vector<128x128xf32>
    %11 = arith.truncf %10 : vector<128x128xf32> to vector<128x128xbf16>
    %c0_8 = arith.constant 0 : index
    %c0_9 = arith.constant 0 : index
    %12 = vector.load %arg6[%c0_8, %c0_9] : memref<128x128xbf16, #tpu.memory_space<vmem>>, vector<128x128xbf16>
    tpu.vector_store %arg6[%c0_8, %c0_9], %11 {strides = array<i32>} : memref<128x128xbf16, #tpu.memory_space<vmem>>, vector<128x128xbf16>,
    return
  }
  func.func @transform_0(%arg0: i32, %arg1: i32) -> (i32, i32) {
    %c0_i32 = arith.constant 0 : i32
    %c0_i32_0 = arith.constant 0 : i32
    return %arg0, %c0_i32 : i32, i32
  }
  func.func @transform_1(%arg0: i32, %arg1: i32) -> (i32, i32) {
    %c0_i32 = arith.constant 0 : i32
    %c0_i32_0 = arith.constant 0 : i32
    return %c0_i32, %arg1 : i32, i32
  }
  func.func @transform_2(%arg0: i32, %arg1: i32) -> (i32, i32) {
    %c0_i32 = arith.constant 0 : i32
    %c0_i32_0 = arith.constant 0 : i32
    return %c0_i32, %arg1 : i32, i32
  }
  func.func @transform_3(%arg0: i32, %arg1: i32) -> (i32, i32) {
    %c0_i32 = arith.constant 0 : i32
    return %arg0, %arg1 : i32, i32
  }
  func.func @transform_4(%arg0: i32, %arg1: i32) -> (i32, i32) {
    %c0_i32 = arith.constant 0 : i32
    return %arg0, %arg1 : i32, i32
  }
}

module attributes {stable_mosaic.version = 11 : i64} {
  func.func @kernel(%arg0: i32, %arg1: i32, %arg2: memref<1x176x32xbf16, #tpu.memory_space<vmem>>, %arg3: memref<9x32x32xbf16, #tpu.memory_space<vmem>>, %arg4: memref<1x32xf32, #tpu.memory_space<vmem>>, %arg5: memref<1x128x32xbf16, #tpu.memory_space<vmem>>) attributes {dimension_semantics = [#tpu.dimension_semantics<parallel>, #tpu.dimension_semantics<parallel>], iteration_bounds = array<i64: 2, 1>, scalar_prefetch = 0 : i64, scratch_operands = 0 : i64, tpu.core_type = #tpu.core_type<tc>, window_params = [{transform_indices = @transform_0, window_bounds = array<i64: 1, 176, 32>}, {transform_indices = @transform_1, window_bounds = array<i64: 9, 32, 32>}, {transform_indices = @transform_2, window_bounds = array<i64: 1, 32>}, {transform_indices = @transform_3, window_bounds = array<i64: 1, 128, 32>}]} {
    %c0 = arith.constant 0 : index
    %c0_0 = arith.constant 0 : index
    %0 = vector.load %arg4[%c0, %c0_0] : memref<1x32xf32, #tpu.memory_space<vmem>>, vector<1x32xf32>
    %c0_1 = arith.constant 0 : index
    %c0_2 = arith.constant 0 : index
    %c0_3 = arith.constant 0 : index
    %1 = vector.load %arg2[%c0_1, %c0_2, %c0_3] : memref<1x176x32xbf16, #tpu.memory_space<vmem>>, vector<1x128x32xbf16>
    %2 = vector.shape_cast %1 : vector<1x128x32xbf16> to vector<128x32xbf16>
    %c0_4 = arith.constant 0 : index
    %c0_5 = arith.constant 0 : index
    %c0_6 = arith.constant 0 : index
    %3 = vector.load %arg3[%c0_4, %c0_5, %c0_6] : memref<9x32x32xbf16, #tpu.memory_space<vmem>>, vector<1x32x32xbf16>
    %4 = vector.shape_cast %3 : vector<1x32x32xbf16> to vector<32x32xbf16>
    %cst = arith.constant dense<0.000000e+00> : vector<128x32xf32>
    %5 = tpu.matmul %2, %4, %cst {dimension_numbers = #tpu.dot_dimension_numbers<[1], [0], [0], [1], [0, 0, 1, 1], [], []>} : vector<128x32xbf16>, vector<32x32xbf16>, vector<128x32xf32> -> vector<128x32xf32>
    %c0_7 = arith.constant 0 : index
    %c1 = arith.constant 1 : index
    %c0_8 = arith.constant 0 : index
    %6 = vector.load %arg2[%c0_7, %c1, %c0_8] : memref<1x176x32xbf16, #tpu.memory_space<vmem>>, vector<1x128x32xbf16>
    %7 = vector.shape_cast %6 : vector<1x128x32xbf16> to vector<128x32xbf16>
    %c1_9 = arith.constant 1 : index
    %c0_10 = arith.constant 0 : index
    %c0_11 = arith.constant 0 : index
    %8 = vector.load %arg3[%c1_9, %c0_10, %c0_11] : memref<9x32x32xbf16, #tpu.memory_space<vmem>>, vector<1x32x32xbf16>
    %9 = vector.shape_cast %8 : vector<1x32x32xbf16> to vector<32x32xbf16>
    %cst_12 = arith.constant dense<0.000000e+00> : vector<128x32xf32>
    %10 = tpu.matmul %7, %9, %cst_12 {dimension_numbers = #tpu.dot_dimension_numbers<[1], [0], [0], [1], [0, 0, 1, 1], [], []>} : vector<128x32xbf16>, vector<32x32xbf16>, vector<128x32xf32> -> vector<128x32xf32>
    %11 = arith.addf %5, %10 : vector<128x32xf32>
    %c0_13 = arith.constant 0 : index
    %c2 = arith.constant 2 : index
    %c0_14 = arith.constant 0 : index
    %12 = vector.load %arg2[%c0_13, %c2, %c0_14] : memref<1x176x32xbf16, #tpu.memory_space<vmem>>, vector<1x128x32xbf16>
    %13 = vector.shape_cast %12 : vector<1x128x32xbf16> to vector<128x32xbf16>
    %c2_15 = arith.constant 2 : index
    %c0_16 = arith.constant 0 : index
    %c0_17 = arith.constant 0 : index
    %14 = vector.load %arg3[%c2_15, %c0_16, %c0_17] : memref<9x32x32xbf16, #tpu.memory_space<vmem>>, vector<1x32x32xbf16>
    %15 = vector.shape_cast %14 : vector<1x32x32xbf16> to vector<32x32xbf16>
    %cst_18 = arith.constant dense<0.000000e+00> : vector<128x32xf32>
    %16 = tpu.matmul %13, %15, %cst_18 {dimension_numbers = #tpu.dot_dimension_numbers<[1], [0], [0], [1], [0, 0, 1, 1], [], []>} : vector<128x32xbf16>, vector<32x32xbf16>, vector<128x32xf32> -> vector<128x32xf32>
    %17 = arith.addf %11, %16 : vector<128x32xf32>
    %c0_19 = arith.constant 0 : index
    %c16 = arith.constant 16 : index
    %c0_20 = arith.constant 0 : index
    %18 = vector.load %arg2[%c0_19, %c16, %c0_20] : memref<1x176x32xbf16, #tpu.memory_space<vmem>>, vector<1x128x32xbf16>
    %19 = vector.shape_cast %18 : vector<1x128x32xbf16> to vector<128x32xbf16>
    %c3 = arith.constant 3 : index
    %c0_21 = arith.constant 0 : index
    %c0_22 = arith.constant 0 : index
    %20 = vector.load %arg3[%c3, %c0_21, %c0_22] : memref<9x32x32xbf16, #tpu.memory_space<vmem>>, vector<1x32x32xbf16>
    %21 = vector.shape_cast %20 : vector<1x32x32xbf16> to vector<32x32xbf16>
    %cst_23 = arith.constant dense<0.000000e+00> : vector<128x32xf32>
    %22 = tpu.matmul %19, %21, %cst_23 {dimension_numbers = #tpu.dot_dimension_numbers<[1], [0], [0], [1], [0, 0, 1, 1], [], []>} : vector<128x32xbf16>, vector<32x32xbf16>, vector<128x32xf32> -> vector<128x32xf32>
    %23 = arith.addf %17, %22 : vector<128x32xf32>
    %c0_24 = arith.constant 0 : index
    %c17 = arith.constant 17 : index
    %c0_25 = arith.constant 0 : index
    %24 = vector.load %arg2[%c0_24, %c17, %c0_25] : memref<1x176x32xbf16, #tpu.memory_space<vmem>>, vector<1x128x32xbf16>
    %25 = vector.shape_cast %24 : vector<1x128x32xbf16> to vector<128x32xbf16>
    %c4 = arith.constant 4 : index
    %c0_26 = arith.constant 0 : index
    %c0_27 = arith.constant 0 : index
    %26 = vector.load %arg3[%c4, %c0_26, %c0_27] : memref<9x32x32xbf16, #tpu.memory_space<vmem>>, vector<1x32x32xbf16>
    %27 = vector.shape_cast %26 : vector<1x32x32xbf16> to vector<32x32xbf16>
    %cst_28 = arith.constant dense<0.000000e+00> : vector<128x32xf32>
    %28 = tpu.matmul %25, %27, %cst_28 {dimension_numbers = #tpu.dot_dimension_numbers<[1], [0], [0], [1], [0, 0, 1, 1], [], []>} : vector<128x32xbf16>, vector<32x32xbf16>, vector<128x32xf32> -> vector<128x32xf32>
    %29 = arith.addf %23, %28 : vector<128x32xf32>
    %c0_29 = arith.constant 0 : index
    %c18 = arith.constant 18 : index
    %c0_30 = arith.constant 0 : index
    %30 = vector.load %arg2[%c0_29, %c18, %c0_30] : memref<1x176x32xbf16, #tpu.memory_space<vmem>>, vector<1x128x32xbf16>
    %31 = vector.shape_cast %30 : vector<1x128x32xbf16> to vector<128x32xbf16>
    %c5 = arith.constant 5 : index
    %c0_31 = arith.constant 0 : index
    %c0_32 = arith.constant 0 : index
    %32 = vector.load %arg3[%c5, %c0_31, %c0_32] : memref<9x32x32xbf16, #tpu.memory_space<vmem>>, vector<1x32x32xbf16>
    %33 = vector.shape_cast %32 : vector<1x32x32xbf16> to vector<32x32xbf16>
    %cst_33 = arith.constant dense<0.000000e+00> : vector<128x32xf32>
    %34 = tpu.matmul %31, %33, %cst_33 {dimension_numbers = #tpu.dot_dimension_numbers<[1], [0], [0], [1], [0, 0, 1, 1], [], []>} : vector<128x32xbf16>, vector<32x32xbf16>, vector<128x32xf32> -> vector<128x32xf32>
    %35 = arith.addf %29, %34 : vector<128x32xf32>
    %c0_34 = arith.constant 0 : index
    %c32 = arith.constant 32 : index
    %c0_35 = arith.constant 0 : index
    %36 = vector.load %arg2[%c0_34, %c32, %c0_35] : memref<1x176x32xbf16, #tpu.memory_space<vmem>>, vector<1x128x32xbf16>
    %37 = vector.shape_cast %36 : vector<1x128x32xbf16> to vector<128x32xbf16>
    %c6 = arith.constant 6 : index
    %c0_36 = arith.constant 0 : index
    %c0_37 = arith.constant 0 : index
    %38 = vector.load %arg3[%c6, %c0_36, %c0_37] : memref<9x32x32xbf16, #tpu.memory_space<vmem>>, vector<1x32x32xbf16>
    %39 = vector.shape_cast %38 : vector<1x32x32xbf16> to vector<32x32xbf16>
    %cst_38 = arith.constant dense<0.000000e+00> : vector<128x32xf32>
    %40 = tpu.matmul %37, %39, %cst_38 {dimension_numbers = #tpu.dot_dimension_numbers<[1], [0], [0], [1], [0, 0, 1, 1], [], []>} : vector<128x32xbf16>, vector<32x32xbf16>, vector<128x32xf32> -> vector<128x32xf32>
    %41 = arith.addf %35, %40 : vector<128x32xf32>
    %c0_39 = arith.constant 0 : index
    %c33 = arith.constant 33 : index
    %c0_40 = arith.constant 0 : index
    %42 = vector.load %arg2[%c0_39, %c33, %c0_40] : memref<1x176x32xbf16, #tpu.memory_space<vmem>>, vector<1x128x32xbf16>
    %43 = vector.shape_cast %42 : vector<1x128x32xbf16> to vector<128x32xbf16>
    %c7 = arith.constant 7 : index
    %c0_41 = arith.constant 0 : index
    %c0_42 = arith.constant 0 : index
    %44 = vector.load %arg3[%c7, %c0_41, %c0_42] : memref<9x32x32xbf16, #tpu.memory_space<vmem>>, vector<1x32x32xbf16>
    %45 = vector.shape_cast %44 : vector<1x32x32xbf16> to vector<32x32xbf16>
    %cst_43 = arith.constant dense<0.000000e+00> : vector<128x32xf32>
    %46 = tpu.matmul %43, %45, %cst_43 {dimension_numbers = #tpu.dot_dimension_numbers<[1], [0], [0], [1], [0, 0, 1, 1], [], []>} : vector<128x32xbf16>, vector<32x32xbf16>, vector<128x32xf32> -> vector<128x32xf32>
    %47 = arith.addf %41, %46 : vector<128x32xf32>
    %c0_44 = arith.constant 0 : index
    %c34 = arith.constant 34 : index
    %c0_45 = arith.constant 0 : index
    %48 = vector.load %arg2[%c0_44, %c34, %c0_45] : memref<1x176x32xbf16, #tpu.memory_space<vmem>>, vector<1x128x32xbf16>
    %49 = vector.shape_cast %48 : vector<1x128x32xbf16> to vector<128x32xbf16>
    %c8 = arith.constant 8 : index
    %c0_46 = arith.constant 0 : index
    %c0_47 = arith.constant 0 : index
    %50 = vector.load %arg3[%c8, %c0_46, %c0_47] : memref<9x32x32xbf16, #tpu.memory_space<vmem>>, vector<1x32x32xbf16>
    %51 = vector.shape_cast %50 : vector<1x32x32xbf16> to vector<32x32xbf16>
    %cst_48 = arith.constant dense<0.000000e+00> : vector<128x32xf32>
    %52 = tpu.matmul %49, %51, %cst_48 {dimension_numbers = #tpu.dot_dimension_numbers<[1], [0], [0], [1], [0, 0, 1, 1], [], []>} : vector<128x32xbf16>, vector<32x32xbf16>, vector<128x32xf32> -> vector<128x32xf32>
    %53 = arith.addf %47, %52 : vector<128x32xf32>
    %54 = vector.broadcast %0 : vector<1x32xf32> to vector<128x32xf32>
    %55 = arith.addf %53, %54 : vector<128x32xf32>
    %cst_49 = arith.constant 0.000000e+00 : f32
    %56 = vector.broadcast %cst_49 : f32 to vector<128x32xf32>
    %57 = arith.maximumf %55, %56 : vector<128x32xf32>
    %58 = arith.truncf %57 : vector<128x32xf32> to vector<128x32xbf16>
    %c0_50 = arith.constant 0 : index
    %c0_51 = arith.constant 0 : index
    %c0_52 = arith.constant 0 : index
    %59 = vector.load %arg5[%c0_50, %c0_51, %c0_52] : memref<1x128x32xbf16, #tpu.memory_space<vmem>>, vector<1x128x32xbf16>
    %60 = vector.shape_cast %59 : vector<1x128x32xbf16> to vector<128x32xbf16>
    %61 = vector.shape_cast %58 : vector<128x32xbf16> to vector<1x128x32xbf16>
    tpu.vector_store %arg5[%c0_50, %c0_51, %c0_52], %61 {strides = array<i32>} : memref<1x128x32xbf16, #tpu.memory_space<vmem>>, vector<1x128x32xbf16>,
    return
  }
  func.func @transform_0(%arg0: i32, %arg1: i32) -> (i32, i32, i32) {
    %c0_i32 = arith.constant 0 : i32
    %c0_i32_0 = arith.constant 0 : i32
    %c0_i32_1 = arith.constant 0 : i32
    return %arg0, %c0_i32, %c0_i32_0 : i32, i32, i32
  }
  func.func @transform_1(%arg0: i32, %arg1: i32) -> (i32, i32, i32) {
    %c0_i32 = arith.constant 0 : i32
    %c0_i32_0 = arith.constant 0 : i32
    %c0_i32_1 = arith.constant 0 : i32
    return %c0_i32, %c0_i32_0, %arg1 : i32, i32, i32
  }
  func.func @transform_2(%arg0: i32, %arg1: i32) -> (i32, i32) {
    %c0_i32 = arith.constant 0 : i32
    %c0_i32_0 = arith.constant 0 : i32
    return %c0_i32, %arg1 : i32, i32
  }
  func.func @transform_3(%arg0: i32, %arg1: i32) -> (i32, i32, i32) {
    %c0_i32 = arith.constant 0 : i32
    %c0_i32_0 = arith.constant 0 : i32
    return %arg0, %c0_i32, %arg1 : i32, i32, i32
  }
}

</mosaic_0001>

<bundles_post_ra>
// kernel: _lambda_.6
= control target key start
LH: loop header
LB: loop body
LE: loop exit
PB: predicated region body
PF: predicated region fallthrough
CT: control target
= control target key end

     0   :  { %s1152_s12 = smov 0   ;;  %s1154_s13 = smov 0   ;;  %s1341_s0 = inlined_call_operand.vmem [shape: bf16[512,64], index: 0, kind: input, shape index: {}]   ;;  %s1342_s1 = inlined_call_operand.vmem [shape: bf16[64,32], index: 1, kind: input, shape index: {}]   ;;  %s1343_s2 = inlined_call_operand.vmem [shape: f32[1,32], index: 2, kind: input, shape index: {}]   ;;  %s1344_s3 = inlined_call_operand.vmem [shape: bf16[512,32], index: 3, kind: output, shape index: {}]  }
   0x1   :  { %s1156_s14 = smov 0  }
   0x2 LB: > { %s25_s15 = sadd.s32 1, %s1126_s13  ;;  %p888_p0 = scmp.ge.s32.totalorder %s1130_s14, 1  ;;  %s1130_s14 = sphi %s1156_s14, %s13_s14   ;;  %s1126_s13 = sphi %s1154_s13, %s1346_s13   ;;  %s1122_s12 = sphi %s1152_s12, %s1345_s12  }
   0x3   : > { %p27_p1 = scmp.ge.s32.totalorder %s25_s15, 2  ;;  %p169_p2 = scmp.lt.s32.totalorder %s1130_s14, 3 }
   0x5   : > { %s1348_s15 = smov (%p27_p1, %s25_s15), 0  ;;  %p170_p3 = pnand %p888_p0, %p169_p2 }
   0x6   : > { %v1088_v0 = vld [vmem:[%s1342_s1] sm:$0xff] (!%p170_p3)   ;;  %s889_s18 = sshll.u32 (!%p170_p3), %s1122_s12, 5  ;;  %v1089_v1 = vld [vmem:[%s1342_s1 + $0x8] sm:$0xff] (!%p170_p3)   ;;  %v1090_v2 = vld [vmem:[%s1342_s1 + $0x10] sm:$0xff] (!%p170_p3)   ;;  %vm377_vm0 = vcmask (!%p170_p3), 523264   ;;  %vm747_vm1 = vcmask (!%p170_p3), 257024  }
   0x7   : > { %173 = sbr.rel (%p170_p3) target bundleno = 269 (0x10d), region = 32  ;;  %p204_p4 = scmp.lt.s32.totalorder (!%p170_p3), %s889_s18, 63  ;;  %1016 = vmatprep.subr.bf16.mxu0 (!%p170_p3), %v1088_v0  ;;  %1056 = vmatprep.subr.bf16.mxu1 (!%p170_p3), %v1088_v0  ;;  %v1091_v3 = vld [vmem:[%s1342_s1 + $0x18] sm:$0xff] (!%p170_p3)   ;;  %v1227_v20 = vld [vmem:[%s1343_s2] ss:$0 sm:$0xff] (!%p170_p3) }
   0x8   : > { %1017 = vmatpush3.bf16.msra.mxu0 (!%p170_p3), %v1088_v0  ;;  %1060 = vmatpush3.bf16.msra.mxu1 (!%p170_p3), %v1088_v0 }
   0x9   : > { %1018 = vmatprep.subr.bf16.mxu0 (!%p170_p3), %v1089_v1  ;;  %1057 = vmatprep.subr.bf16.mxu1 (!%p170_p3), %v1089_v1 }
   0xc   : > { %1019 = vmatpush3.bf16.msra.mxu0 (!%p170_p3), %v1089_v1  ;;  %1061 = vmatpush3.bf16.msra.mxu1 (!%p170_p3), %v1089_v1 }
   0xd   : > { %1020 = vmatprep.subr.bf16.mxu0 (!%p170_p3), %v1090_v2  ;;  %1058 = vmatprep.subr.bf16.mxu1 (!%p170_p3), %v1090_v2 }
   0xe   : > { %s1350_s18 = smov (!%p204_p4, %s889_s18), 63 }
   0xf   : > { %s890_s23 = sshll.u32 %s1350_s18, 2 }
  0x10   : > { %s1190_s28 = scalar_lea.vmem %s1341_s0, %s890_s23  ;;  %1021 = vmatpush3.bf16.msra.mxu0 %v1090_v2  ;;  %1062 = vmatpush3.bf16.msra.mxu1 %v1090_v2  ;;  %s1240_s6 = scalar_lea.vmem %s1344_s3, %s890_s23 }
  0x11   : > { %v1092_v4 = vld [vmem:[%s1190_s28] sm:$0xff]   ;;  %1022 = vmatprep.subr.bf16.mxu0 %v1091_v3  ;;  %1059 = vmatprep.subr.bf16.mxu1 %v1091_v3  ;;  %v1094_v6 = vld [vmem:[%s1190_s28 + $0x8] sm:$0xff]   ;;  %v1096_v8 = vld [vmem:[%s1190_s28 + $0x10] sm:$0xff]  }
  0x12   : > { %v1093_v5 = vld [vmem:[%s1190_s28 + $0x40] sm:$0xff]   ;;  %1024 = vmatprep.mubr.msk.bf16.mxu0 %vm377_vm0, %v1092_v4  ;;  %v1095_v7 = vld [vmem:[%s1190_s28 + $0x48] sm:$0xff]   ;;  %v1097_v9 = vld [vmem:[%s1190_s28 + $0x50] sm:$0xff]  }
  0x13   : > { %1040 = vmatprep.mubr.msk.bf16.mxu1 %vm377_vm0, %v1093_v5  ;;  %v1098_v10 = vld [vmem:[%s1190_s28 + $0x18] sm:$0xff]   ;;  %v1100_v12 = vld [vmem:[%s1190_s28 + $0x20] sm:$0xff]   ;;  %v1102_v14 = vld [vmem:[%s1190_s28 + $0x28] sm:$0xff]  }
  0x14   : > { %1023 = vmatpush3.bf16.msra.mxu0 %v1091_v3  ;;  %1063 = vmatpush3.bf16.msra.mxu1 %v1091_v3  ;;  %v1099_v11 = vld [vmem:[%s1190_s28 + $0x58] sm:$0xff]   ;;  %v1101_v13 = vld [vmem:[%s1190_s28 + $0x60] sm:$0xff]   ;;  %v1103_v15 = vld [vmem:[%s1190_s28 + $0x68] sm:$0xff]  }
  0x15   : > { %v1104_v16 = vld [vmem:[%s1190_s28 + $0x30] sm:$0xff]   ;;  %v1106_v18 = vld [vmem:[%s1190_s28 + $0x38] sm:$0xff]  }
  0x16   : > { %v1105_v17 = vld [vmem:[%s1190_s28 + $0x70] sm:$0xff]   ;;  %v1107_v19 = vld [vmem:[%s1190_s28 + $0x78] sm:$0xff]  }
  0x17   : > { %1025 = vmatmul.mubr.msk.bf16.vlgmr.msra.gmra.mrb[0].mxu0 %vm377_vm0, %v1094_v6  ;;  %1041 = vmatmul.mubr.msk.bf16.vlgmr.msra.gmra.mrb[0].mxu1 %vm377_vm0, %v1095_v7 }
  0x18   : > { %1028 = vmatprep.mubr.msk.bf16.mxu0 %vm377_vm0, %v1096_v8  ;;  %1044 = vmatprep.mubr.msk.bf16.mxu1 %vm377_vm0, %v1097_v9 }
  0x1f   : > { %1029 = vmatmul.mubr.msk.bf16.gmra.mrb[4].mxu0 %vm377_vm0, %v1098_v10  ;;  %1045 = vmatmul.mubr.msk.bf16.gmra.mrb[4].mxu1 %vm377_vm0, %v1099_v11 }
  0x20   : > { %1032 = vmatprep.mubr.msk.bf16.mxu0 %vm377_vm0, %v1100_v12  ;;  %1048 = vmatprep.mubr.msk.bf16.mxu1 %vm377_vm0, %v1101_v13 }
  0x27   : > { %1033 = vmatmul.mubr.msk.bf16.gmra.mrb[8].mxu0 %vm377_vm0, %v1102_v14  ;;  %1049 = vmatmul.mubr.msk.bf16.gmra.mrb[8].mxu1 %vm377_vm0, %v1103_v15 }
  0x28   : > { %1036 = vmatprep.mubr.msk.bf16.mxu0 %vm377_vm0, %v1104_v16  ;;  %1052 = vmatprep.mubr.msk.bf16.mxu1 %vm377_vm0, %v1105_v17 }
  0x2f   : > { %1037 = vmatmul.mubr.msk.bf16.gmra.mrb[12].mxu0 %vm377_vm0, %v1106_v18  ;;  %1053 = vmatmul.mubr.msk.bf16.gmra.mrb[12].mxu1 %vm377_vm0, %v1107_v19 }
  0xea   : > { %v1026_v21 = vpop.f32.mrb[0].mxu0  ;;  %v1042_v22 = vpop.f32.mrb[0].mxu1 }
  0xeb   : > { %v469_v23 = vadd.f32 %v1026_v21, %v1227_v20  ;;  %v533_v24 = vadd.f32 %v1042_v22, %v1227_v20  ;;  %v460_v25 = vpop.f32.mrb[1].mxu0  ;;  %v524_v26 = vpop.f32.mrb[1].mxu1 }
  0xec   : > { %v461_v27 = vadd.f32 %v1227_v20, %v460_v25  ;;  %v525_v28 = vadd.f32 %v1227_v20, %v524_v26  ;;  %v1027_v29 = vpop.f32.mrb[2].mxu0  ;;  %v1043_v30 = vpop.f32.mrb[2].mxu1 }
  0xed   : > { %v589_v31 = vmax.f32 %v469_v23, 0.0  ;;  %v605_v32 = vmax.f32 %v533_v24, 0.0  ;;  %v472_v33 = vadd.f32 %v1027_v29, %v1227_v20  ;;  %v536_v34 = vadd.f32 %v1043_v30, %v1227_v20  ;;  %v463_v35 = vpop.f32.mrb[3].mxu0  ;;  %v527_v36 = vpop.f32.mrb[3].mxu1 }
  0xee   : > { %v587_v37 = vmax.f32 %v461_v27, 0.0  ;;  %v603_v38 = vmax.f32 %v525_v28, 0.0  ;;  %v464_v39 = vadd.f32 %v1227_v20, %v463_v35  ;;  %v528_v40 = vadd.f32 %v1227_v20, %v527_v36 }
  0xef   : > { %v966_v41 = vpack.c.bf16 %v589_v31, %v589_v31  ;;  %v982_v42 = vpack.c.bf16 %v605_v32, %v605_v32  ;;  %v590_v43 = vmax.f32 %v472_v33, 0.0  ;;  %v606_v44 = vmax.f32 %v536_v34, 0.0 }
  0xf0   : > { %v964_v45 = vpack.c.bf16 %v587_v37, %v587_v37  ;;  %v980_v46 = vpack.c.bf16 %v603_v38, %v603_v38  ;;  %v588_v47 = vmax.f32 %v464_v39, 0.0  ;;  %v604_v48 = vmax.f32 %v528_v40, 0.0 }
  0xf1   : > { %750 = vst.msk [vmem:[%s1240_s6 + $0x8] sm:$0xf] %vm747_vm1, %v966_v41  ;;  %766 = vst.msk [vmem:[%s1240_s6 + $0x48] sm:$0xf] %vm747_vm1, %v982_v42  ;;  %v967_v49 = vpack.c.bf16 %v590_v43, %v590_v43  ;;  %v983_v50 = vpack.c.bf16 %v606_v44, %v606_v44 }
  0xf2   : > { %748 = vst.msk [vmem:[%s1240_s6] sm:$0xf] %vm747_vm1, %v964_v45  ;;  %764 = vst.msk [vmem:[%s1240_s6 + $0x40] sm:$0xf] %vm747_vm1, %v980_v46  ;;  %v965_v51 = vpack.c.bf16 %v588_v47, %v588_v47  ;;  %v981_v52 = vpack.c.bf16 %v604_v48, %v604_v48  ;;  %v1030_v53 = vpop.f32.mrb[4].mxu0  ;;  %v1046_v54 = vpop.f32.mrb[4].mxu1 }
  0xf3   : > { %751 = vst.msk [vmem:[%s1240_s6 + $0xc] sm:$0xf] %vm747_vm1, %v967_v49  ;;  %767 = vst.msk [vmem:[%s1240_s6 + $0x4c] sm:$0xf] %vm747_vm1, %v983_v50  ;;  %v485_v55 = vadd.f32 %v1030_v53, %v1227_v20  ;;  %v549_v56 = vadd.f32 %v1046_v54, %v1227_v20  ;;  %v476_v57 = vpop.f32.mrb[5].mxu0  ;;  %v540_v58 = vpop.f32.mrb[5].mxu1 }
  0xf4   : > { %749 = vst.msk [vmem:[%s1240_s6 + $0x4] sm:$0xf] %vm747_vm1, %v965_v51  ;;  %765 = vst.msk [vmem:[%s1240_s6 + $0x44] sm:$0xf] %vm747_vm1, %v981_v52  ;;  %v477_v59 = vadd.f32 %v1227_v20, %v476_v57  ;;  %v541_v60 = vadd.f32 %v1227_v20, %v540_v58  ;;  %v1031_v61 = vpop.f32.mrb[6].mxu0  ;;  %v1047_v62 = vpop.f32.mrb[6].mxu1 }
  0xf5   : > { %v593_v63 = vmax.f32 %v485_v55, 0.0  ;;  %v609_v0 = vmax.f32 %v549_v56, 0.0  ;;  %v488_v1 = vadd.f32 %v1031_v61, %v1227_v20  ;;  %v552_v2 = vadd.f32 %v1047_v62, %v1227_v20  ;;  %v479_v3 = vpop.f32.mrb[7].mxu0  ;;  %v543_v4 = vpop.f32.mrb[7].mxu1 }
  0xf6   : > { %v591_v5 = vmax.f32 %v477_v59, 0.0  ;;  %v607_v6 = vmax.f32 %v541_v60, 0.0  ;;  %v480_v7 = vadd.f32 %v1227_v20, %v479_v3  ;;  %v544_v8 = vadd.f32 %v1227_v20, %v543_v4 }
  0xf7   : > { %v970_v9 = vpack.c.bf16 %v593_v63, %v593_v63  ;;  %v986_v10 = vpack.c.bf16 %v609_v0, %v609_v0  ;;  %v594_v11 = vmax.f32 %v488_v1, 0.0  ;;  %v610_v12 = vmax.f32 %v552_v2, 0.0 }
  0xf8   : > { %v968_v13 = vpack.c.bf16 %v591_v5, %v591_v5  ;;  %v984_v14 = vpack.c.bf16 %v607_v6, %v607_v6  ;;  %v592_v15 = vmax.f32 %v480_v7, 0.0  ;;  %v608_v16 = vmax.f32 %v544_v8, 0.0 }
  0xf9   : > { %754 = vst.msk [vmem:[%s1240_s6 + $0x18] sm:$0xf] %vm747_vm1, %v970_v9  ;;  %770 = vst.msk [vmem:[%s1240_s6 + $0x58] sm:$0xf] %vm747_vm1, %v986_v10  ;;  %v971_v17 = vpack.c.bf16 %v594_v11, %v594_v11  ;;  %v987_v18 = vpack.c.bf16 %v610_v12, %v610_v12 }
  0xfa   : > { %752 = vst.msk [vmem:[%s1240_s6 + $0x10] sm:$0xf] %vm747_vm1, %v968_v13  ;;  %768 = vst.msk [vmem:[%s1240_s6 + $0x50] sm:$0xf] %vm747_vm1, %v984_v14  ;;  %v969_v19 = vpack.c.bf16 %v592_v15, %v592_v15  ;;  %v985_v21 = vpack.c.bf16 %v608_v16, %v608_v16  ;;  %v1034_v22 = vpop.f32.mrb[8].mxu0  ;;  %v1050_v23 = vpop.f32.mrb[8].mxu1 }
  0xfb   : > { %755 = vst.msk [vmem:[%s1240_s6 + $0x1c] sm:$0xf] %vm747_vm1, %v971_v17  ;;  %771 = vst.msk [vmem:[%s1240_s6 + $0x5c] sm:$0xf] %vm747_vm1, %v987_v18  ;;  %v501_v24 = vadd.f32 %v1034_v22, %v1227_v20  ;;  %v565_v25 = vadd.f32 %v1050_v23, %v1227_v20  ;;  %v492_v26 = vpop.f32.mrb[9].mxu0  ;;  %v556_v27 = vpop.f32.mrb[9].mxu1 }
  0xfc   : > { %753 = vst.msk [vmem:[%s1240_s6 + $0x14] sm:$0xf] %vm747_vm1, %v969_v19  ;;  %769 = vst.msk [vmem:[%s1240_s6 + $0x54] sm:$0xf] %vm747_vm1, %v985_v21  ;;  %v493_v28 = vadd.f32 %v1227_v20, %v492_v26  ;;  %v557_v29 = vadd.f32 %v1227_v20, %v556_v27  ;;  %v1035_v30 = vpop.f32.mrb[10].mxu0  ;;  %v1051_v31 = vpop.f32.mrb[10].mxu1 }
  0xfd   : > { %v597_v32 = vmax.f32 %v501_v24, 0.0  ;;  %v613_v33 = vmax.f32 %v565_v25, 0.0  ;;  %v504_v34 = vadd.f32 %v1035_v30, %v1227_v20  ;;  %v568_v35 = vadd.f32 %v1051_v31, %v1227_v20  ;;  %v495_v36 = vpop.f32.mrb[11].mxu0  ;;  %v559_v37 = vpop.f32.mrb[11].mxu1 }
  0xfe   : > { %v595_v38 = vmax.f32 %v493_v28, 0.0  ;;  %v611_v39 = vmax.f32 %v557_v29, 0.0  ;;  %v496_v40 = vadd.f32 %v1227_v20, %v495_v36  ;;  %v560_v41 = vadd.f32 %v1227_v20, %v559_v37 }
  0xff   : > { %v974_v42 = vpack.c.bf16 %v597_v32, %v597_v32  ;;  %v990_v43 = vpack.c.bf16 %v613_v33, %v613_v33  ;;  %v598_v44 = vmax.f32 %v504_v34, 0.0  ;;  %v614_v45 = vmax.f32 %v568_v35, 0.0 }
 0x100   : > { %v972_v46 = vpack.c.bf16 %v595_v38, %v595_v38  ;;  %v988_v47 = vpack.c.bf16 %v611_v39, %v611_v39  ;;  %v596_v48 = vmax.f32 %v496_v40, 0.0  ;;  %v612_v49 = vmax.f32 %v560_v41, 0.0 }
 0x101   : > { %758 = vst.msk [vmem:[%s1240_s6 + $0x28] sm:$0xf] %vm747_vm1, %v974_v42  ;;  %774 = vst.msk [vmem:[%s1240_s6 + $0x68] sm:$0xf] %vm747_vm1, %v990_v43  ;;  %v975_v50 = vpack.c.bf16 %v598_v44, %v598_v44  ;;  %v991_v51 = vpack.c.bf16 %v614_v45, %v614_v45 }
 0x102   : > { %756 = vst.msk [vmem:[%s1240_s6 + $0x20] sm:$0xf] %vm747_vm1, %v972_v46  ;;  %772 = vst.msk [vmem:[%s1240_s6 + $0x60] sm:$0xf] %vm747_vm1, %v988_v47  ;;  %v973_v52 = vpack.c.bf16 %v596_v48, %v596_v48  ;;  %v989_v53 = vpack.c.bf16 %v612_v49, %v612_v49  ;;  %v1038_v54 = vpop.f32.mrb[12].mxu0  ;;  %v1054_v55 = vpop.f32.mrb[12].mxu1 }
 0x103   : > { %759 = vst.msk [vmem:[%s1240_s6 + $0x2c] sm:$0xf] %vm747_vm1, %v975_v50  ;;  %775 = vst.msk [vmem:[%s1240_s6 + $0x6c] sm:$0xf] %vm747_vm1, %v991_v51  ;;  %v517_v56 = vadd.f32 %v1038_v54, %v1227_v20  ;;  %v581_v57 = vadd.f32 %v1054_v55, %v1227_v20  ;;  %v508_v58 = vpop.f32.mrb[13].mxu0  ;;  %v572_v59 = vpop.f32.mrb[13].mxu1 }
 0x104   : > { %757 = vst.msk [vmem:[%s1240_s6 + $0x24] sm:$0xf] %vm747_vm1, %v973_v52  ;;  %773 = vst.msk [vmem:[%s1240_s6 + $0x64] sm:$0xf] %vm747_vm1, %v989_v53  ;;  %v509_v60 = vadd.f32 %v1227_v20, %v508_v58  ;;  %v573_v61 = vadd.f32 %v1227_v20, %v572_v59  ;;  %v1039_v62 = vpop.f32.mrb[14].mxu0  ;;  %v1055_v63 = vpop.f32.mrb[14].mxu1 }
 0x105   : > { %v601_v0 = vmax.f32 %v517_v56, 0.0  ;;  %v617_v1 = vmax.f32 %v581_v57, 0.0  ;;  %v520_v2 = vadd.f32 %v1039_v62, %v1227_v20  ;;  %v584_v3 = vadd.f32 %v1055_v63, %v1227_v20  ;;  %v511_v4 = vpop.f32.mrb[15].mxu0  ;;  %v575_v5 = vpop.f32.mrb[15].mxu1 }
 0x106   : > { %v599_v6 = vmax.f32 %v509_v60, 0.0  ;;  %v615_v7 = vmax.f32 %v573_v61, 0.0  ;;  %v512_v8 = vadd.f32 %v1227_v20, %v511_v4  ;;  %v576_v9 = vadd.f32 %v1227_v20, %v575_v5 }
 0x107   : > { %v978_v10 = vpack.c.bf16 %v601_v0, %v601_v0  ;;  %v994_v11 = vpack.c.bf16 %v617_v1, %v617_v1  ;;  %v602_v12 = vmax.f32 %v520_v2, 0.0  ;;  %v618_v13 = vmax.f32 %v584_v3, 0.0 }
 0x108   : > { %v976_v14 = vpack.c.bf16 %v599_v6, %v599_v6  ;;  %v992_v15 = vpack.c.bf16 %v615_v7, %v615_v7  ;;  %v600_v16 = vmax.f32 %v512_v8, 0.0  ;;  %v616_v17 = vmax.f32 %v576_v9, 0.0 }
 0x109   : > { %762 = vst.msk [vmem:[%s1240_s6 + $0x38] sm:$0xf] %vm747_vm1, %v978_v10  ;;  %778 = vst.msk [vmem:[%s1240_s6 + $0x78] sm:$0xf] %vm747_vm1, %v994_v11  ;;  %v979_v18 = vpack.c.bf16 %v602_v12, %v602_v12  ;;  %v995_v19 = vpack.c.bf16 %v618_v13, %v618_v13 }
 0x10a   : > { %760 = vst.msk [vmem:[%s1240_s6 + $0x30] sm:$0xf] %vm747_vm1, %v976_v14  ;;  %776 = vst.msk [vmem:[%s1240_s6 + $0x70] sm:$0xf] %vm747_vm1, %v992_v15  ;;  %v977_v20 = vpack.c.bf16 %v600_v16, %v600_v16  ;;  %v993_v21 = vpack.c.bf16 %v616_v17, %v616_v17 }
 0x10b   : > { %763 = vst.msk [vmem:[%s1240_s6 + $0x3c] sm:$0xf] %vm747_vm1, %v979_v18  ;;  %779 = vst.msk [vmem:[%s1240_s6 + $0x7c] sm:$0xf] %vm747_vm1, %v995_v19 }
 0x10c   : > { %761 = vst.msk [vmem:[%s1240_s6 + $0x34] sm:$0xf] %vm747_vm1, %v977_v20  ;;  %777 = vst.msk [vmem:[%s1240_s6 + $0x74] sm:$0xf] %vm747_vm1, %v993_v21 }
 0x10d PF: > { %s13_s14 = sadd.s32 1, %s1130_s14   ;;  %s1345_s12 = smov %s1126_s13 }
 0x10e   : > { %p10_p5 = scmp.ge.s32.totalorder %s13_s14, 4   ;;  %s1346_s13 = smov %s1348_s15 }
 0x110   :  { %12 = sbr.rel (!%p10_p5) target bundleno = 2 (0x2), region = 68 }

// kernel: _lambda_.9
= control target key start
LH: loop header
LB: loop body
LE: loop exit
PB: predicated region body
PF: predicated region fallthrough
CT: control target
= control target key end

     0   :  { %vm327_vm0 = vcmask 257024   ;;  %s612_s1 = inlined_call_operand.vmem [shape: bf16[128,32], index: 1, kind: input, shape index: {}]   ;;  %s613_s0 = inlined_call_operand.vmem [shape: bf16[128,128], index: 0, kind: input, shape index: {}]   ;;  %s614_s2 = inlined_call_operand.vmem [shape: f32[1,32], index: 2, kind: input, shape index: {}]   ;;  %s615_s3 = inlined_call_operand.vmem [shape: bf16[128,32], index: 3, kind: output, shape index: {}]  }
   0x1   :  { %v461_v0 = vld [vmem:[%s612_s1] sm:$0xff]   ;;  %v462_v1 = vld [vmem:[%s612_s1 + $0x8] sm:$0xff]   ;;  %v463_v2 = vld [vmem:[%s612_s1 + $0x10] sm:$0xff]  }
   0x2   :  { %413 = vmatprep.subr.bf16.mxu0 %v461_v0  ;;  %445 = vmatprep.subr.bf16.mxu1 %v461_v0  ;;  %v464_v3 = vld [vmem:[%s612_s1 + $0x18] sm:$0xff]   ;;  %v469_v4 = vld [vmem:[%s613_s0] sm:$0xff]   ;;  %v466_v7 = vld [vmem:[%s612_s1 + $0x28] sm:$0xff]  }
   0x3   :  { %414 = vmatpush3.bf16.msra.mxu0 %v461_v0  ;;  %453 = vmatpush3.bf16.msra.mxu1 %v461_v0  ;;  %v470_v5 = vld [vmem:[%s613_s0 + $0x20] sm:$0xff]   ;;  %v467_v8 = vld [vmem:[%s612_s1 + $0x30] sm:$0xff]   ;;  %v468_v9 = vld [vmem:[%s612_s1 + $0x38] sm:$0xff]  }
   0x4   :  { %415 = vmatprep.subr.bf16.mxu0 %v462_v1  ;;  %446 = vmatprep.subr.bf16.mxu1 %v462_v1  ;;  %v465_v6 = vld [vmem:[%s612_s1 + $0x20] sm:$0xff]   ;;  %v471_v10 = vld [vmem:[%s613_s0 + $0x8] sm:$0xff]   ;;  %v473_v12 = vld [vmem:[%s613_s0 + $0x10] sm:$0xff]  }
   0x5   :  { %429 = vmatprep.mubr.bf16.mxu0 %v469_v4  ;;  %437 = vmatprep.mubr.bf16.mxu1 %v470_v5  ;;  %v472_v11 = vld [vmem:[%s613_s0 + $0x28] sm:$0xff]   ;;  %v474_v13 = vld [vmem:[%s613_s0 + $0x30] sm:$0xff]   ;;  %v475_v14 = vld [vmem:[%s613_s0 + $0x18] sm:$0xff]  }
   0x6   :  { %v476_v15 = vld [vmem:[%s613_s0 + $0x38] sm:$0xff]   ;;  %v348_v16 = vld [vmem:[%s614_s2] ss:$0 sm:$0xff] }
   0x7   :  { %416 = vmatpush3.bf16.msra.mxu0 %v462_v1  ;;  %454 = vmatpush3.bf16.msra.mxu1 %v462_v1 }
   0x8   :  { %417 = vmatprep.subr.bf16.mxu0 %v463_v2  ;;  %447 = vmatprep.subr.bf16.mxu1 %v463_v2 }
   0xb   :  { %418 = vmatpush3.bf16.msra.mxu0 %v463_v2  ;;  %455 = vmatpush3.bf16.msra.mxu1 %v463_v2 }
   0xc   :  { %419 = vmatprep.subr.bf16.mxu0 %v464_v3  ;;  %448 = vmatprep.subr.bf16.mxu1 %v464_v3 }
   0xf   :  { %420 = vmatpush3.bf16.msra.mxu0 %v464_v3  ;;  %456 = vmatpush3.bf16.msra.mxu1 %v464_v3 }
  0x10   :  { %421 = vmatprep.subr.bf16.mxu0 %v465_v6  ;;  %449 = vmatprep.subr.bf16.mxu1 %v465_v6 }
  0x13   :  { %422 = vmatpush3.bf16.msra.mxu0 %v465_v6  ;;  %457 = vmatpush3.bf16.msra.mxu1 %v465_v6 }
  0x14   :  { %423 = vmatprep.subr.bf16.mxu0 %v466_v7  ;;  %450 = vmatprep.subr.bf16.mxu1 %v466_v7 }
  0x17   :  { %424 = vmatpush3.bf16.msra.mxu0 %v466_v7  ;;  %458 = vmatpush3.bf16.msra.mxu1 %v466_v7 }
  0x18   :  { %425 = vmatprep.subr.bf16.mxu0 %v467_v8  ;;  %451 = vmatprep.subr.bf16.mxu1 %v467_v8 }
  0x1b   :  { %426 = vmatpush3.bf16.msra.mxu0 %v467_v8  ;;  %459 = vmatpush3.bf16.msra.mxu1 %v467_v8 }
  0x1c   :  { %427 = vmatprep.subr.bf16.mxu0 %v468_v9  ;;  %452 = vmatprep.subr.bf16.mxu1 %v468_v9 }
  0x1f   :  { %428 = vmatpush3.bf16.msra.mxu0 %v468_v9  ;;  %460 = vmatpush3.bf16.msra.mxu1 %v468_v9 }
  0x22   :  { %430 = vmatmul.mubr.bf16.vlgmr.msra.gmra.mrb[0].mxu0 %v471_v10  ;;  %438 = vmatmul.mubr.bf16.vlgmr.msra.gmra.mrb[0].mxu1 %v472_v11 }
  0x23   :  { %433 = vmatprep.mubr.bf16.mxu0 %v473_v12  ;;  %441 = vmatprep.mubr.bf16.mxu1 %v474_v13 }
  0x2a   :  { %434 = vmatmul.mubr.bf16.gmra.mrb[4].mxu0 %v475_v14  ;;  %442 = vmatmul.mubr.bf16.gmra.mrb[4].mxu1 %v476_v15 }
  0xf5   :  { %v431_v17 = vpop.f32.mrb[0].mxu0  ;;  %v439_v18 = vpop.f32.mrb[0].mxu1 }
  0xf6   :  { %v193_v19 = vadd.f32 %v431_v17, %v348_v16  ;;  %v225_v20 = vadd.f32 %v439_v18, %v348_v16  ;;  %v184_v21 = vpop.f32.mrb[1].mxu0  ;;  %v216_v22 = vpop.f32.mrb[1].mxu1 }
  0xf7   :  { %v185_v23 = vadd.f32 %v348_v16, %v184_v21  ;;  %v217_v24 = vadd.f32 %v348_v16, %v216_v22  ;;  %v432_v25 = vpop.f32.mrb[2].mxu0  ;;  %v440_v26 = vpop.f32.mrb[2].mxu1 }
  0xf8   :  { %v249_v27 = vmax.f32 %v193_v19, 0.0  ;;  %v257_v28 = vmax.f32 %v225_v20, 0.0  ;;  %v196_v29 = vadd.f32 %v432_v25, %v348_v16  ;;  %v228_v30 = vadd.f32 %v440_v26, %v348_v16  ;;  %v187_v31 = vpop.f32.mrb[3].mxu0  ;;  %v219_v32 = vpop.f32.mrb[3].mxu1 }
  0xf9   :  { %v247_v33 = vmax.f32 %v185_v23, 0.0  ;;  %v255_v34 = vmax.f32 %v217_v24, 0.0  ;;  %v188_v35 = vadd.f32 %v348_v16, %v187_v31  ;;  %v220_v36 = vadd.f32 %v348_v16, %v219_v32 }
  0xfa   :  { %v383_v37 = vpack.c.bf16 %v249_v27, %v249_v27  ;;  %v391_v38 = vpack.c.bf16 %v257_v28, %v257_v28  ;;  %v250_v39 = vmax.f32 %v196_v29, 0.0  ;;  %v258_v40 = vmax.f32 %v228_v30, 0.0 }
  0xfb   :  { %v381_v41 = vpack.c.bf16 %v247_v33, %v247_v33  ;;  %v389_v42 = vpack.c.bf16 %v255_v34, %v255_v34  ;;  %v248_v43 = vmax.f32 %v188_v35, 0.0  ;;  %v256_v44 = vmax.f32 %v220_v36, 0.0 }
  0xfc   :  { %330 = vst.msk [vmem:[%s615_s3 + $0x8] sm:$0xf] %vm327_vm0, %v383_v37  ;;  %338 = vst.msk [vmem:[%s615_s3 + $0x28] sm:$0xf] %vm327_vm0, %v391_v38  ;;  %v384_v45 = vpack.c.bf16 %v250_v39, %v250_v39  ;;  %v392_v46 = vpack.c.bf16 %v258_v40, %v258_v40 }
  0xfd   :  { %328 = vst.msk [vmem:[%s615_s3] sm:$0xf] %vm327_vm0, %v381_v41  ;;  %336 = vst.msk [vmem:[%s615_s3 + $0x20] sm:$0xf] %vm327_vm0, %v389_v42  ;;  %v382_v47 = vpack.c.bf16 %v248_v43, %v248_v43  ;;  %v390_v48 = vpack.c.bf16 %v256_v44, %v256_v44  ;;  %v435_v49 = vpop.f32.mrb[4].mxu0  ;;  %v443_v50 = vpop.f32.mrb[4].mxu1 }
  0xfe   :  { %331 = vst.msk [vmem:[%s615_s3 + $0xc] sm:$0xf] %vm327_vm0, %v384_v45  ;;  %339 = vst.msk [vmem:[%s615_s3 + $0x2c] sm:$0xf] %vm327_vm0, %v392_v46  ;;  %v209_v51 = vadd.f32 %v435_v49, %v348_v16  ;;  %v241_v52 = vadd.f32 %v443_v50, %v348_v16  ;;  %v200_v53 = vpop.f32.mrb[5].mxu0  ;;  %v232_v54 = vpop.f32.mrb[5].mxu1 }
  0xff   :  { %329 = vst.msk [vmem:[%s615_s3 + $0x4] sm:$0xf] %vm327_vm0, %v382_v47  ;;  %337 = vst.msk [vmem:[%s615_s3 + $0x24] sm:$0xf] %vm327_vm0, %v390_v48  ;;  %v201_v55 = vadd.f32 %v348_v16, %v200_v53  ;;  %v233_v56 = vadd.f32 %v348_v16, %v232_v54  ;;  %v436_v57 = vpop.f32.mrb[6].mxu0  ;;  %v444_v58 = vpop.f32.mrb[6].mxu1 }
 0x100   :  { %v253_v59 = vmax.f32 %v209_v51, 0.0  ;;  %v261_v60 = vmax.f32 %v241_v52, 0.0  ;;  %v212_v61 = vadd.f32 %v436_v57, %v348_v16  ;;  %v244_v62 = vadd.f32 %v444_v58, %v348_v16  ;;  %v203_v63 = vpop.f32.mrb[7].mxu0  ;;  %v235_v0 = vpop.f32.mrb[7].mxu1 }
 0x101   :  { %v251_v1 = vmax.f32 %v201_v55, 0.0  ;;  %v259_v2 = vmax.f32 %v233_v56, 0.0  ;;  %v204_v3 = vadd.f32 %v348_v16, %v203_v63  ;;  %v236_v4 = vadd.f32 %v348_v16, %v235_v0 }
 0x102   :  { %v387_v5 = vpack.c.bf16 %v253_v59, %v253_v59  ;;  %v395_v6 = vpack.c.bf16 %v261_v60, %v261_v60  ;;  %v254_v7 = vmax.f32 %v212_v61, 0.0  ;;  %v262_v8 = vmax.f32 %v244_v62, 0.0 }
 0x103   :  { %v385_v9 = vpack.c.bf16 %v251_v1, %v251_v1  ;;  %v393_v10 = vpack.c.bf16 %v259_v2, %v259_v2  ;;  %v252_v11 = vmax.f32 %v204_v3, 0.0  ;;  %v260_v12 = vmax.f32 %v236_v4, 0.0 }
 0x104   :  { %334 = vst.msk [vmem:[%s615_s3 + $0x18] sm:$0xf] %vm327_vm0, %v387_v5  ;;  %342 = vst.msk [vmem:[%s615_s3 + $0x38] sm:$0xf] %vm327_vm0, %v395_v6  ;;  %v388_v13 = vpack.c.bf16 %v254_v7, %v254_v7  ;;  %v396_v14 = vpack.c.bf16 %v262_v8, %v262_v8 }
 0x105   :  { %332 = vst.msk [vmem:[%s615_s3 + $0x10] sm:$0xf] %vm327_vm0, %v385_v9  ;;  %340 = vst.msk [vmem:[%s615_s3 + $0x30] sm:$0xf] %vm327_vm0, %v393_v10  ;;  %v386_v15 = vpack.c.bf16 %v252_v11, %v252_v11  ;;  %v394_v16 = vpack.c.bf16 %v260_v12, %v260_v12 }
 0x106   :  { %335 = vst.msk [vmem:[%s615_s3 + $0x1c] sm:$0xf] %vm327_vm0, %v388_v13  ;;  %343 = vst.msk [vmem:[%s615_s3 + $0x3c] sm:$0xf] %vm327_vm0, %v396_v14 }
 0x107   :  { %333 = vst.msk [vmem:[%s615_s3 + $0x14] sm:$0xf] %vm327_vm0, %v386_v15  ;;  %341 = vst.msk [vmem:[%s615_s3 + $0x34] sm:$0xf] %vm327_vm0, %v394_v16 }

// kernel: _lambda_.8
= control target key start
LH: loop header
LB: loop body
LE: loop exit
PB: predicated region body
PF: predicated region fallthrough
CT: control target
= control target key end

     0   :  { %vm103_vm0 = vcmask 261120   ;;  %vm313_vm1 = vcmask 523264   ;;  %s996_s4 = inlined_call_operand.vmem [shape: bf16[64,128], index: 4, kind: input, shape index: {}]   ;;  %s997_s1 = inlined_call_operand.vmem [shape: bf16[32,128], index: 1, kind: input, shape index: {}]   ;;  %s998_s0 = inlined_call_operand.vmem [shape: bf16[128,32], index: 0, kind: input, shape index: {}]   ;;  %s999_s3 = inlined_call_operand.vmem [shape: bf16[128,64], index: 3, kind: input, shape index: {}]   ;;  %s1000_s2 = inlined_call_operand.vmem [shape: f32[1,128], index: 2, kind: input, shape index: {}, may-alias: {2,5}]   ;;  %s1001_s5 = inlined_call_operand.vmem [shape: f32[1,128], index: 5, kind: input, shape index: {}, may-alias: {2,5}]   ;;  %s1002_s6 = inlined_call_operand.vmem [shape: bf16[128,128], index: 6, kind: output, shape index: {}]  }
   0x1   :  { %v791_v0 = vld [vmem:[%s996_s4] sm:$0xff]   ;;  %v793_v2 = vld [vmem:[%s996_s4 + $0x8] sm:$0xff]   ;;  %v795_v4 = vld [vmem:[%s996_s4 + $0x10] sm:$0xff]  }
   0x2   :  { %v792_v1 = vld [vmem:[%s997_s1] sm:$0xff]   ;;  %735 = vmatprep.subr.bf16.mxu0 %v791_v0  ;;  %v794_v3 = vld [vmem:[%s997_s1 + $0x8] sm:$0xff]   ;;  %v798_v7 = vld [vmem:[%s996_s4 + $0x18] sm:$0xff]  }
   0x3   :  { %736 = vmatpush3.bf16.msra.mxu0 %v791_v0  ;;  %715 = vmatprep.subr.bf16.mxu1 %v792_v1  ;;  %v796_v5 = vld [vmem:[%s998_s0] sm:$0xff]   ;;  %v797_v6 = vld [vmem:[%s998_s0 + $0x8] sm:$0xff]   ;;  %v801_v9 = vld [vmem:[%s998_s0 + $0x10] sm:$0xff]  }
   0x4   :  { %716 = vmatpush3.bf16.msra.mxu1 %v792_v1  ;;  %737 = vmatprep.subr.bf16.mxu0 %v793_v2  ;;  %v799_v8 = vld [vmem:[%s999_s3] sm:$0xff]   ;;  %v800_v10 = vld [vmem:[%s999_s3 + $0x8] sm:$0xff]   ;;  %v802_v11 = vld [vmem:[%s998_s0 + $0x18] sm:$0xff]  }
   0x5   :  { %717 = vmatprep.subr.bf16.mxu1 %v794_v3  ;;  %719 = vmatprep.mubr.msk.bf16.mxu1 %vm103_vm0, %v796_v5  ;;  %v803_v12 = vld [vmem:[%s999_s3 + $0x10] sm:$0xff]   ;;  %v805_v13 = vld [vmem:[%s998_s0 + $0x20] sm:$0xff]   ;;  %v804_v14 = vld [vmem:[%s999_s3 + $0x18] sm:$0xff]  }
   0x6   :  { %743 = vmatprep.mubr.msk.bf16.mxu0 %vm313_vm1, %v799_v8  ;;  %v806_v15 = vld [vmem:[%s998_s0 + $0x28] sm:$0xff]   ;;  %v807_v16 = vld [vmem:[%s999_s3 + $0x20] sm:$0xff]   ;;  %v809_v17 = vld [vmem:[%s998_s0 + $0x30] sm:$0xff]  }
   0x7   :  { %738 = vmatpush3.bf16.msra.mxu0 %v793_v2  ;;  %v808_v18 = vld [vmem:[%s999_s3 + $0x28] sm:$0xff]   ;;  %v810_v19 = vld [vmem:[%s998_s0 + $0x38] sm:$0xff]   ;;  %v811_v20 = vld [vmem:[%s999_s3 + $0x30] sm:$0xff]  }
   0x8   :  { %718 = vmatpush3.bf16.msra.mxu1 %v794_v3  ;;  %739 = vmatprep.subr.bf16.mxu0 %v795_v4  ;;  %v812_v21 = vld [vmem:[%s999_s3 + $0x38] sm:$0xff]   ;;  %v933_v23 = vld [vmem:[%s1000_s2] ss:$0 sm:$0xff] }
   0x9   :  { %v940_v30 = vld [vmem:[%s1001_s5] ss:$0 sm:$0xff] }
   0xb   :  { %740 = vmatpush3.bf16.msra.mxu0 %v795_v4  ;;  %720 = vmatmul.mubr.msk.bf16.vlgmr.msra.gmra.mrb[0].mxu1 %vm103_vm0, %v797_v6 }
   0xc   :  { %741 = vmatprep.subr.bf16.mxu0 %v798_v7  ;;  %723 = vmatprep.mubr.msk.bf16.mxu1 %vm103_vm0, %v801_v9 }
   0xf   :  { %742 = vmatpush3.bf16.msra.mxu0 %v798_v7 }
  0x12   :  { %744 = vmatmul.mubr.msk.bf16.vlgmr.msra.gmra.mrb[0].mxu0 %vm313_vm1, %v800_v10 }
  0x13   :  { %724 = vmatmul.mubr.msk.bf16.gmra.mrb[4].mxu1 %vm103_vm0, %v802_v11  ;;  %747 = vmatprep.mubr.msk.bf16.mxu0 %vm313_vm1, %v803_v12 }
  0x14   :  { %727 = vmatprep.mubr.msk.bf16.mxu1 %vm103_vm0, %v805_v13 }
  0x1a   :  { %748 = vmatmul.mubr.msk.bf16.gmra.mrb[4].mxu0 %vm313_vm1, %v804_v14 }
  0x1b   :  { %728 = vmatmul.mubr.msk.bf16.gmra.mrb[8].mxu1 %vm103_vm0, %v806_v15  ;;  %751 = vmatprep.mubr.msk.bf16.mxu0 %vm313_vm1, %v807_v16 }
  0x1c   :  { %731 = vmatprep.mubr.msk.bf16.mxu1 %vm103_vm0, %v809_v17 }
  0x22   :  { %752 = vmatmul.mubr.msk.bf16.gmra.mrb[8].mxu0 %vm313_vm1, %v808_v18 }
  0x23   :  { %732 = vmatmul.mubr.msk.bf16.gmra.mrb[12].mxu1 %vm103_vm0, %v810_v19  ;;  %755 = vmatprep.mubr.msk.bf16.mxu0 %vm313_vm1, %v811_v20 }
  0x2a   :  { %756 = vmatmul.mubr.msk.bf16.gmra.mrb[12].mxu0 %vm313_vm1, %v812_v21 }
  0xde   :  { %v721_v22 = vpop.f32.mrb[0].mxu1 }
  0xdf   :  { %v162_v24 = vpop.f32.mrb[1].mxu1  ;;  %v171_v27 = vadd.f32 %v721_v22, %v933_v23 }
  0xe0   :  { %v722_v25 = vpop.f32.mrb[2].mxu1  ;;  %v163_v28 = vadd.f32 %v933_v23, %v162_v24 }
  0xe1   :  { %v165_v26 = vpop.f32.mrb[3].mxu1  ;;  %v174_v31 = vadd.f32 %v722_v25, %v933_v23 }
  0xe2   :  { %v166_v35 = vadd.f32 %v933_v23, %v165_v26 }
  0xe5   :  { %v745_v29 = vpop.f32.mrb[0].mxu0 }
  0xe6   :  { %v437_v32 = vadd.f32 %v745_v29, %v171_v27  ;;  %v372_v33 = vpop.f32.mrb[1].mxu0  ;;  %v725_v34 = vpop.f32.mrb[4].mxu1 }
  0xe7   :  { %v435_v36 = vadd.f32 %v372_v33, %v163_v28  ;;  %v746_v37 = vpop.f32.mrb[2].mxu0  ;;  %v178_v38 = vpop.f32.mrb[5].mxu1  ;;  %v187_v47 = vadd.f32 %v725_v34, %v933_v23 }
  0xe8   :  { %v460_v39 = vadd.f32 %v940_v30, %v437_v32  ;;  %v438_v40 = vadd.f32 %v746_v37, %v174_v31  ;;  %v375_v41 = vpop.f32.mrb[3].mxu0  ;;  %v726_v42 = vpop.f32.mrb[6].mxu1  ;;  %v179_v49 = vadd.f32 %v933_v23, %v178_v38 }
  0xe9   :  { %v458_v43 = vadd.f32 %v940_v30, %v435_v36  ;;  %v436_v44 = vadd.f32 %v375_v41, %v166_v35  ;;  %v181_v45 = vpop.f32.mrb[7].mxu1  ;;  %v190_v56 = vadd.f32 %v726_v42, %v933_v23 }
  0xea   :  { %v461_v46 = vadd.f32 %v940_v30, %v438_v40  ;;  %v476_v50 = vmax.f32 %v460_v39, 0.0  ;;  %v182_v61 = vadd.f32 %v933_v23, %v181_v45 }
  0xeb   :  { %v459_v48 = vadd.f32 %v940_v30, %v436_v44  ;;  %v474_v52 = vmax.f32 %v458_v43, 0.0 }
  0xec   :  { %v477_v51 = vmax.f32 %v461_v46, 0.0 }
  0xed   :  { %v475_v53 = vmax.f32 %v459_v48, 0.0  ;;  %v749_v54 = vpop.f32.mrb[4].mxu0 }
  0xee   :  { %v654_v55 = vpack.c.bf16 %v477_v51, %v476_v50  ;;  %v441_v57 = vadd.f32 %v749_v54, %v187_v47  ;;  %v388_v58 = vpop.f32.mrb[5].mxu0  ;;  %v729_v59 = vpop.f32.mrb[8].mxu1 }
  0xef   :  { %v649_v60 = vpack.c.bf16 %v475_v53, %v474_v52  ;;  %v439_v62 = vadd.f32 %v388_v58, %v179_v49  ;;  %v750_v63 = vpop.f32.mrb[6].mxu0  ;;  %v194_v0 = vpop.f32.mrb[9].mxu1  ;;  %v203_v9 = vadd.f32 %v729_v59, %v933_v23 }
  0xf0   :  { %686 = vst [vmem:[%s1002_s6 + $0x8] sm:$0xff] %v654_v55   ;;  %v464_v1 = vadd.f32 %v940_v30, %v441_v57  ;;  %v442_v2 = vadd.f32 %v750_v63, %v190_v56  ;;  %v391_v3 = vpop.f32.mrb[7].mxu0  ;;  %v730_v4 = vpop.f32.mrb[10].mxu1  ;;  %v195_v11 = vadd.f32 %v933_v23, %v194_v0 }
  0xf1   :  { %650 = vst [vmem:[%s1002_s6] sm:$0xff] %v649_v60   ;;  %v462_v5 = vadd.f32 %v940_v30, %v439_v62  ;;  %v440_v6 = vadd.f32 %v391_v3, %v182_v61  ;;  %v197_v7 = vpop.f32.mrb[11].mxu1  ;;  %v206_v18 = vadd.f32 %v730_v4, %v933_v23 }
  0xf2   :  { %v465_v8 = vadd.f32 %v940_v30, %v442_v2  ;;  %v480_v12 = vmax.f32 %v464_v1, 0.0  ;;  %v198_v24 = vadd.f32 %v933_v23, %v197_v7 }
  0xf3   :  { %v463_v10 = vadd.f32 %v940_v30, %v440_v6  ;;  %v478_v14 = vmax.f32 %v462_v5, 0.0 }
  0xf4   :  { %v481_v13 = vmax.f32 %v465_v8, 0.0 }
  0xf5   :  { %v479_v15 = vmax.f32 %v463_v10, 0.0  ;;  %v753_v16 = vpop.f32.mrb[8].mxu0 }
  0xf6   :  { %v664_v17 = vpack.c.bf16 %v481_v13, %v480_v12  ;;  %v445_v19 = vadd.f32 %v753_v16, %v203_v9  ;;  %v404_v20 = vpop.f32.mrb[9].mxu0  ;;  %v733_v21 = vpop.f32.mrb[12].mxu1 }
  0xf7   :  { %v659_v22 = vpack.c.bf16 %v479_v15, %v478_v14  ;;  %v443_v25 = vadd.f32 %v404_v20, %v195_v11  ;;  %v754_v26 = vpop.f32.mrb[10].mxu0  ;;  %v210_v27 = vpop.f32.mrb[13].mxu1  ;;  %v219_v37 = vadd.f32 %v733_v21, %v933_v23 }
  0xf8   :  { %688 = vst [vmem:[%s1002_s6 + $0x18] sm:$0xff] %v664_v17   ;;  %v468_v28 = vadd.f32 %v940_v30, %v445_v19  ;;  %v446_v29 = vadd.f32 %v754_v26, %v206_v18  ;;  %v407_v31 = vpop.f32.mrb[11].mxu0  ;;  %v734_v32 = vpop.f32.mrb[14].mxu1  ;;  %v211_v39 = vadd.f32 %v933_v23, %v210_v27 }
  0xf9   :  { %687 = vst [vmem:[%s1002_s6 + $0x10] sm:$0xff] %v659_v22   ;;  %v466_v33 = vadd.f32 %v940_v30, %v443_v25  ;;  %v444_v34 = vadd.f32 %v407_v31, %v198_v24  ;;  %v213_v35 = vpop.f32.mrb[15].mxu1  ;;  %v222_v46 = vadd.f32 %v734_v32, %v933_v23 }
  0xfa   :  { %v469_v36 = vadd.f32 %v940_v30, %v446_v29  ;;  %v484_v40 = vmax.f32 %v468_v28, 0.0  ;;  %v214_v50 = vadd.f32 %v933_v23, %v213_v35 }
  0xfb   :  { %v467_v38 = vadd.f32 %v940_v30, %v444_v34  ;;  %v482_v42 = vmax.f32 %v466_v33, 0.0 }
  0xfc   :  { %v485_v41 = vmax.f32 %v469_v36, 0.0 }
  0xfd   :  { %v483_v43 = vmax.f32 %v467_v38, 0.0  ;;  %v757_v44 = vpop.f32.mrb[12].mxu0 }
  0xfe   :  { %v674_v45 = vpack.c.bf16 %v485_v41, %v484_v40  ;;  %v449_v47 = vadd.f32 %v757_v44, %v219_v37  ;;  %v420_v48 = vpop.f32.mrb[13].mxu0 }
  0xff   :  { %v669_v49 = vpack.c.bf16 %v483_v43, %v482_v42  ;;  %v447_v51 = vadd.f32 %v420_v48, %v211_v39  ;;  %v758_v52 = vpop.f32.mrb[14].mxu0 }
 0x100   :  { %690 = vst [vmem:[%s1002_s6 + $0x28] sm:$0xff] %v674_v45   ;;  %v472_v53 = vadd.f32 %v940_v30, %v449_v47  ;;  %v450_v54 = vadd.f32 %v758_v52, %v222_v46  ;;  %v423_v55 = vpop.f32.mrb[15].mxu0 }
 0x101   :  { %689 = vst [vmem:[%s1002_s6 + $0x20] sm:$0xff] %v669_v49   ;;  %v470_v56 = vadd.f32 %v940_v30, %v447_v51  ;;  %v448_v57 = vadd.f32 %v423_v55, %v214_v50 }
 0x102   :  { %v473_v58 = vadd.f32 %v940_v30, %v450_v54  ;;  %v488_v59 = vmax.f32 %v472_v53, 0.0 }
 0x103   :  { %v471_v23 = vadd.f32 %v940_v30, %v448_v57  ;;  %v486_v61 = vmax.f32 %v470_v56, 0.0 }
 0x104   :  { %v489_v60 = vmax.f32 %v473_v58, 0.0 }
 0x105   :  { %v487_v62 = vmax.f32 %v471_v23, 0.0 }
 0x106   :  { %v684_v63 = vpack.c.bf16 %v489_v60, %v488_v59 }
 0x107   :  { %v679_v0 = vpack.c.bf16 %v487_v62, %v486_v61 }
 0x108   :  { %692 = vst [vmem:[%s1002_s6 + $0x38] sm:$0xff] %v684_v63  }
 0x109   :  { %691 = vst [vmem:[%s1002_s6 + $0x30] sm:$0xff] %v679_v0  }

// kernel: _lambda_.11
= control target key start
LH: loop header
LB: loop body
LE: loop exit
PB: predicated region body
PF: predicated region fallthrough
CT: control target
= control target key end

     0   :  { %vm97_vm0 = vcmask 261120   ;;  %s696_s1 = inlined_call_operand.vmem [shape: bf16[32,128], index: 1, kind: input, shape index: {}]   ;;  %s697_s0 = inlined_call_operand.vmem [shape: bf16[128,32], index: 0, kind: input, shape index: {}]   ;;  %s698_s3 = inlined_call_operand.vmem [shape: bf16[128,128], index: 3, kind: input, shape index: {}]   ;;  %s699_s2 = inlined_call_operand.vmem [shape: f32[1,128], index: 2, kind: input, shape index: {}]   ;;  %s700_s4 = inlined_call_operand.vmem [shape: bf16[128,128], index: 4, kind: output, shape index: {}]  }
   0x1   :  { %v538_v0 = vld [vmem:[%s696_s1] sm:$0xff]   ;;  %v539_v1 = vld [vmem:[%s696_s1 + $0x8] sm:$0xff]   ;;  %v544_v6 = vld [vmem:[%s697_s0 + $0x10] sm:$0xff]  }
   0x2   :  { %514 = vmatprep.subr.bf16.mxu0 %v538_v0  ;;  %534 = vmatprep.subr.bf16.mxu1 %v538_v0  ;;  %v540_v2 = vld [vmem:[%s697_s0] sm:$0xff]   ;;  %v542_v4 = vld [vmem:[%s697_s0 + $0x8] sm:$0xff]   ;;  %v545_v7 = vld [vmem:[%s697_s0 + $0x30] sm:$0xff]  }
   0x3   :  { %515 = vmatpush3.bf16.msra.mxu0 %v538_v0  ;;  %536 = vmatpush3.bf16.msra.mxu1 %v538_v0  ;;  %v541_v3 = vld [vmem:[%s697_s0 + $0x20] sm:$0xff]   ;;  %v543_v5 = vld [vmem:[%s697_s0 + $0x28] sm:$0xff]   ;;  %v546_v8 = vld [vmem:[%s697_s0 + $0x18] sm:$0xff]  }
   0x4   :  { %516 = vmatprep.subr.bf16.mxu0 %v539_v1  ;;  %535 = vmatprep.subr.bf16.mxu1 %v539_v1  ;;  %v547_v9 = vld [vmem:[%s697_s0 + $0x38] sm:$0xff]   ;;  %v490_v10 = vld [vmem:[%s698_s3 + $0x8] sm:$0xff]   ;;  %v419_v12 = vld [vmem:[%s698_s3] sm:$0xff]  }
   0x5   :  { %518 = vmatprep.mubr.msk.bf16.mxu0 %vm97_vm0, %v540_v2  ;;  %526 = vmatprep.mubr.msk.bf16.mxu1 %vm97_vm0, %v541_v3  ;;  %v494_v11 = vld [vmem:[%s698_s3 + $0x28] sm:$0xff]   ;;  %v493_v13 = vld [vmem:[%s698_s3 + $0x20] sm:$0xff]   ;;  %v631_v15 = vld [vmem:[%s698_s3 + $0x18] sm:$0xff]   ;;  %v424_v17 = vunpack.c.l.bf16 %v490_v10  ;;  %v420_v19 = vunpack.c.l.bf16 %v419_v12  ;;  %v425_v25 = vunpack.c.h.bf16 %v490_v10  ;;  %v421_v27 = vunpack.c.h.bf16 %v419_v12 }
   0x6   :  { %v626_v14 = vld [vmem:[%s699_s2] ss:$0 sm:$0xff]  ;;  %v636_v16 = vld [vmem:[%s698_s3 + $0x38] sm:$0xff]   ;;  %v440_v18 = vunpack.c.l.bf16 %v494_v11  ;;  %v436_v20 = vunpack.c.l.bf16 %v493_v13  ;;  %v641_v21 = vld [vmem:[%s698_s3 + $0x10] sm:$0xff]   ;;  %v441_v26 = vunpack.c.h.bf16 %v494_v11  ;;  %v437_v28 = vunpack.c.h.bf16 %v493_v13 }
   0x7   :  { %517 = vmatpush3.bf16.msra.mxu0 %v539_v1  ;;  %537 = vmatpush3.bf16.msra.mxu1 %v539_v1  ;;  %v646_v22 = vld [vmem:[%s698_s3 + $0x30] sm:$0xff]   ;;  %v432_v33 = vunpack.c.l.bf16 %v631_v15  ;;  %v448_v34 = vunpack.c.l.bf16 %v636_v16  ;;  %v428_v39 = vunpack.c.l.bf16 %v641_v21  ;;  %v433_v53 = vunpack.c.h.bf16 %v631_v15 }
   0x8   :  { %v444_v40 = vunpack.c.l.bf16 %v646_v22  ;;  %v449_v54 = vunpack.c.h.bf16 %v636_v16  ;;  %v429_v57 = vunpack.c.h.bf16 %v641_v21  ;;  %v445_v58 = vunpack.c.h.bf16 %v646_v22 }
   0xa   :  { %519 = vmatmul.mubr.msk.bf16.vlgmr.msra.gmra.mrb[0].mxu0 %vm97_vm0, %v542_v4  ;;  %527 = vmatmul.mubr.msk.bf16.vlgmr.msra.gmra.mrb[0].mxu1 %vm97_vm0, %v543_v5 }
   0xb   :  { %522 = vmatprep.mubr.msk.bf16.mxu0 %vm97_vm0, %v544_v6  ;;  %530 = vmatprep.mubr.msk.bf16.mxu1 %vm97_vm0, %v545_v7 }
  0x12   :  { %523 = vmatmul.mubr.msk.bf16.gmra.mrb[4].mxu0 %vm97_vm0, %v546_v8  ;;  %531 = vmatmul.mubr.msk.bf16.gmra.mrb[4].mxu1 %vm97_vm0, %v547_v9 }
  0xdd   :  { %v520_v23 = vpop.f32.mrb[0].mxu0  ;;  %v528_v24 = vpop.f32.mrb[0].mxu1 }
  0xde   :  { %v165_v29 = vadd.f32 %v520_v23, %v626_v14  ;;  %v197_v30 = vadd.f32 %v528_v24, %v626_v14  ;;  %v156_v31 = vpop.f32.mrb[1].mxu0  ;;  %v188_v32 = vpop.f32.mrb[1].mxu1 }
  0xdf   :  { %v157_v35 = vadd.f32 %v626_v14, %v156_v31  ;;  %v189_v36 = vadd.f32 %v626_v14, %v188_v32  ;;  %v521_v37 = vpop.f32.mrb[2].mxu0  ;;  %v529_v38 = vpop.f32.mrb[2].mxu1 }
  0xe0   :  { %v253_v41 = vadd.f32 %v424_v17, %v165_v29  ;;  %v261_v42 = vadd.f32 %v440_v18, %v197_v30  ;;  %v168_v43 = vadd.f32 %v521_v37, %v626_v14  ;;  %v200_v44 = vadd.f32 %v529_v38, %v626_v14  ;;  %v159_v45 = vpop.f32.mrb[3].mxu0  ;;  %v191_v46 = vpop.f32.mrb[3].mxu1 }
  0xe1   :  { %v251_v47 = vadd.f32 %v420_v19, %v157_v35  ;;  %v259_v48 = vadd.f32 %v436_v20, %v189_v36  ;;  %v160_v49 = vadd.f32 %v626_v14, %v159_v45  ;;  %v192_v50 = vadd.f32 %v626_v14, %v191_v46 }
  0xe2   :  { %v254_v51 = vadd.f32 %v425_v25, %v168_v43  ;;  %v262_v52 = vadd.f32 %v441_v26, %v200_v44  ;;  %v269_v59 = vmax.f32 %v253_v41, 0.0  ;;  %v277_v60 = vmax.f32 %v261_v42, 0.0 }
  0xe3   :  { %v252_v55 = vadd.f32 %v421_v27, %v160_v49  ;;  %v260_v56 = vadd.f32 %v437_v28, %v192_v50  ;;  %v267_v63 = vmax.f32 %v251_v47, 0.0  ;;  %v275_v0 = vmax.f32 %v259_v48, 0.0 }
  0xe4   :  { %v270_v61 = vmax.f32 %v254_v51, 0.0  ;;  %v278_v62 = vmax.f32 %v262_v52, 0.0 }
  0xe5   :  { %v268_v1 = vmax.f32 %v252_v55, 0.0  ;;  %v276_v2 = vmax.f32 %v260_v56, 0.0  ;;  %v524_v3 = vpop.f32.mrb[4].mxu0  ;;  %v532_v4 = vpop.f32.mrb[4].mxu1 }
  0xe6   :  { %v458_v5 = vpack.c.bf16 %v270_v61, %v269_v59  ;;  %v478_v6 = vpack.c.bf16 %v278_v62, %v277_v60  ;;  %v181_v7 = vadd.f32 %v524_v3, %v626_v14  ;;  %v213_v8 = vadd.f32 %v532_v4, %v626_v14  ;;  %v172_v9 = vpop.f32.mrb[5].mxu0  ;;  %v204_v10 = vpop.f32.mrb[5].mxu1 }
  0xe7   :  { %v453_v11 = vpack.c.bf16 %v268_v1, %v267_v63  ;;  %v473_v12 = vpack.c.bf16 %v276_v2, %v275_v0  ;;  %v173_v13 = vadd.f32 %v626_v14, %v172_v9  ;;  %v205_v15 = vadd.f32 %v626_v14, %v204_v10  ;;  %v525_v16 = vpop.f32.mrb[6].mxu0  ;;  %v533_v17 = vpop.f32.mrb[6].mxu1 }
  0xe8   :  { %497 = vst [vmem:[%s700_s4 + $0x8] sm:$0xff] %v458_v5   ;;  %501 = vst [vmem:[%s700_s4 + $0x28] sm:$0xff] %v478_v6   ;;  %v257_v18 = vadd.f32 %v432_v33, %v181_v7  ;;  %v265_v19 = vadd.f32 %v448_v34, %v213_v8  ;;  %v184_v20 = vadd.f32 %v525_v16, %v626_v14  ;;  %v175_v22 = vpop.f32.mrb[7].mxu0  ;;  %v207_v23 = vpop.f32.mrb[7].mxu1 }
  0xe9   :  { %v216_v21 = vadd.f32 %v533_v17, %v626_v14  ;;  %454 = vst [vmem:[%s700_s4] sm:$0xff] %v453_v11   ;;  %500 = vst [vmem:[%s700_s4 + $0x20] sm:$0xff] %v473_v12   ;;  %v255_v24 = vadd.f32 %v428_v39, %v173_v13  ;;  %v263_v25 = vadd.f32 %v444_v40, %v205_v15 }
  0xea   :  { %v176_v26 = vadd.f32 %v626_v14, %v175_v22  ;;  %v208_v27 = vadd.f32 %v626_v14, %v207_v23  ;;  %v258_v28 = vadd.f32 %v433_v53, %v184_v20  ;;  %v273_v32 = vmax.f32 %v257_v18, 0.0 }
  0xeb   :  { %v266_v29 = vadd.f32 %v449_v54, %v216_v21  ;;  %v281_v33 = vmax.f32 %v265_v19, 0.0  ;;  %v271_v36 = vmax.f32 %v255_v24, 0.0  ;;  %v279_v37 = vmax.f32 %v263_v25, 0.0 }
  0xec   :  { %v256_v30 = vadd.f32 %v429_v57, %v176_v26  ;;  %v264_v31 = vadd.f32 %v445_v58, %v208_v27  ;;  %v274_v34 = vmax.f32 %v258_v28, 0.0 }
  0xed   :  { %v282_v35 = vmax.f32 %v266_v29, 0.0 }
  0xee   :  { %v272_v38 = vmax.f32 %v256_v30, 0.0  ;;  %v280_v41 = vmax.f32 %v264_v31, 0.0  ;;  %v468_v42 = vpack.c.bf16 %v274_v34, %v273_v32 }
  0xef   :  { %v488_v43 = vpack.c.bf16 %v282_v35, %v281_v33 }
  0xf0   :  { %v463_v39 = vpack.c.bf16 %v272_v38, %v271_v36  ;;  %v483_v40 = vpack.c.bf16 %v280_v41, %v279_v37  ;;  %499 = vst [vmem:[%s700_s4 + $0x18] sm:$0xff] %v468_v42  }
  0xf1   :  { %503 = vst [vmem:[%s700_s4 + $0x38] sm:$0xff] %v488_v43  }
  0xf2   :  { %498 = vst [vmem:[%s700_s4 + $0x10] sm:$0xff] %v463_v39   ;;  %502 = vst [vmem:[%s700_s4 + $0x30] sm:$0xff] %v483_v40  }

// kernel: _lambda_.7
= control target key start
LH: loop header
LB: loop body
LE: loop exit
PB: predicated region body
PF: predicated region fallthrough
CT: control target
= control target key end

     0   :  { %s4807_s15 = smov 0   ;;  %s4809_s16 = smov 0   ;;  %s5535_s0 = inlined_call_operand.vmem [shape: bf16[2,240,32], index: 0, kind: input, shape index: {}]   ;;  %s5536_s1 = inlined_call_operand.vmem [shape: bf16[2,216,32], index: 1, kind: input, shape index: {}]   ;;  %s5537_s2 = inlined_call_operand.vmem [shape: bf16[9,32,32], index: 2, kind: input, shape index: {}]   ;;  %s5538_s3 = inlined_call_operand.vmem [shape: f32[1,32], index: 3, kind: input, shape index: {}]   ;;  %s5539_s4 = inlined_call_operand.vmem [shape: bf16[2,192,32], index: 4, kind: output, shape index: {}]  }
   0x1   :  { %s4811_s17 = smov 0  }
   0x2 LB: > { %s26_s18 = sadd.s32 1, %s4776_s16  ;;  %p3664_p0 = scmp.ge.s32.totalorder %s4780_s17, 1  ;;  %s4780_s17 = sphi %s4811_s17, %s14_s17   ;;  %s4776_s16 = sphi %s4809_s16, %s5541_s16   ;;  %s4772_s15 = sphi %s4807_s15, %s5540_s15  }
   0x3   : > { %p28_p1 = scmp.ge.s32.totalorder %s26_s18, 2  ;;  %p203_p2 = scmp.lt.s32.totalorder %s4780_s17, 3 }
   0x5   : > { %s5543_s18 = smov (%p28_p1, %s26_s18), 0  ;;  %p204_p3 = pnand %p3664_p0, %p203_p2 }
   0x6   : > { %v4650_v0 = vld [vmem:[%s5537_s2 + $0x10] sm:$0xff] (!%p204_p3)   ;;  %p244_p4 = scmp.lt.s32.totalorder (!%p204_p3), %s4772_s15, 1  ;;  %v4652_v2 = vld [vmem:[%s5537_s2 + $0x18] sm:$0xff] (!%p204_p3)   ;;  %v4656_v4 = vld [vmem:[%s5537_s2] sm:$0xff] (!%p204_p3)   ;;  %vm326_vm0 = vsmask.f32 (!%p204_p3), 7424 }
   0x7   : > { %207 = sbr.rel (%p204_p3) target bundleno = 461 (0x1cd), region = 36  ;;  %v4651_v1 = vld [vmem:[%s5537_s2 + $0x10] sm:$0xff] (!%p204_p3)   ;;  %4143 = vmatprep.subr.bf16.mxu0 (!%p204_p3), %v4650_v0  ;;  %v4653_v3 = vld [vmem:[%s5537_s2 + $0x18] sm:$0xff] (!%p204_p3)   ;;  %v4851_v5 = vld [vmem:[%s5537_s2] sm:$0xff] (!%p204_p3)   ;;  %vm391_vm1 = vcmask (!%p204_p3), 261120   ;;  %vm605_vm2 = vcmask (!%p204_p3), 1046528  }
   0x8   : > { %4287 = vmatprep.subr.bf16.mxu1 (!%p204_p3), %v4651_v1  ;;  %4144 = vmatpush3.bf16.msra.mxu0 (!%p204_p3), %v4650_v0  ;;  %v4666_v54 = vld [vmem:[%s5537_s2 + $0x8] sm:$0xff] (!%p204_p3)   ;;  %vm1902_vm3 = vcmask (!%p204_p3), 257024  }
   0x9   : > { %4288 = vmatpush3.bf16.msra.mxu1 (!%p204_p3), %v4651_v1  ;;  %4145 = vmatprep.subr.bf16.mxu0 (!%p204_p3), %v4652_v2  ;;  %v4667_v59 = vld [vmem:[%s5537_s2 + $0x8] sm:$0xff] (!%p204_p3)  }
   0xa   : > { %4289 = vmatprep.subr.bf16.mxu1 (!%p204_p3), %v4653_v3 }
   0xc   : > { %4146 = vmatpush3.bf16.msra.mxu0 (!%p204_p3), %v4652_v2 }
   0xd   : > { %4290 = vmatpush3.bf16.msra.mxu1 (!%p204_p3), %v4653_v3  ;;  %4159 = vmatprep.subr.bf16.mxu0 (!%p204_p3), %v4656_v4 }
   0xe   : > { %s5545_s15 = smov (!%p244_p4, %s4772_s15), 1  ;;  %4303 = vmatprep.subr.bf16.mxu1 %v4851_v5 }
   0xf   : > { %s4623_s27 = smul.u32 120, %s5545_s15 }
  0x10   : > { %s4624_s21 = smul.u32 108, %s5545_s15 }
  0x11   : > { %s4846_s6 = scalar_lea.vmem %s5535_s0, %s4623_s27 }
  0x12   : > { %v271_v6 = vld [vmem:[%s4846_s6] sm:$0xf]  ;;  %v4855_v7 = vld [vmem:[%s4846_s6 + $0x4] sm:$0xf]  ;;  %v4861_v9 = vld [vmem:[%s4846_s6 + $0x8] sm:$0xff]   ;;  %s4970_s24 = scalar_lea.vmem %s5536_s1, %s4624_s21 }
  0x13   : > { %v4858_v8 = vcombine.low %v271_v6, %v4855_v7  ;;  %v1915_v10 = vld [vmem:[%s4846_s6 + $0x30] sm:$0xf]  ;;  %v4865_v11 = vld [vmem:[%s4846_s6 + $0x34] sm:$0xf]  ;;  %v335_v14 = vshll.u32 %v4861_v9, 16  ;;  %v339_v15 = vshrl.u32 %v4861_v9, 16 }
  0x14   : > { %v4873_v16 = vld [vmem:[%s4846_s6 + $0x38] sm:$0xff]   ;;  %v4876_v17 = vld [vmem:[%s4846_s6 + $0x10] sm:$0xff]   ;;  %v4879_v18 = vcombine.low %v1915_v10, %v4865_v11  ;;  %v4887_v26 = vld [vmem:[%s4846_s6 + $0x40] sm:$0xff]  }
  0x15   : > { %v328_v12 = vshrl.u32 %v4858_v8, 16  ;;  %v330_v13 = vshll.u32 %v4858_v8, 16  ;;  %v337_v20 = vrot.slane %v335_v14, 1  ;;  %v1977_v21 = vshll.u32 %v4873_v16, 16  ;;  %v4890_v30 = vld [vmem:[%s4846_s6 + $0x18] sm:$0xff]   ;;  %v4894_v32 = vld [vmem:[%s4846_s6 + $0x48] sm:$0xff]  }
  0x16   : > { %v1981_v22 = vshrl.u32 %v4873_v16, 16  ;;  %v1970_v23 = vshrl.u32 %v4879_v18, 16  ;;  %v1972_v24 = vshll.u32 %v4879_v18, 16  ;;  %v343_v25 = vshll.u32 %v4876_v17, 16  ;;  %v4904_v45 = vld [vmem:[%s4846_s6 + $0x20] sm:$0xff]   ;;  %v4909_v49 = vld [vmem:[%s4846_s6 + $0x50] sm:$0xff]  }
  0x17   : > { %v332_v19 = vrot.slane %v330_v13, 1  ;;  %v341_v28 = vor.u32 %v339_v15, %v337_v20  ;;  %v1979_v29 = vrot.slane %v1977_v21, 1  ;;  %v347_v31 = vshrl.u32 %v4876_v17, 16  ;;  %v4925_v60 = vld [vmem:[%s4846_s6 + $0x28] sm:$0xff]   ;;  %v4935_v3 = vld [vmem:[%s4846_s6 + $0x58] sm:$0xff]  }
  0x18   : > { %v1974_v33 = vrot.slane %v1972_v24, 1  ;;  %v345_v34 = vrot.slane %v343_v25, 1  ;;  %v1985_v35 = vshll.u32 %v4887_v26, 16  ;;  %v1989_v36 = vshrl.u32 %v4887_v26, 16 }
  0x19   : > { %v333_v27 = vor.u32 %v332_v19, %v328_v12  ;;  %v1983_v38 = vor.u32 %v1981_v22, %v1979_v29  ;;  %v351_v39 = vshll.u32 %v4890_v30, 16  ;;  %v1993_v40 = vshll.u32 %v4894_v32, 16  ;;  %v4940_v12 = vld [vmem:[%s4846_s6 + $0x30] ss:$0 sps:$4 sm:$0x11]   ;;  %v4672_v22 = vld [vmem:[%s5537_s2 + $0x20] sm:$0xff]  }
  0x1a   : > { %v1975_v41 = vor.u32 %v1974_v33, %v1970_v23  ;;  %v346_v42 = vsel %vm326_vm0, %v341_v28, %v345_v34  ;;  %v1987_v43 = vrot.slane %v1985_v35, 1  ;;  %v349_v44 = vor.u32 %v347_v31, %v345_v34 }
  0x1b   : > { %v338_v37 = vsel %vm326_vm0, %v333_v27, %v337_v20  ;;  %v353_v46 = vrot.slane %v351_v39, 1  ;;  %v1995_v47 = vrot.slane %v1993_v40, 1  ;;  %v355_v48 = vshrl.u32 %v4890_v30, 16  ;;  %v4946_v20 = vld [vmem:[%s4846_s6 + $0x60] ss:$0 sps:$4 sm:$0x11]  }
  0x1c   : > { %4147 = vmatprep.mubr.msk.bf16.mxu0 %vm391_vm1, %v338_v37  ;;  %v1980_v50 = vsel %vm326_vm0, %v1975_v41, %v1979_v29  ;;  %v1988_v51 = vsel %vm326_vm0, %v1983_v38, %v1987_v43  ;;  %v1991_v52 = vor.u32 %v1989_v36, %v1987_v43  ;;  %v359_v53 = vshll.u32 %v4904_v45, 16  ;;  %v4673_v27 = vld [vmem:[%s5537_s2 + $0x20] sm:$0xff]   ;;  %v4674_v38 = vld [vmem:[%s5537_s2 + $0x28] sm:$0xff]   ;;  %v4679_v40 = vld [vmem:[%s5537_s2 + $0x30] sm:$0xff]  }
  0x1d   : > { %4148 = vmatmul.mubr.msk.bf16.vlgmr.msra.gmra.mrb[0].mxu0 %vm391_vm1, %v346_v42  ;;  %4291 = vmatprep.mubr.msk.bf16.mxu1 %vm391_vm1, %v1980_v50  ;;  %v354_v55 = vsel %vm326_vm0, %v349_v44, %v353_v46  ;;  %v357_v56 = vor.u32 %v355_v48, %v353_v46  ;;  %v1997_v57 = vshrl.u32 %v4894_v32, 16  ;;  %v2001_v58 = vshll.u32 %v4909_v49, 16  ;;  %v596_v39 = vld [vmem:[%s4846_s6] sm:$0xe]  ;;  %v2237_v42 = vld [vmem:[%s4846_s6 + $0x30] sm:$0xe] }
  0x1e   : > { %4160 = vmatpush3.bf16.msra.mxu0 %v4656_v4  ;;  %4292 = vmatmul.mubr.msk.bf16.vlgmr.msra.gmra.mrb[0].mxu1 %vm391_vm1, %v1988_v51  ;;  %v1996_v61 = vsel %vm326_vm0, %v1991_v52, %v1995_v47  ;;  %v361_v62 = vrot.slane %v359_v53, 1  ;;  %v363_v63 = vshrl.u32 %v4904_v45, 16  ;;  %v367_v2 = vshll.u32 %v4925_v60, 16 }
  0x1f   : > { %4151 = vmatprep.mubr.msk.bf16.mxu0 %vm391_vm1, %v354_v55  ;;  %4304 = vmatpush3.bf16.msra.mxu1 %v4851_v5  ;;  %v1999_v0 = vor.u32 %v1997_v57, %v1995_v47  ;;  %v2003_v1 = vrot.slane %v2001_v58, 1  ;;  %v2005_v4 = vshrl.u32 %v4909_v49, 16  ;;  %v371_v5 = vshrl.u32 %v4925_v60, 16 }
  0x20   : > { %4295 = vmatprep.mubr.msk.bf16.mxu1 %vm391_vm1, %v1996_v61  ;;  %v362_v6 = vsel %vm326_vm0, %v357_v56, %v361_v62  ;;  %4161 = vmatprep.subr.bf16.mxu0 %v4666_v54  ;;  %v365_v10 = vor.u32 %v363_v63, %v361_v62  ;;  %v369_v13 = vrot.slane %v367_v2, 1  ;;  %v2009_v15 = vshll.u32 %v4935_v3, 16  ;;  %v4683_v56 = vld [vmem:[%s5537_s2 + $0x40] sm:$0xff]   ;;  %v4684_v2 = vld [vmem:[%s4970_s24 + $0x30] sm:$0xff]  }
  0x21   : > { %4305 = vmatprep.subr.bf16.mxu1 %v4667_v59  ;;  %v2007_v14 = vor.u32 %v2005_v4, %v2003_v1  ;;  %v375_v19 = vshll.u32 %v4940_v12, 16  ;;  %v2013_v21 = vshrl.u32 %v4935_v3, 16  ;;  %v2004_v23 = vsel %vm326_vm0, %v1999_v0, %v2003_v1  ;;  %v4682_v1 = vld [vmem:[%s4970_s24] sm:$0xff]   ;;  %v4686_v4 = vld [vmem:[%s4970_s24 + $0x8] sm:$0xff]  }
  0x22   : > { %4162 = vmatpush3.bf16.msra.mxu0 %v4666_v54  ;;  %v370_v24 = vsel %vm326_vm0, %v365_v10, %v369_v13  ;;  %v2011_v25 = vrot.slane %v2009_v15, 1  ;;  %v373_v28 = vor.u32 %v371_v5, %v369_v13  ;;  %v2017_v31 = vshll.u32 %v4946_v20, 16  ;;  %v4680_v54 = vld [vmem:[%s5537_s2 + $0x38] sm:$0xff]   ;;  %v4688_v10 = vld [vmem:[%s4970_s24 + $0x10] sm:$0xff]   ;;  %v4692_v5 = vld [vmem:[%s5537_s2 + $0x48] sm:$0xff]  }
  0x23   : > { %4306 = vmatpush3.bf16.msra.mxu1 %v4667_v59  ;;  %v377_v29 = vrot.slane %v375_v19, 1  ;;  %4175 = vmatprep.subr.bf16.mxu0 %v4672_v22  ;;  %v3699_v41 = vcombine.low %v596_v39, %v4855_v7  ;;  %v3852_v43 = vcombine.low %v2237_v42, %v4865_v11  ;;  %v607_v46 = vrot.slane %v4861_v9, 1  ;;  %v4685_v59 = vld [vmem:[%s5537_s2 + $0x40] sm:$0xff]   ;;  %v4687_v13 = vld [vmem:[%s4970_s24 + $0x38] sm:$0xff]   ;;  %v5078_v19 = vld [vmem:[%s4970_s24 + $0x34] sm:$0xf] }
  0x24   : > { %v2012_v33 = vsel %vm326_vm0, %v2007_v14, %v2011_v25  ;;  %4319 = vmatprep.subr.bf16.mxu1 %v4673_v27  ;;  %v2015_v34 = vor.u32 %v2013_v21, %v2011_v25  ;;  %v2019_v35 = vrot.slane %v2017_v31, 1  ;;  %v2246_v47 = vrot.slane %v4873_v16, 1  ;;  %v2550_v14 = vld [vmem:[%s4970_s24 + $0x30] sm:$0xf]  ;;  %v4693_v21 = vld [vmem:[%s5537_s2 + $0x48] sm:$0xff]   ;;  %v5100_v31 = vld [vmem:[%s4970_s24 + $0x38] sm:$0xff]  }
  0x25   : > { %4152 = vmatmul.mubr.msk.bf16.gmra.mrb[4].mxu0 %vm391_vm1, %v362_v6  ;;  %v378_v36 = vsel %vm326_vm0, %v373_v28, %v377_v29  ;;  %v606_v44 = vrot.slane %v3699_v41, 1  ;;  %v2245_v7 = vrot.slane %v3852_v43, 1  ;;  %v611_v50 = vrot.slane %v4890_v30, 1  ;;  %v912_v6 = vld [vmem:[%s4970_s24] sm:$0xf]  ;;  %v5093_v25 = vld [vmem:[%s5537_s2 + $0x50] sm:$0xff]  }
  0x26   : > { %4155 = vmatprep.mubr.msk.bf16.mxu0 %vm391_vm1, %v370_v24  ;;  %4296 = vmatmul.mubr.msk.bf16.gmra.mrb[4].mxu1 %vm391_vm1, %v2004_v23  ;;  %v2020_v37 = vsel %vm326_vm0, %v2015_v34, %v2019_v35  ;;  %v2250_v52 = vrot.slane %v4894_v32, 1  ;;  %v615_v55 = vrot.slane %v4925_v60, 1  ;;  %v2252_v57 = vrot.slane %v4909_v49, 1  ;;  %v4694_v28 = vld [vmem:[%s4970_s24 + $0x20] sm:$0xff]   ;;  %v5105_v34 = vld [vmem:[%s5537_s2 + $0x50] sm:$0xff]   ;;  %v5119_v43 = vld [vmem:[%s4970_s24 + $0x18] sm:$0xff]  }
  0x27   : > { %4299 = vmatprep.mubr.msk.bf16.mxu1 %vm391_vm1, %v2012_v33  ;;  %v608_v48 = vsel %vm605_vm2, %v606_v44, %v607_v46  ;;  %v2247_v11 = vsel %vm605_vm2, %v2245_v7, %v2246_v47  ;;  %v2254_v58 = vrot.slane %v4935_v3, 1  ;;  %v617_v62 = vrot.slane %v4940_v12, 1  ;;  %v5068_v12 = vld [vmem:[%s4970_s24 + $0x4] sm:$0xf]  ;;  %v4696_v44 = vld [vmem:[%s4970_s24 + $0x28] sm:$0xff]  }
  0x28   : > { %v2256_v63 = vrot.slane %v4946_v20, 1  ;;  %v3730_v15 = vcombine.low %v912_v6, %v5068_v12  ;;  %v4689_v20 = vld [vmem:[%s4970_s24 + $0x40] sm:$0xff]   ;;  %v3883_v23 = vcombine.low %v2550_v14, %v5078_v19 }
  0x29   : > { %v2255_v61 = vsel %vm605_vm2, %v2252_v57, %v2254_v58  ;;  %v618_v0 = vsel %vm605_vm2, %v615_v55, %v617_v62  ;;  %v5125_v7 = vld [vmem:[%s4970_s24 + $0x40] sm:$0xff]  }
  0x2a   : > { %v966_v24 = vshll.u32 %v3730_v15, 16  ;;  %v964_v29 = vshrl.u32 %v3730_v15, 16  ;;  %v2603_v33 = vshll.u32 %v3883_v23, 16 }
  0x2c   : > { %v968_v35 = vrot.slane %v966_v24, 1  ;;  %v2605_v39 = vrot.slane %v2603_v33, 1 }
  0x2d   : > { %4156 = vmatmul.mubr.msk.bf16.gmra.mrb[8].mxu0 %vm391_vm1, %v378_v36 }
  0x2e   : > { %4163 = vmatprep.mubr.msk.bf16.mxu0 %vm391_vm1, %v4858_v8  ;;  %4300 = vmatmul.mubr.msk.bf16.gmra.mrb[8].mxu1 %vm391_vm1, %v2020_v37  ;;  %v4675_v8 = vld [vmem:[%s5537_s2 + $0x28] sm:$0xff]   ;;  %v969_v41 = vor.u32 %v968_v35, %v964_v29  ;;  %v4717_v35 = vld [vmem:[%s5537_s2 + $0x60] sm:$0xff]  }
  0x2f   : > { %4307 = vmatprep.mubr.msk.bf16.mxu1 %vm391_vm1, %v4879_v18  ;;  %v4677_v18 = vld [vmem:[%s5537_s2 + $0x30] sm:$0xff]   ;;  %v4691_v37 = vld [vmem:[%s4970_s24 + $0x48] sm:$0xff]  }
  0x35   : > { %4164 = vmatmul.mubr.msk.bf16.vlgmr.msra.gmra.mrb[0].mxu0 %vm391_vm1, %v4861_v9  ;;  %v609_v9 = vrot.slane %v4876_v17, 1 }
  0x36   : > { %4176 = vmatpush3.bf16.msra.mxu0 %v4672_v22  ;;  %4167 = vmatprep.mubr.msk.bf16.mxu0 %vm391_vm1, %v4876_v17  ;;  %v5087_v22 = vld [vmem:[%s4970_s24 + $0x8] sm:$0xff]  }
  0x37   : > { %4177 = vmatprep.subr.bf16.mxu0 %v4674_v38  ;;  %4308 = vmatmul.mubr.msk.bf16.vlgmr.msra.gmra.mrb[0].mxu1 %vm391_vm1, %v4873_v16  ;;  %v2248_v16 = vrot.slane %v4887_v26, 1  ;;  %v610_v51 = vsel %vm605_vm2, %v607_v46, %v609_v9  ;;  %v612_v53 = vsel %vm605_vm2, %v609_v9, %v611_v50  ;;  %v971_v36 = vshll.u32 %v5087_v22, 16 }
  0x38   : > { %4320 = vmatpush3.bf16.msra.mxu1 %v4673_v27  ;;  %4311 = vmatprep.mubr.msk.bf16.mxu1 %vm391_vm1, %v4887_v26  ;;  %v613_v26 = vrot.slane %v4904_v45, 1  ;;  %v4690_v27 = vld [vmem:[%s4970_s24 + $0x18] sm:$0xff]  }
  0x39   : > { %4321 = vmatprep.subr.bf16.mxu1 %v4675_v8  ;;  %v2249_v17 = vsel %vm605_vm2, %v2246_v47, %v2248_v16  ;;  %v973_v42 = vrot.slane %v971_v36, 1  ;;  %v4697_v47 = vld [vmem:[%s4970_s24 + $0x58] sm:$0xff]  }
  0x3a   : > { %4178 = vmatpush3.bf16.msra.mxu0 %v4674_v38  ;;  %v5111_v38 = vld [vmem:[%s4970_s24 + $0x10] sm:$0xff]  }
  0x3b   : > { %4191 = vmatprep.subr.bf16.mxu0 %v4677_v18  ;;  %v979_v46 = vshll.u32 %v5111_v38, 16 }
  0x3c   : > { %4322 = vmatpush3.bf16.msra.mxu1 %v4675_v8  ;;  %v4695_v8 = vld [vmem:[%s4970_s24 + $0x50] sm:$0xff]  }
  0x3d   : > { %4168 = vmatmul.mubr.msk.bf16.gmra.mrb[4].mxu0 %vm391_vm1, %v4890_v30  ;;  %4335 = vmatprep.subr.bf16.mxu1 %v4679_v40  ;;  %v2251_v30 = vsel %vm605_vm2, %v2248_v16, %v2250_v52  ;;  %v974_v16 = vsel %vm326_vm0, %v969_v41, %v973_v42 }
  0x3e   : > { %4171 = vmatprep.mubr.msk.bf16.mxu0 %vm391_vm1, %v4904_v45  ;;  %v614_v45 = vsel %vm605_vm2, %v611_v50, %v613_v26  ;;  %v5131_v50 = vld [vmem:[%s4970_s24 + $0x48] sm:$0xff]  }
  0x3f   : > { %4312 = vmatmul.mubr.msk.bf16.gmra.mrb[4].mxu1 %vm391_vm1, %v4894_v32  ;;  %v4681_v32 = vld [vmem:[%s5537_s2 + $0x38] sm:$0xff]  }
  0x40   : > { %4315 = vmatprep.mubr.msk.bf16.mxu1 %vm391_vm1, %v4909_v49  ;;  %v2253_v49 = vsel %vm605_vm2, %v2250_v52, %v2252_v57  ;;  %v987_v52 = vshll.u32 %v5119_v43, 16 }
  0x45   : > { %4172 = vmatmul.mubr.msk.bf16.gmra.mrb[8].mxu0 %vm391_vm1, %v4925_v60  ;;  %v616_v60 = vsel %vm605_vm2, %v613_v26, %v615_v55  ;;  %v2620_v55 = vshrl.u32 %v5125_v7, 16 }
  0x46   : > { %4179 = vmatprep.mubr.msk.bf16.mxu0 %vm391_vm1, %v608_v48  ;;  %v975_v48 = vshrl.u32 %v5087_v22, 16 }
  0x47   : > { %4316 = vmatmul.mubr.msk.bf16.gmra.mrb[8].mxu1 %vm391_vm1, %v4935_v3  ;;  %v2257_v3 = vsel %vm605_vm2, %v2254_v58, %v2256_v63  ;;  %v5147_v58 = vld [vmem:[%s4970_s24 + $0x28] sm:$0xff]   ;;  %v4710_v63 = vld [vmem:[%s5537_s2 + $0x58] sm:$0xff]  }
  0x48   : > { %4323 = vmatprep.mubr.msk.bf16.mxu1 %vm391_vm1, %v2247_v11  ;;  %v977_v26 = vor.u32 %v975_v48, %v973_v42  ;;  %v1007_v41 = vshrl.u32 %v5147_v58, 16 }
  0x4d   : > { %4180 = vmatmul.mubr.msk.bf16.vlgmr.msra.gmra.mrb[0].mxu0 %vm391_vm1, %v610_v51  ;;  %v983_v51 = vshrl.u32 %v5111_v38, 16 }
  0x4e   : > { %4192 = vmatpush3.bf16.msra.mxu0 %v4677_v18  ;;  %4183 = vmatprep.mubr.msk.bf16.mxu0 %vm391_vm1, %v612_v53  ;;  %v2601_v18 = vshrl.u32 %v3883_v23, 16  ;;  %v2612_v53 = vshrl.u32 %v5100_v31, 16 }
  0x4f   : > { %4193 = vmatprep.subr.bf16.mxu0 %v4680_v54  ;;  %4324 = vmatmul.mubr.msk.bf16.vlgmr.msra.gmra.mrb[0].mxu1 %vm391_vm1, %v2249_v17  ;;  %v981_v17 = vrot.slane %v979_v46, 1 }
  0x50   : > { %4336 = vmatpush3.bf16.msra.mxu1 %v4679_v40  ;;  %4327 = vmatprep.mubr.msk.bf16.mxu1 %vm391_vm1, %v2251_v30  ;;  %v2608_v40 = vshll.u32 %v5100_v31, 16  ;;  %v2606_v11 = vor.u32 %v2605_v39, %v2601_v18  ;;  %v5140_v30 = vld [vmem:[%s4970_s24 + $0x20] sm:$0xff]  }
  0x51   : > { %4337 = vmatprep.subr.bf16.mxu1 %v4681_v32  ;;  %v985_v57 = vor.u32 %v983_v51, %v981_v17  ;;  %v995_v62 = vshll.u32 %v5140_v30, 16  ;;  %v999_v6 = vshrl.u32 %v5140_v30, 16  ;;  %v5190_v18 = vld [vmem:[%s4970_s24 + $0x60] ss:$0 sps:$4 sm:$0x11]  }
  0x52   : > { %4194 = vmatpush3.bf16.msra.mxu0 %v4680_v54  ;;  %v2610_v9 = vrot.slane %v2608_v40, 1  ;;  %v2616_v54 = vshll.u32 %v5125_v7, 16 }
  0x53   : > { %4207 = vmatprep.subr.bf16.mxu0 %v4683_v56  ;;  %v997_v15 = vrot.slane %v995_v62, 1 }
  0x54   : > { %4338 = vmatpush3.bf16.msra.mxu1 %v4681_v32  ;;  %v2611_v32 = vsel %vm326_vm0, %v2606_v11, %v2610_v9 }
  0x55   : > { %4184 = vmatmul.mubr.msk.bf16.gmra.mrb[4].mxu0 %vm391_vm1, %v614_v45  ;;  %4351 = vmatprep.subr.bf16.mxu1 %v4685_v59  ;;  %v989_v45 = vrot.slane %v987_v52, 1  ;;  %v1001_v29 = vor.u32 %v999_v6, %v997_v15 }
  0x56   : > { %4187 = vmatprep.mubr.msk.bf16.mxu0 %vm391_vm1, %v616_v60  ;;  %v2618_v60 = vrot.slane %v2616_v54, 1  ;;  %v1148_v54 = vrot.slane %v5087_v22, 1 }
  0x57   : > { %4328 = vmatmul.mubr.msk.bf16.gmra.mrb[4].mxu1 %vm391_vm1, %v2253_v49  ;;  %v5151_v49 = vld [vmem:[%s4970_s24 + $0x50] sm:$0xff]  }
  0x58   : > { %4331 = vmatprep.mubr.msk.bf16.mxu1 %vm391_vm1, %v2255_v61  ;;  %v991_v61 = vshrl.u32 %v5119_v43, 16  ;;  %v2636_v23 = vshrl.u32 %v5151_v49, 16 }
  0x5a   : > { %v993_v14 = vor.u32 %v991_v61, %v989_v45  ;;  %v2788_v61 = vrot.slane %v5131_v50, 1 }
  0x5d   : > { %4188 = vmatmul.mubr.msk.bf16.gmra.mrb[8].mxu0 %vm391_vm1, %v618_v0  ;;  %v982_v0 = vsel %vm326_vm0, %v977_v26, %v981_v17 }
  0x5e   : > { %4195 = vmatprep.mubr.msk.bf16.mxu0 %vm391_vm1, %v4682_v1  ;;  %v2622_v1 = vor.u32 %v2620_v55, %v2618_v60 }
  0x5f   : > { %4332 = vmatmul.mubr.msk.bf16.gmra.mrb[8].mxu1 %vm391_vm1, %v2257_v3  ;;  %v5161_v3 = vld [vmem:[%s4970_s24 + $0x58] sm:$0xff]  }
  0x60   : > { %4339 = vmatprep.mubr.msk.bf16.mxu1 %vm391_vm1, %v4684_v2  ;;  %v2644_v11 = vshrl.u32 %v5161_v3, 16 }
  0x65   : > { %4196 = vmatmul.mubr.msk.bf16.vlgmr.msra.gmra.mrb[0].mxu0 %vm391_vm1, %v4686_v4  ;;  %v990_v4 = vsel %vm326_vm0, %v985_v57, %v989_v45  ;;  %v1150_v45 = vrot.slane %v5111_v38, 1 }
  0x66   : > { %4208 = vmatpush3.bf16.msra.mxu0 %v4683_v56  ;;  %4199 = vmatprep.mubr.msk.bf16.mxu0 %vm391_vm1, %v4688_v10  ;;  %v2624_v56 = vshll.u32 %v5131_v50, 16  ;;  %v1003_v10 = vshll.u32 %v5147_v58, 16 }
  0x67   : > { %4209 = vmatprep.subr.bf16.mxu0 %v4692_v5  ;;  %4340 = vmatmul.mubr.msk.bf16.vlgmr.msra.gmra.mrb[0].mxu1 %vm391_vm1, %v4687_v13  ;;  %v2632_v13 = vshll.u32 %v5151_v49, 16 }
  0x68   : > { %4352 = vmatpush3.bf16.msra.mxu1 %v4685_v59  ;;  %4343 = vmatprep.mubr.msk.bf16.mxu1 %vm391_vm1, %v4689_v20  ;;  %v2614_v59 = vor.u32 %v2612_v53, %v2610_v9  ;;  %v2626_v2 = vrot.slane %v2624_v56, 1  ;;  %v2628_v20 = vshrl.u32 %v5131_v50, 16  ;;  %v1005_v33 = vrot.slane %v1003_v10, 1  ;;  %v4721_v50 = vld [vmem:[%s5537_s2 + $0x68] sm:$0xff]  }
  0x69   : > { %4353 = vmatprep.subr.bf16.mxu1 %v4693_v21  ;;  %v2634_v36 = vrot.slane %v2632_v13, 1  ;;  %v2648_v9 = vshll.u32 %v5190_v18, 16  ;;  %v2784_v56 = vrot.slane %v5100_v31, 1  ;;  %v2786_v31 = vrot.slane %v5125_v7, 1 }
  0x6a   : > { %4210 = vmatpush3.bf16.msra.mxu0 %v4692_v5  ;;  %v2619_v5 = vsel %vm326_vm0, %v2614_v59, %v2618_v60  ;;  %v2627_v24 = vsel %vm326_vm0, %v2622_v1, %v2626_v2  ;;  %v1009_v51 = vor.u32 %v1007_v41, %v1005_v33  ;;  %v1152_v59 = vrot.slane %v5119_v43, 1  ;;  %v4723_v1 = vld [vmem:[%s5537_s2 + $0x70] sm:$0xff]   ;;  %v4730_v41 = vld [vmem:[%s4846_s6 + $0x24] sm:$0xff]  }
  0x6b   : > { %4223 = vmatprep.subr.bf16.mxu0 %v5093_v25  ;;  %v2638_v39 = vor.u32 %v2636_v23, %v2634_v36  ;;  %v2650_v26 = vrot.slane %v2648_v9, 1  ;;  %v1151_v60 = vsel %vm605_vm2, %v1148_v54, %v1150_v45  ;;  %v2787_v38 = vsel %vm605_vm2, %v2784_v56, %v2786_v31  ;;  %v5266_v23 = vld [vmem:[%s4846_s6 + $0x10] sm:$0xf]  ;;  %v4731_v9 = vld [vmem:[%s4846_s6 + $0x54] sm:$0xff]  }
  0x6c   : > { %4354 = vmatpush3.bf16.msra.mxu1 %v4693_v21  ;;  %v4711_v21 = vld [vmem:[%s5537_s2 + $0x58] sm:$0xff]   ;;  %v1153_v62 = vsel %vm605_vm2, %v1150_v45, %v1152_v59  ;;  %v2789_v43 = vsel %vm605_vm2, %v2786_v31, %v2788_v61  ;;  %v1154_v7 = vrot.slane %v5140_v30, 1 }
  0x6d   : > { %4200 = vmatmul.mubr.msk.bf16.gmra.mrb[4].mxu0 %vm391_vm1, %v4690_v27  ;;  %4367 = vmatprep.subr.bf16.mxu1 %v5105_v34  ;;  %v2640_v27 = vshll.u32 %v5161_v3, 16  ;;  %v5330_v45 = vld [vmem:[%s4846_s6 + $0x54] sm:$0xff]  }
  0x6e   : > { %4203 = vmatprep.mubr.msk.bf16.mxu0 %vm391_vm1, %v4694_v28  ;;  %v5179_v28 = vld [vmem:[%s4970_s24 + $0x30] ss:$0 sps:$4 sm:$0x11]   ;;  %v1155_v30 = vsel %vm605_vm2, %v1152_v59, %v1154_v7 }
  0x6f   : > { %4344 = vmatmul.mubr.msk.bf16.gmra.mrb[4].mxu1 %vm391_vm1, %v4691_v37  ;;  %v998_v37 = vsel %vm326_vm0, %v993_v14, %v997_v15  ;;  %v2642_v40 = vrot.slane %v2640_v27, 1  ;;  %v1011_v42 = vshll.u32 %v5179_v28, 16  ;;  %v4722_v14 = vld [vmem:[%s4846_s6 + $0xc] sm:$0xff]   ;;  %v4728_v27 = vld [vmem:[%s4846_s6 + $0x1c] sm:$0xff]  }
  0x70   : > { %4347 = vmatprep.mubr.msk.bf16.mxu1 %vm391_vm1, %v4695_v8  ;;  %v2630_v8 = vor.u32 %v2628_v20, %v2626_v2  ;;  %v2790_v2 = vrot.slane %v5151_v49, 1  ;;  %v4724_v20 = vld [vmem:[%s4846_s6 + $0x3c] sm:$0xff]  }
  0x71   : > { %v1013_v52 = vrot.slane %v1011_v42, 1  ;;  %v2646_v17 = vor.u32 %v2644_v11, %v2642_v40  ;;  %v4734_v42 = vld [vmem:[%s4846_s6 + $0x2c] sm:$0xff]  }
  0x72   : > { %v2635_v48 = vsel %vm326_vm0, %v2630_v8, %v2634_v36  ;;  %v2791_v10 = vsel %vm605_vm2, %v2788_v61, %v2790_v2  ;;  %v4727_v36 = vld [vmem:[%s4846_s6 + $0x44] sm:$0xff]  }
  0x73   : > { %v4737_v61 = vld [vmem:[%s4846_s6 + $0x64] sm:$0xff]  }
  0x75   : > { %4204 = vmatmul.mubr.msk.bf16.gmra.mrb[8].mxu0 %vm391_vm1, %v4696_v44  ;;  %v4719_v44 = vld [vmem:[%s5537_s2 + $0x60] sm:$0xff]  }
  0x76   : > { %4211 = vmatprep.mubr.msk.bf16.mxu0 %vm391_vm1, %v974_v16  ;;  %v2643_v16 = vsel %vm326_vm0, %v2638_v39, %v2642_v40  ;;  %v5293_v40 = vld [vmem:[%s5537_s2 + $0x80] sm:$0xff]  }
  0x77   : > { %4348 = vmatmul.mubr.msk.bf16.gmra.mrb[8].mxu1 %vm391_vm1, %v4697_v47  ;;  %v2775_v47 = vld [vmem:[%s4970_s24 + $0x30] sm:$0xe] }
  0x78   : > { %4355 = vmatprep.mubr.msk.bf16.mxu1 %vm391_vm1, %v2611_v32  ;;  %v3902_v53 = vcombine.low %v2775_v47, %v5078_v19  ;;  %v1014_v32 = vsel %vm326_vm0, %v1009_v51, %v1013_v52  ;;  %v2651_v19 = vsel %vm326_vm0, %v2646_v17, %v2650_v26  ;;  %v5313_v51 = vld [vmem:[%s4846_s6 + $0x1c] sm:$0xff]   ;;  %v5319_v26 = vld [vmem:[%s4846_s6 + $0x24] sm:$0xff]  }
  0x79   : > { %v1524_v31 = vshrl.u32 %v5313_v51, 16 }
  0x7a   : > { %v2783_v55 = vrot.slane %v3902_v53, 1 }
  0x7c   : > { %v2785_v22 = vsel %vm605_vm2, %v2783_v55, %v2784_v56  ;;  %v4736_v55 = vld [vmem:[%s4846_s6 + $0x34] sm:$0xff]   ;;  %v1520_v56 = vshll.u32 %v5313_v51, 16 }
  0x7d   : > { %4212 = vmatmul.mubr.msk.bf16.vlgmr.msra.gmra.mrb[0].mxu0 %vm391_vm1, %v982_v0  ;;  %v1156_v0 = vrot.slane %v5147_v58, 1  ;;  %v4725_v58 = vld [vmem:[%s5537_s2 + $0x70] sm:$0xff]  }
  0x7e   : > { %4224 = vmatpush3.bf16.msra.mxu0 %v5093_v25  ;;  %4215 = vmatprep.mubr.msk.bf16.mxu0 %vm391_vm1, %v990_v4  ;;  %v1138_v25 = vld [vmem:[%s4970_s24] sm:$0xe]  ;;  %v2792_v4 = vrot.slane %v5161_v3, 1  ;;  %v1158_v3 = vrot.slane %v5179_v28, 1  ;;  %v4732_v28 = vld [vmem:[%s5537_s2 + $0x78] sm:$0xff]   ;;  %s4625_s24 = smul.u32 96, %s5545_s15 }
  0x7f   : > { %4225 = vmatprep.subr.bf16.mxu0 %v4710_v63  ;;  %4356 = vmatmul.mubr.msk.bf16.vlgmr.msra.gmra.mrb[0].mxu1 %vm391_vm1, %v2619_v5  ;;  %v3749_v46 = vcombine.low %v1138_v25, %v5068_v12  ;;  %v1157_v6 = vsel %vm605_vm2, %v1154_v7, %v1156_v0  ;;  %v2794_v5 = vrot.slane %v5190_v18, 1  ;;  %v4729_v25 = vld [vmem:[%s4846_s6 + $0x4c] sm:$0xff]   ;;  %v5288_v18 = vld [vmem:[%s4846_s6 + $0x14] sm:$0xff]  }
  0x80   : > { %4368 = vmatpush3.bf16.msra.mxu1 %v5105_v34  ;;  %4359 = vmatprep.mubr.msk.bf16.mxu1 %vm391_vm1, %v2627_v24  ;;  %v1006_v34 = vsel %vm326_vm0, %v1001_v29, %v1005_v33  ;;  %v2793_v49 = vsel %vm605_vm2, %v2790_v2, %v2792_v4  ;;  %v1159_v13 = vsel %vm605_vm2, %v1156_v0, %v1158_v3  ;;  %v4726_v24 = vld [vmem:[%s4846_s6 + $0x14] sm:$0xff]   ;;  %v3088_v33 = vld [vmem:[%s4846_s6 + $0x3c] sm:$0xf]  ;;  %v1512_v11 = vshll.u32 %v5288_v18, 16  ;;  %s5455_s14 = scalar_lea.vmem %s5539_s4, %s4625_s24 }
  0x81   : > { %4369 = vmatprep.subr.bf16.mxu1 %v4711_v21  ;;  %v1147_v12 = vrot.slane %v3749_v46, 1  ;;  %v2795_v15 = vsel %vm605_vm2, %v2792_v4, %v2794_v5  ;;  %v5305_v46 = vld [vmem:[%s5537_s2 + $0x80] sm:$0xff]   ;;  %v5347_v4 = vld [vmem:[%s4846_s6 + $0x34] sm:$0xff]  }
  0x82   : > { %4226 = vmatpush3.bf16.msra.mxu0 %v4710_v63  ;;  %v4720_v63 = vld [vmem:[%s5537_s2 + $0x68] sm:$0xff]   ;;  %v1514_v17 = vrot.slane %v1512_v11, 1 }
  0x83   : > { %4239 = vmatprep.subr.bf16.mxu0 %v4717_v35  ;;  %v1149_v57 = vsel %vm605_vm2, %v1147_v12, %v1148_v54 }
  0x84   : > { %4370 = vmatpush3.bf16.msra.mxu1 %v4711_v21  ;;  %v1453_v21 = vld [vmem:[%s4846_s6 + $0xc] sm:$0xf] }
  0x85   : > { %4216 = vmatmul.mubr.msk.bf16.gmra.mrb[4].mxu0 %vm391_vm1, %v998_v37  ;;  %4383 = vmatprep.subr.bf16.mxu1 %v4719_v44  ;;  %v3780_v29 = vcombine.low %v1453_v21, %v5266_v23  ;;  %v4733_v37 = vld [vmem:[%s5537_s2 + $0x78] sm:$0xff]   ;;  %v4750_v21 = vld [vmem:[%s5537_s2 + $0x88] sm:$0xff]  }
  0x86   : > { %4219 = vmatprep.mubr.msk.bf16.mxu0 %vm391_vm1, %v1006_v34 }
  0x87   : > { %4360 = vmatmul.mubr.msk.bf16.gmra.mrb[4].mxu1 %vm391_vm1, %v2635_v48  ;;  %v1507_v39 = vshll.u32 %v3780_v29, 16  ;;  %v1505_v47 = vshrl.u32 %v3780_v29, 16 }
  0x88   : > { %4363 = vmatprep.mubr.msk.bf16.mxu1 %vm391_vm1, %v2643_v16  ;;  %v4735_v16 = vld [vmem:[%s4846_s6 + $0x5c] sm:$0xff]  }
  0x89   : > { %v1509_v48 = vrot.slane %v1507_v39, 1 }
  0x8b   : > { %v1510_v54 = vor.u32 %v1509_v48, %v1505_v47  ;;  %v1679_v48 = vld [vmem:[%s4846_s6 + $0xc] sm:$0xe] }
  0x8d   : > { %4220 = vmatmul.mubr.msk.bf16.gmra.mrb[8].mxu0 %vm391_vm1, %v1014_v32  ;;  %v5323_v32 = vld [vmem:[%s4846_s6 + $0x4c] sm:$0xff]   ;;  %v1515_v59 = vsel %vm326_vm0, %v1510_v54, %v1514_v17 }
  0x8e   : > { %4227 = vmatprep.mubr.msk.bf16.mxu0 %vm391_vm1, %v1149_v57  ;;  %v1516_v57 = vshrl.u32 %v5288_v18, 16  ;;  %v3158_v0 = vshrl.u32 %v5323_v32, 16 }
  0x8f   : > { %4364 = vmatmul.mubr.msk.bf16.gmra.mrb[8].mxu1 %vm391_vm1, %v2651_v19 }
  0x90   : > { %4371 = vmatprep.mubr.msk.bf16.mxu1 %vm391_vm1, %v2785_v22  ;;  %v1518_v7 = vor.u32 %v1516_v57, %v1514_v17 }
  0x95   : > { %4228 = vmatmul.mubr.msk.bf16.vlgmr.msra.gmra.mrb[0].mxu0 %vm391_vm1, %v1151_v60  ;;  %v1528_v60 = vshll.u32 %v5319_v26, 16 }
  0x96   : > { %4240 = vmatpush3.bf16.msra.mxu0 %v4717_v35  ;;  %4231 = vmatprep.mubr.msk.bf16.mxu0 %vm391_vm1, %v1153_v62  ;;  %v5277_v35 = vld [vmem:[%s4846_s6 + $0x40] sm:$0xf]  ;;  %v3154_v62 = vshll.u32 %v5323_v32, 16 }
  0x97   : > { %4241 = vmatprep.subr.bf16.mxu0 %v4720_v63  ;;  %4372 = vmatmul.mubr.msk.bf16.vlgmr.msra.gmra.mrb[0].mxu1 %vm391_vm1, %v2787_v38  ;;  %v3933_v8 = vcombine.low %v3088_v33, %v5277_v35  ;;  %v1522_v38 = vrot.slane %v1520_v56, 1 }
  0x98   : > { %4384 = vmatpush3.bf16.msra.mxu1 %v4719_v44  ;;  %4375 = vmatprep.mubr.msk.bf16.mxu1 %vm391_vm1, %v2789_v43  ;;  %v5300_v44 = vld [vmem:[%s4846_s6 + $0x44] sm:$0xff]   ;;  %v5340_v43 = vld [vmem:[%s4846_s6 + $0x2c] sm:$0xff]  }
  0x99   : > { %4385 = vmatprep.subr.bf16.mxu1 %v4721_v50  ;;  %v3141_v34 = vshll.u32 %v3933_v8, 16  ;;  %v3139_v52 = vshrl.u32 %v3933_v8, 16  ;;  %v3146_v12 = vshll.u32 %v5300_v44, 16  ;;  %v1526_v2 = vor.u32 %v1524_v31, %v1522_v38  ;;  %v4751_v8 = vld [vmem:[%s5537_s2 + $0x88] sm:$0xff]  }
  0x9a   : > { %4242 = vmatpush3.bf16.msra.mxu0 %v4720_v63  ;;  %v3150_v63 = vshrl.u32 %v5300_v44, 16  ;;  %v1536_v3 = vshll.u32 %v5340_v43, 16  ;;  %v1523_v5 = vsel %vm326_vm0, %v1518_v7, %v1522_v38 }
  0x9b   : > { %4255 = vmatprep.subr.bf16.mxu0 %v4723_v1  ;;  %v3143_v53 = vrot.slane %v3141_v34, 1  ;;  %v3148_v22 = vrot.slane %v3146_v12, 1  ;;  %v1548_v12 = vshrl.u32 %v5347_v4, 16 }
  0x9c   : > { %4386 = vmatpush3.bf16.msra.mxu1 %v4721_v50 }
  0x9d   : > { %4232 = vmatmul.mubr.msk.bf16.gmra.mrb[4].mxu0 %vm391_vm1, %v1155_v30  ;;  %4399 = vmatprep.subr.bf16.mxu1 %v4725_v58  ;;  %v3144_v19 = vor.u32 %v3143_v53, %v3139_v52  ;;  %v1530_v30 = vrot.slane %v1528_v60, 1 }
  0x9e   : > { %4235 = vmatprep.mubr.msk.bf16.mxu0 %vm391_vm1, %v1157_v6  ;;  %v5351_v6 = vld [vmem:[%s4846_s6 + $0x5c] sm:$0xff]  }
  0x9f   : > { %4376 = vmatmul.mubr.msk.bf16.gmra.mrb[4].mxu1 %vm391_vm1, %v2791_v10  ;;  %v3149_v50 = vsel %vm326_vm0, %v3144_v19, %v3148_v22  ;;  %v3152_v10 = vor.u32 %v3150_v63, %v3148_v22  ;;  %v3174_v39 = vshrl.u32 %v5351_v6, 16 }
  0xa0   : > { %4379 = vmatprep.mubr.msk.bf16.mxu1 %vm391_vm1, %v2793_v49  ;;  %v1532_v49 = vshrl.u32 %v5319_v26, 16 }
  0xa2   : > { %v1534_v33 = vor.u32 %v1532_v49, %v1530_v30 }
  0xa5   : > { %4236 = vmatmul.mubr.msk.bf16.gmra.mrb[8].mxu0 %vm391_vm1, %v1159_v13 }
  0xa6   : > { %4243 = vmatprep.mubr.msk.bf16.mxu0 %vm391_vm1, %v4722_v14 }
  0xa7   : > { %4380 = vmatmul.mubr.msk.bf16.gmra.mrb[8].mxu1 %vm391_vm1, %v2795_v15  ;;  %v5358_v15 = vld [vmem:[%s4846_s6 + $0x64] sm:$0xff]  }
  0xa8   : > { %4387 = vmatprep.mubr.msk.bf16.mxu1 %vm391_vm1, %v4724_v20  ;;  %v1531_v20 = vsel %vm326_vm0, %v1526_v2, %v1530_v30  ;;  %v3182_v57 = vshrl.u32 %v5358_v15, 16  ;;  %v1693_v2 = vrot.slane %v5319_v26, 1  ;;  %v1695_v26 = vrot.slane %v5340_v43, 1 }
  0xad   : > { %4244 = vmatmul.mubr.msk.bf16.vlgmr.msra.gmra.mrb[0].mxu0 %vm391_vm1, %v4726_v24  ;;  %v1540_v24 = vshrl.u32 %v5340_v43, 16 }
  0xae   : > { %4256 = vmatpush3.bf16.msra.mxu0 %v4723_v1  ;;  %4247 = vmatprep.mubr.msk.bf16.mxu0 %vm391_vm1, %v4728_v27  ;;  %v3162_v1 = vshll.u32 %v5330_v45, 16  ;;  %v1544_v27 = vshll.u32 %v5347_v4, 16 }
  0xaf   : > { %4257 = vmatprep.subr.bf16.mxu0 %v4732_v28  ;;  %4388 = vmatmul.mubr.msk.bf16.vlgmr.msra.gmra.mrb[0].mxu1 %vm391_vm1, %v4727_v36  ;;  %v1538_v36 = vrot.slane %v1536_v3, 1  ;;  %v1697_v3 = vrot.slane %v5347_v4, 1 }
  0xb0   : > { %4400 = vmatpush3.bf16.msra.mxu1 %v4725_v58  ;;  %4391 = vmatprep.mubr.msk.bf16.mxu1 %vm391_vm1, %v4729_v25  ;;  %v3156_v58 = vrot.slane %v3154_v62, 1  ;;  %v3164_v14 = vrot.slane %v3162_v1, 1  ;;  %v3166_v25 = vshrl.u32 %v5330_v45, 16  ;;  %v1546_v47 = vrot.slane %v1544_v27, 1 }
  0xb1   : > { %4401 = vmatprep.subr.bf16.mxu1 %v4733_v37  ;;  %v1542_v34 = vor.u32 %v1540_v24, %v1538_v36  ;;  %v1539_v11 = vsel %vm326_vm0, %v1534_v33, %v1538_v36  ;;  %v1691_v1 = vrot.slane %v5313_v51, 1 }
  0xb2   : > { %4258 = vmatpush3.bf16.msra.mxu0 %v4732_v28  ;;  %v3160_v13 = vor.u32 %v3158_v0, %v3156_v58  ;;  %v3170_v28 = vshll.u32 %v5351_v6, 16  ;;  %v3157_v29 = vsel %vm326_vm0, %v3152_v10, %v3156_v58  ;;  %v3326_v58 = vrot.slane %v5330_v45, 1 }
  0xb3   : > { %4271 = vmatprep.subr.bf16.mxu0 %v5293_v40  ;;  %v1547_v17 = vsel %vm326_vm0, %v1542_v34, %v1546_v47  ;;  %v1694_v10 = vsel %vm605_vm2, %v1691_v1, %v1693_v2  ;;  %v1696_v45 = vsel %vm605_vm2, %v1693_v2, %v1695_v26 }
  0xb4   : > { %4402 = vmatpush3.bf16.msra.mxu1 %v4733_v37  ;;  %v3165_v37 = vsel %vm326_vm0, %v3160_v13, %v3164_v14  ;;  %v1698_v13 = vsel %vm605_vm2, %v1695_v26, %v1697_v3 }
  0xb5   : > { %4248 = vmatmul.mubr.msk.bf16.gmra.mrb[4].mxu0 %vm391_vm1, %v4730_v41  ;;  %4415 = vmatprep.subr.bf16.mxu1 %v5305_v46  ;;  %v3178_v41 = vshll.u32 %v5358_v15, 16 }
  0xb6   : > { %4251 = vmatprep.mubr.msk.bf16.mxu0 %vm391_vm1, %v4734_v42  ;;  %v5379_v42 = vld [vmem:[%s4846_s6 + $0x3c] ss:$0 sps:$4 sm:$0x11]  }
  0xb7   : > { %4392 = vmatmul.mubr.msk.bf16.gmra.mrb[4].mxu1 %vm391_vm1, %v4731_v9  ;;  %v3168_v9 = vor.u32 %v3166_v25, %v3164_v14  ;;  %v3180_v53 = vrot.slane %v3178_v41, 1  ;;  %v1552_v54 = vshll.u32 %v5379_v42, 16  ;;  %v1699_v4 = vrot.slane %v5379_v42, 1 }
  0xb8   : > { %4395 = vmatprep.mubr.msk.bf16.mxu1 %vm391_vm1, %v4735_v16  ;;  %v5387_v16 = vld [vmem:[%s4846_s6 + $0x6c] ss:$0 sps:$4 sm:$0x11]  }
  0xb9   : > { %v3186_v19 = vshll.u32 %v5387_v16, 16  ;;  %v1554_v31 = vrot.slane %v1552_v54, 1  ;;  %v3184_v62 = vor.u32 %v3182_v57, %v3180_v53 }
  0xbb   : > { %v3188_v63 = vrot.slane %v3186_v19, 1 }
  0xbd   : > { %4252 = vmatmul.mubr.msk.bf16.gmra.mrb[8].mxu0 %vm391_vm1, %v4736_v55  ;;  %v3799_v55 = vcombine.low %v1679_v48, %v5266_v23  ;;  %v1689_v23 = vrot.slane %v5288_v18, 1 }
  0xbe   : > { %4259 = vmatprep.mubr.msk.bf16.mxu0 %vm391_vm1, %v1515_v59  ;;  %v1550_v59 = vor.u32 %v1548_v12, %v1546_v47 }
  0xbf   : > { %4396 = vmatmul.mubr.msk.bf16.gmra.mrb[8].mxu1 %vm391_vm1, %v4737_v61  ;;  %v1688_v61 = vrot.slane %v3799_v55, 1  ;;  %v1692_v30 = vsel %vm605_vm2, %v1689_v23, %v1691_v1 }
  0xc0   : > { %4403 = vmatprep.mubr.msk.bf16.mxu1 %vm391_vm1, %v3149_v50  ;;  %v1555_v38 = vsel %vm326_vm0, %v1550_v59, %v1554_v31  ;;  %v3322_v50 = vrot.slane %v5300_v44, 1  ;;  %v3324_v44 = vrot.slane %v5323_v32, 1  ;;  %v3328_v32 = vrot.slane %v5351_v6, 1 }
  0xc1   : > { %v1690_v0 = vsel %vm605_vm2, %v1688_v61, %v1689_v23  ;;  %v3332_v6 = vrot.slane %v5387_v16, 1 }
  0xc2   : > { %v3325_v49 = vsel %vm605_vm2, %v3322_v50, %v3324_v44  ;;  %v3327_v51 = vsel %vm605_vm2, %v3324_v44, %v3326_v58  ;;  %v3329_v14 = vsel %vm605_vm2, %v3326_v58, %v3328_v32 }
  0xc5   : > { %4260 = vmatmul.mubr.msk.bf16.vlgmr.msra.gmra.mrb[0].mxu0 %vm391_vm1, %v1523_v5  ;;  %v3330_v5 = vrot.slane %v5358_v15, 1  ;;  %v1700_v15 = vsel %vm605_vm2, %v1697_v3, %v1699_v4 }
  0xc6   : > { %4272 = vmatpush3.bf16.msra.mxu0 %v5293_v40  ;;  %4263 = vmatprep.mubr.msk.bf16.mxu0 %vm391_vm1, %v1531_v20  ;;  %v3172_v40 = vrot.slane %v3170_v28, 1 }
  0xc7   : > { %4273 = vmatprep.subr.bf16.mxu0 %v4750_v21  ;;  %4404 = vmatmul.mubr.msk.bf16.vlgmr.msra.gmra.mrb[0].mxu1 %vm391_vm1, %v3157_v29  ;;  %v3331_v43 = vsel %vm605_vm2, %v3328_v32, %v3330_v5  ;;  %v3333_v20 = vsel %vm605_vm2, %v3330_v5, %v3332_v6 }
  0xc8   : > { %4416 = vmatpush3.bf16.msra.mxu1 %v5305_v46  ;;  %4407 = vmatprep.mubr.msk.bf16.mxu1 %vm391_vm1, %v3165_v37  ;;  %v3176_v52 = vor.u32 %v3174_v39, %v3172_v40  ;;  %v3313_v46 = vld [vmem:[%s4846_s6 + $0x3c] sm:$0xe]  ;;  %v3173_v56 = vsel %vm326_vm0, %v3168_v9, %v3172_v40 }
  0xc9   : > { %4417 = vmatprep.subr.bf16.mxu1 %v4751_v8  ;;  %v3952_v60 = vcombine.low %v3313_v46, %v5277_v35  ;;  %v3189_v35 = vsel %vm326_vm0, %v3184_v62, %v3188_v63 }
  0xca   : > { %4274 = vmatpush3.bf16.msra.mxu0 %v4750_v21  ;;  %v3181_v22 = vsel %vm326_vm0, %v3176_v52, %v3180_v53  ;;  %v5446_v21 = vld [vmem:[%s5538_s3] ss:$0 sm:$0xff] }
  0xcb   : > { %v3321_v7 = vrot.slane %v3952_v60, 1 }
  0xcc   : > { %4418 = vmatpush3.bf16.msra.mxu1 %v4751_v8 }
  0xcd   : > { %4264 = vmatmul.mubr.msk.bf16.gmra.mrb[4].mxu0 %vm391_vm1, %v1539_v11  ;;  %v3323_v18 = vsel %vm605_vm2, %v3321_v7, %v3322_v50 }
  0xce   : > { %4267 = vmatprep.mubr.msk.bf16.mxu0 %vm391_vm1, %v1547_v17 }
  0xcf   : > { %4408 = vmatmul.mubr.msk.bf16.gmra.mrb[4].mxu1 %vm391_vm1, %v3173_v56 }
  0xd0   : > { %4411 = vmatprep.mubr.msk.bf16.mxu1 %vm391_vm1, %v3181_v22 }
  0xd5   : > { %4268 = vmatmul.mubr.msk.bf16.gmra.mrb[8].mxu0 %vm391_vm1, %v1555_v38 }
  0xd6   : > { %4275 = vmatprep.mubr.msk.bf16.mxu0 %vm391_vm1, %v1690_v0 }
  0xd7   : > { %4412 = vmatmul.mubr.msk.bf16.gmra.mrb[8].mxu1 %vm391_vm1, %v3189_v35 }
  0xd8   : > { %4419 = vmatprep.mubr.msk.bf16.mxu1 %vm391_vm1, %v3323_v18 }
  0xdd   : > { %4276 = vmatmul.mubr.msk.bf16.vlgmr.msra.gmra.mrb[0].mxu0 %vm391_vm1, %v1692_v30 }
  0xde   : > { %4279 = vmatprep.mubr.msk.bf16.mxu0 %vm391_vm1, %v1694_v10 }
  0xdf   : > { %4420 = vmatmul.mubr.msk.bf16.vlgmr.msra.gmra.mrb[0].mxu1 %vm391_vm1, %v3325_v49 }
  0xe0   : > { %4423 = vmatprep.mubr.msk.bf16.mxu1 %vm391_vm1, %v3327_v51 }
  0xe5   : > { %4280 = vmatmul.mubr.msk.bf16.gmra.mrb[4].mxu0 %vm391_vm1, %v1696_v45 }
  0xe6   : > { %4283 = vmatprep.mubr.msk.bf16.mxu0 %vm391_vm1, %v1698_v13 }
  0xe7   : > { %4424 = vmatmul.mubr.msk.bf16.gmra.mrb[4].mxu1 %vm391_vm1, %v3329_v14 }
  0xe8   : > { %4427 = vmatprep.mubr.msk.bf16.mxu1 %vm391_vm1, %v3331_v43 }
  0xed   : > { %4284 = vmatmul.mubr.msk.bf16.gmra.mrb[8].mxu0 %vm391_vm1, %v1700_v15 }
  0xef   : > { %4428 = vmatmul.mubr.msk.bf16.gmra.mrb[8].mxu1 %vm391_vm1, %v3333_v20 }
 0x1b0   : > { %v4277_v24 = vpop.f32.mrb[0].mxu0 }
 0x1b1   : > { %v1832_v27 = vadd.f32 %v4277_v24, %v5446_v21  ;;  %v1765_v28 = vpop.f32.mrb[1].mxu0 }
 0x1b2   : > { %v1830_v29 = vadd.f32 %v5446_v21, %v1765_v28  ;;  %v4278_v33 = vpop.f32.mrb[2].mxu0  ;;  %v4421_v25 = vpop.f32.mrb[0].mxu1 }
 0x1b3   : > { %v1844_v36 = vmax.f32 %v1832_v27, 0.0  ;;  %v1833_v37 = vadd.f32 %v4278_v33, %v5446_v21  ;;  %v1768_v8 = vpop.f32.mrb[3].mxu0  ;;  %v3459_v39 = vadd.f32 %v4421_v25, %v5446_v21  ;;  %v3398_v42 = vpop.f32.mrb[1].mxu1 }
 0x1b4   : > { %v1842_v41 = vmax.f32 %v1830_v29, 0.0  ;;  %v1831_v34 = vadd.f32 %v5446_v21, %v1768_v8  ;;  %v3457_v40 = vadd.f32 %v5446_v21, %v3398_v42  ;;  %v4422_v11 = vpop.f32.mrb[2].mxu1 }
 0x1b5   : > { %v3977_v47 = vpack.c.bf16 %v1844_v36, %v1844_v36  ;;  %v1845_v48 = vmax.f32 %v1833_v37, 0.0  ;;  %v3471_v9 = vmax.f32 %v3459_v39, 0.0  ;;  %v3460_v52 = vadd.f32 %v4422_v11, %v5446_v21  ;;  %v3401_v12 = vpop.f32.mrb[3].mxu1 }
 0x1b6   : > { %v3975_v16 = vpack.c.bf16 %v1842_v41, %v1842_v41  ;;  %v1843_v53 = vmax.f32 %v1831_v34, 0.0  ;;  %v3469_v54 = vmax.f32 %v3457_v40, 0.0  ;;  %v3458_v55 = vadd.f32 %v5446_v21, %v3401_v12 }
 0x1b7   : > { %1905 = vst.msk [vmem:[%s5455_s14 + $0x8] sm:$0xf] %vm1902_vm3, %v3977_v47  ;;  %v3978_v17 = vpack.c.bf16 %v1845_v48, %v1845_v48  ;;  %v3989_v46 = vpack.c.bf16 %v3471_v9, %v3471_v9  ;;  %v3472_v56 = vmax.f32 %v3460_v52, 0.0 }
 0x1b8   : > { %1903 = vst.msk [vmem:[%s5455_s14] sm:$0xf] %vm1902_vm3, %v3975_v16  ;;  %v3976_v57 = vpack.c.bf16 %v1843_v53, %v1843_v53  ;;  %v4281_v19 = vpop.f32.mrb[4].mxu0  ;;  %v3987_v22 = vpack.c.bf16 %v3469_v54, %v3469_v54  ;;  %v3470_v59 = vmax.f32 %v3458_v55, 0.0 }
 0x1b9   : > { %1906 = vst.msk [vmem:[%s5455_s14 + $0xc] sm:$0xf] %vm1902_vm3, %v3978_v17  ;;  %v1836_v31 = vadd.f32 %v4281_v19, %v5446_v21  ;;  %v1781_v60 = vpop.f32.mrb[5].mxu0  ;;  %3531 = vst.msk [vmem:[%s5455_s14 + $0x38] sm:$0xf] %vm1902_vm3, %v3989_v46  ;;  %v3990_v61 = vpack.c.bf16 %v3472_v56, %v3472_v56 }
 0x1ba   : > { %1904 = vst.msk [vmem:[%s5455_s14 + $0x4] sm:$0xf] %vm1902_vm3, %v3976_v57  ;;  %v1834_v23 = vadd.f32 %v5446_v21, %v1781_v60  ;;  %v4282_v62 = vpop.f32.mrb[6].mxu0  ;;  %3529 = vst.msk [vmem:[%s5455_s14 + $0x30] sm:$0xf] %vm1902_vm3, %v3987_v22  ;;  %v3988_v63 = vpack.c.bf16 %v3470_v59, %v3470_v59  ;;  %v4425_v7 = vpop.f32.mrb[4].mxu1 }
 0x1bb   : > { %v1848_v38 = vmax.f32 %v1836_v31, 0.0  ;;  %v1837_v50 = vadd.f32 %v4282_v62, %v5446_v21  ;;  %v1784_v0 = vpop.f32.mrb[7].mxu0  ;;  %3532 = vst.msk [vmem:[%s5455_s14 + $0x3c] sm:$0xf] %vm1902_vm3, %v3990_v61  ;;  %v3463_v35 = vadd.f32 %v4425_v7, %v5446_v21  ;;  %v3414_v1 = vpop.f32.mrb[5].mxu1 }
 0x1bc   : > { %v1846_v18 = vmax.f32 %v1834_v23, 0.0  ;;  %v1835_v2 = vadd.f32 %v5446_v21, %v1784_v0  ;;  %3530 = vst.msk [vmem:[%s5455_s14 + $0x34] sm:$0xf] %vm1902_vm3, %v3988_v63  ;;  %v3461_v30 = vadd.f32 %v5446_v21, %v3414_v1  ;;  %v4426_v10 = vpop.f32.mrb[6].mxu1 }
 0x1bd   : > { %v3981_v44 = vpack.c.bf16 %v1848_v38, %v1848_v38  ;;  %v1849_v58 = vmax.f32 %v1837_v50, 0.0  ;;  %v3475_v49 = vmax.f32 %v3463_v35, 0.0  ;;  %v3464_v26 = vadd.f32 %v4426_v10, %v5446_v21  ;;  %v3417_v32 = vpop.f32.mrb[7].mxu1 }
 0x1be   : > { %v3979_v51 = vpack.c.bf16 %v1846_v18, %v1846_v18  ;;  %v1847_v3 = vmax.f32 %v1835_v2, 0.0  ;;  %v3473_v45 = vmax.f32 %v3461_v30, 0.0  ;;  %v3462_v13 = vadd.f32 %v5446_v21, %v3417_v32 }
 0x1bf   : > { %1909 = vst.msk [vmem:[%s5455_s14 + $0x18] sm:$0xf] %vm1902_vm3, %v3981_v44  ;;  %v3982_v5 = vpack.c.bf16 %v1849_v58, %v1849_v58  ;;  %v3993_v14 = vpack.c.bf16 %v3475_v49, %v3475_v49  ;;  %v3476_v43 = vmax.f32 %v3464_v26, 0.0 }
 0x1c0   : > { %1907 = vst.msk [vmem:[%s5455_s14 + $0x10] sm:$0xf] %vm1902_vm3, %v3979_v51  ;;  %v3980_v4 = vpack.c.bf16 %v1847_v3, %v1847_v3  ;;  %v4285_v6 = vpop.f32.mrb[8].mxu0  ;;  %v3991_v15 = vpack.c.bf16 %v3473_v45, %v3473_v45  ;;  %v3474_v20 = vmax.f32 %v3462_v13, 0.0 }
 0x1c1   : > { %1910 = vst.msk [vmem:[%s5455_s14 + $0x1c] sm:$0xf] %vm1902_vm3, %v3982_v5  ;;  %v1840_v24 = vadd.f32 %v4285_v6, %v5446_v21  ;;  %v1797_v27 = vpop.f32.mrb[9].mxu0  ;;  %3535 = vst.msk [vmem:[%s5455_s14 + $0x48] sm:$0xf] %vm1902_vm3, %v3993_v14  ;;  %v3994_v28 = vpack.c.bf16 %v3476_v43, %v3476_v43 }
 0x1c2   : > { %1908 = vst.msk [vmem:[%s5455_s14 + $0x14] sm:$0xf] %vm1902_vm3, %v3980_v4  ;;  %v1838_v29 = vadd.f32 %v5446_v21, %v1797_v27  ;;  %v4286_v33 = vpop.f32.mrb[10].mxu0  ;;  %3533 = vst.msk [vmem:[%s5455_s14 + $0x40] sm:$0xf] %vm1902_vm3, %v3991_v15  ;;  %v3992_v36 = vpack.c.bf16 %v3474_v20, %v3474_v20  ;;  %v4429_v37 = vpop.f32.mrb[8].mxu1 }
 0x1c3   : > { %v1852_v25 = vmax.f32 %v1840_v24, 0.0  ;;  %v1841_v8 = vadd.f32 %v4286_v33, %v5446_v21  ;;  %v1800_v39 = vpop.f32.mrb[11].mxu0  ;;  %3536 = vst.msk [vmem:[%s5455_s14 + $0x4c] sm:$0xf] %vm1902_vm3, %v3994_v28  ;;  %v3467_v41 = vadd.f32 %v4429_v37, %v5446_v21  ;;  %v3430_v34 = vpop.f32.mrb[9].mxu1 }
 0x1c4   : > { %v1850_v42 = vmax.f32 %v1838_v29, 0.0  ;;  %v1839_v47 = vadd.f32 %v5446_v21, %v1800_v39  ;;  %3534 = vst.msk [vmem:[%s5455_s14 + $0x44] sm:$0xf] %vm1902_vm3, %v3992_v36  ;;  %v3465_v48 = vadd.f32 %v5446_v21, %v3430_v34  ;;  %v4430_v9 = vpop.f32.mrb[10].mxu1 }
 0x1c5   : > { %v3985_v40 = vpack.c.bf16 %v1852_v25, %v1852_v25  ;;  %v1853_v11 = vmax.f32 %v1841_v8, 0.0  ;;  %v3479_v16 = vmax.f32 %v3467_v41, 0.0  ;;  %v3468_v53 = vadd.f32 %v4430_v9, %v5446_v21  ;;  %v3433_v54 = vpop.f32.mrb[11].mxu1 }
 0x1c6   : > { %v3983_v52 = vpack.c.bf16 %v1850_v42, %v1850_v42  ;;  %v1851_v12 = vmax.f32 %v1839_v47, 0.0  ;;  %v3477_v17 = vmax.f32 %v3465_v48, 0.0  ;;  %v3466_v46 = vadd.f32 %v5446_v21, %v3433_v54 }
 0x1c7   : > { %1913 = vst.msk [vmem:[%s5455_s14 + $0x28] sm:$0xf] %vm1902_vm3, %v3985_v40  ;;  %v3986_v55 = vpack.c.bf16 %v1853_v11, %v1853_v11  ;;  %v3997_v56 = vpack.c.bf16 %v3479_v16, %v3479_v16  ;;  %v3480_v57 = vmax.f32 %v3468_v53, 0.0 }
 0x1c8   : > { %1911 = vst.msk [vmem:[%s5455_s14 + $0x20] sm:$0xf] %vm1902_vm3, %v3983_v52  ;;  %v3984_v19 = vpack.c.bf16 %v1851_v12, %v1851_v12  ;;  %v3995_v22 = vpack.c.bf16 %v3477_v17, %v3477_v17  ;;  %v3478_v59 = vmax.f32 %v3466_v46, 0.0 }
 0x1c9   : > { %1914 = vst.msk [vmem:[%s5455_s14 + $0x2c] sm:$0xf] %vm1902_vm3, %v3986_v55  ;;  %3539 = vst.msk [vmem:[%s5455_s14 + $0x58] sm:$0xf] %vm1902_vm3, %v3997_v56  ;;  %v3998_v31 = vpack.c.bf16 %v3480_v57, %v3480_v57 }
 0x1ca   : > { %1912 = vst.msk [vmem:[%s5455_s14 + $0x24] sm:$0xf] %vm1902_vm3, %v3984_v19  ;;  %3537 = vst.msk [vmem:[%s5455_s14 + $0x50] sm:$0xf] %vm1902_vm3, %v3995_v22  ;;  %v3996_v60 = vpack.c.bf16 %v3478_v59, %v3478_v59 }
 0x1cb   : > { %3540 = vst.msk [vmem:[%s5455_s14 + $0x5c] sm:$0xf] %vm1902_vm3, %v3998_v31 }
 0x1cc   : > { %3538 = vst.msk [vmem:[%s5455_s14 + $0x54] sm:$0xf] %vm1902_vm3, %v3996_v60 }
 0x1cd PF: > { %s14_s17 = sadd.s32 1, %s4780_s17   ;;  %s5540_s15 = smov %s4776_s16 }
 0x1ce   : > { %p11_p5 = scmp.ge.s32.totalorder %s14_s17, 4   ;;  %s5541_s16 = smov %s5543_s18 }
 0x1d0   :  { %13 = sbr.rel (!%p11_p5) target bundleno = 2 (0x2), region = 83 }

// kernel: _lambda_.10
= control target key start
LH: loop header
LB: loop body
LE: loop exit
PB: predicated region body
PF: predicated region fallthrough
CT: control target
= control target key end

     0   :  { %s3104_s12 = smov 0   ;;  %s3106_s13 = smov 0   ;;  %s3670_s0 = inlined_call_operand.vmem [shape: bf16[2,176,32], index: 0, kind: input, shape index: {}]   ;;  %s3671_s1 = inlined_call_operand.vmem [shape: bf16[9,32,32], index: 1, kind: input, shape index: {}]   ;;  %s3672_s2 = inlined_call_operand.vmem [shape: f32[1,32], index: 2, kind: input, shape index: {}]   ;;  %s3673_s3 = inlined_call_operand.vmem [shape: bf16[2,128,32], index: 3, kind: output, shape index: {}]  }
   0x1   :  { %s3108_s14 = smov 0  }
   0x2 LB: > { %s25_s15 = sadd.s32 1, %s3078_s13  ;;  %p2361_p0 = scmp.ge.s32.totalorder %s3082_s14, 1  ;;  %s3082_s14 = sphi %s3108_s14, %s13_s14   ;;  %s3078_s13 = sphi %s3106_s13, %s3675_s13   ;;  %s3074_s12 = sphi %s3104_s12, %s3674_s12  }
   0x3   : > { %p27_p1 = scmp.ge.s32.totalorder %s25_s15, 2  ;;  %p168_p2 = scmp.lt.s32.totalorder %s3082_s14, 3 }
   0x5   : > { %s3677_s15 = smov (%p27_p1, %s25_s15), 0  ;;  %p169_p3 = pnand %p2361_p0, %p168_p2 }
   0x6   : > { %v2996_v0 = vld [vmem:[%s3671_s1 + $0x10] sm:$0xff] (!%p169_p3)   ;;  %p202_p4 = scmp.lt.s32.totalorder (!%p169_p3), %s3074_s12, 1  ;;  %v3128_v1 = vld [vmem:[%s3671_s1 + $0x40] sm:$0xff] (!%p169_p3)   ;;  %v2998_v2 = vld [vmem:[%s3671_s1 + $0x18] sm:$0xff] (!%p169_p3)   ;;  %vm293_vm0 = vsmask.f32 (!%p169_p3), 7424 }
   0x7   : > { %172 = sbr.rel (%p169_p3) target bundleno = 391 (0x187), region = 32  ;;  %2659 = vmatprep.subr.bf16.mxu1 (!%p169_p3), %v2996_v0  ;;  %2739 = vmatprep.subr.bf16.mxu0 (!%p169_p3), %v3128_v1  ;;  %v3139_v3 = vld [vmem:[%s3671_s1 + $0x48] sm:$0xff] (!%p169_p3)   ;;  %v3002_v4 = vld [vmem:[%s3671_s1] sm:$0xff] (!%p169_p3)   ;;  %v3155_v5 = vld [vmem:[%s3671_s1 + $0x50] sm:$0xff] (!%p169_p3)   ;;  %vm374_vm1 = vcmask (!%p169_p3), 261120   ;;  %vm630_vm2 = vcmask (!%p169_p3), 1046528  }
   0x8   : > { %2660 = vmatpush3.bf16.msra.mxu1 (!%p169_p3), %v2996_v0  ;;  %2740 = vmatpush3.bf16.msra.mxu0 (!%p169_p3), %v3128_v1  ;;  %v3010_v46 = vld [vmem:[%s3671_s1 + $0x58] sm:$0xff] (!%p169_p3)   ;;  %v3014_v0 = vld [vmem:[%s3671_s1 + $0x8] sm:$0xff] (!%p169_p3)   ;;  %vm2233_vm3 = vcmask (!%p169_p3), 257024  }
   0x9   : > { %2661 = vmatprep.subr.bf16.mxu1 (!%p169_p3), %v2998_v2  ;;  %2741 = vmatprep.subr.bf16.mxu0 (!%p169_p3), %v3139_v3 }
   0xc   : > { %2662 = vmatpush3.bf16.msra.mxu1 (!%p169_p3), %v2998_v2  ;;  %2742 = vmatpush3.bf16.msra.mxu0 (!%p169_p3), %v3139_v3  ;;  %v3016_v2 = vld [vmem:[%s3671_s1 + $0x60] sm:$0xff] (!%p169_p3)  }
   0xd   : > { %2679 = vmatprep.subr.bf16.mxu1 (!%p169_p3), %v3002_v4  ;;  %2759 = vmatprep.subr.bf16.mxu0 (!%p169_p3), %v3155_v5 }
   0xe   : > { %s3679_s12 = smov (!%p202_p4, %s3074_s12), 1 }
   0xf   : > { %s2971_s24 = smul.u32 88, %s3679_s12  ;;  %s2552_s8 = sshll.u32 %s3679_s12, 6 }
  0x10   : > { %s3614_s11 = scalar_lea.vmem %s3673_s3, %s2552_s8 }
  0x11   : > { %s3150_s29 = scalar_lea.vmem %s3670_s0, %s2971_s24 }
  0x12   : > { %v224_v6 = vld [vmem:[%s3150_s29] sm:$0xf]  ;;  %v3159_v7 = vld [vmem:[%s3150_s29 + $0x4] sm:$0xf]  ;;  %v3166_v9 = vld [vmem:[%s3150_s29 + $0x8] sm:$0xff]  }
  0x13   : > { %v3163_v8 = vcombine.low %v224_v6, %v3159_v7  ;;  %v1007_v10 = vld [vmem:[%s3150_s29 + $0x8] sm:$0xf]  ;;  %v3170_v11 = vld [vmem:[%s3150_s29 + $0xc] sm:$0xf]  ;;  %v302_v14 = vshll.u32 %v3166_v9, 16  ;;  %v306_v15 = vshrl.u32 %v3166_v9, 16 }
  0x14   : > { %v3178_v16 = vld [vmem:[%s3150_s29 + $0x10] sm:$0xff]   ;;  %v2439_v18 = vcombine.low %v1007_v10, %v3170_v11  ;;  %v3188_v26 = vld [vmem:[%s3150_s29 + $0x18] sm:$0xff]   ;;  %v3195_v32 = vld [vmem:[%s3150_s29 + $0x20] sm:$0xff]  }
  0x15   : > { %v295_v12 = vshrl.u32 %v3163_v8, 16  ;;  %v297_v13 = vshll.u32 %v3163_v8, 16  ;;  %v3181_v17 = vld [vmem:[%s3150_s29 + $0x10] sm:$0xff]   ;;  %v304_v20 = vrot.slane %v302_v14, 1  ;;  %v1080_v21 = vshll.u32 %v3178_v16, 16  ;;  %v3191_v30 = vld [vmem:[%s3150_s29 + $0x18] sm:$0xff]  }
  0x16   : > { %v1084_v22 = vshrl.u32 %v3178_v16, 16  ;;  %v1073_v23 = vshrl.u32 %v2439_v18, 16  ;;  %v1075_v24 = vshll.u32 %v2439_v18, 16  ;;  %v310_v25 = vshll.u32 %v3181_v17, 16  ;;  %v3203_v41 = vld [vmem:[%s3150_s29 + $0x20] sm:$0xff]   ;;  %v3211_v47 = vld [vmem:[%s3150_s29 + $0x28] sm:$0xff]  }
  0x17   : > { %v299_v19 = vrot.slane %v297_v13, 1  ;;  %v308_v28 = vor.u32 %v306_v15, %v304_v20  ;;  %v1082_v29 = vrot.slane %v1080_v21, 1  ;;  %v314_v31 = vshrl.u32 %v3181_v17, 16  ;;  %v3220_v56 = vld [vmem:[%s3150_s29 + $0x28] sm:$0xff]  }
  0x18   : > { %v1077_v33 = vrot.slane %v1075_v24, 1  ;;  %v312_v34 = vrot.slane %v310_v25, 1  ;;  %v1088_v35 = vshll.u32 %v3188_v26, 16  ;;  %v1092_v36 = vshrl.u32 %v3188_v26, 16  ;;  %v1289_v10 = vld [vmem:[%s3150_s29 + $0x8] sm:$0xe] }
  0x19   : > { %v300_v27 = vor.u32 %v299_v19, %v295_v12  ;;  %v1086_v38 = vor.u32 %v1084_v22, %v1082_v29  ;;  %v318_v39 = vshll.u32 %v3191_v30, 16  ;;  %v1096_v40 = vshll.u32 %v3195_v32, 16  ;;  %v3245_v19 = vld [vmem:[%s3150_s29 + $0x30] sm:$0xff]   ;;  %v3251_v22 = vld [vmem:[%s3150_s29 + $0x38] sm:$0xff]  }
  0x1a   : > { %v1078_v42 = vor.u32 %v1077_v33, %v1073_v23  ;;  %v313_v43 = vsel %vm293_vm0, %v308_v28, %v312_v34  ;;  %v1090_v44 = vrot.slane %v1088_v35, 1  ;;  %v316_v45 = vor.u32 %v314_v31, %v312_v34  ;;  %v3019_v24 = vld [vmem:[%s3150_s29 + $0x40] ss:$0 sps:$4 sm:$0x11]  }
  0x1b   : > { %v305_v37 = vsel %vm293_vm0, %v300_v27, %v304_v20  ;;  %v320_v48 = vrot.slane %v318_v39, 1  ;;  %v1098_v49 = vrot.slane %v1096_v40, 1  ;;  %v322_v50 = vshrl.u32 %v3191_v30, 16  ;;  %v3264_v31 = vld [vmem:[%s3671_s1 + $0x20] sm:$0xff]  }
  0x1c   : > { %2663 = vmatprep.mubr.msk.bf16.mxu1 %vm374_vm1, %v305_v37  ;;  %v326_v51 = vshll.u32 %v3203_v41, 16  ;;  %v1083_v52 = vsel %vm293_vm0, %v1078_v42, %v1082_v29  ;;  %v1091_v53 = vsel %vm293_vm0, %v1086_v38, %v1090_v44  ;;  %v1094_v54 = vor.u32 %v1092_v36, %v1090_v44 }
  0x1d   : > { %2664 = vmatmul.mubr.msk.bf16.vlgmr.msra.gmra.mrb[0].mxu1 %vm374_vm1, %v313_v43  ;;  %v1100_v55 = vshrl.u32 %v3195_v32, 16  ;;  %2743 = vmatprep.mubr.msk.bf16.mxu0 %vm374_vm1, %v1083_v52  ;;  %v321_v57 = vsel %vm293_vm0, %v316_v45, %v320_v48  ;;  %v324_v58 = vor.u32 %v322_v50, %v320_v48  ;;  %v1104_v60 = vshll.u32 %v3211_v47, 16  ;;  %v3277_v43 = vld [vmem:[%s3150_s29 + $0x30] sm:$0xff]  }
  0x1e   : > { %2680 = vmatpush3.bf16.msra.mxu1 %v3002_v4  ;;  %v328_v59 = vrot.slane %v326_v51, 1  ;;  %2744 = vmatmul.mubr.msk.bf16.vlgmr.msra.gmra.mrb[0].mxu0 %vm374_vm1, %v1091_v53  ;;  %v1099_v61 = vsel %vm293_vm0, %v1094_v54, %v1098_v49  ;;  %v330_v62 = vshrl.u32 %v3203_v41, 16  ;;  %v334_v63 = vshll.u32 %v3220_v56, 16  ;;  %v3295_v53 = vld [vmem:[%s3671_s1 + $0x70] sm:$0xff]  }
  0x1f   : > { %2667 = vmatprep.mubr.msk.bf16.mxu1 %vm374_vm1, %v321_v57  ;;  %2760 = vmatpush3.bf16.msra.mxu0 %v3155_v5  ;;  %v1102_v4 = vor.u32 %v1100_v55, %v1098_v49  ;;  %v3238_v6 = vrot.slane %v1104_v60, 1  ;;  %v1299_v12 = vrot.slane %v3178_v16, 1  ;;  %v2462_v18 = vcombine.low %v1289_v10, %v3170_v11 }
  0x20   : > { %2747 = vmatprep.mubr.msk.bf16.mxu0 %vm374_vm1, %v1099_v61  ;;  %2761 = vmatprep.subr.bf16.mxu0 %v3010_v46  ;;  %v329_v13 = vsel %vm293_vm0, %v324_v58, %v328_v59  ;;  %v332_v14 = vor.u32 %v330_v62, %v328_v59  ;;  %v336_v15 = vrot.slane %v334_v63, 1  ;;  %v338_v5 = vshrl.u32 %v3220_v56, 16  ;;  %v3308_v59 = vld [vmem:[%s3150_s29 + $0x38] sm:$0xff]   ;;  %v3317_v63 = vld [vmem:[%s3150_s29 + $0x40] sm:$0xff]  }
  0x21   : > { %2681 = vmatprep.subr.bf16.mxu1 %v3014_v0  ;;  %v1298_v21 = vrot.slane %v2462_v18, 1  ;;  %v342_v16 = vshll.u32 %v3245_v19, 16  ;;  %v346_v23 = vshrl.u32 %v3245_v19, 16  ;;  %v1107_v11 = vsel %vm293_vm0, %v1102_v4, %v3238_v6 }
  0x22   : > { %2682 = vmatpush3.bf16.msra.mxu1 %v3014_v0  ;;  %v337_v20 = vsel %vm293_vm0, %v332_v14, %v336_v15  ;;  %v340_v27 = vor.u32 %v338_v5, %v336_v15  ;;  %v350_v29 = vshll.u32 %v3251_v22, 16  ;;  %v1301_v35 = vrot.slane %v3188_v26, 1  ;;  %v3333_v14 = vld [vmem:[%s3150_s29 + $0x48] ss:$0 sps:$4 sm:$0x11]  }
  0x23   : > { %2762 = vmatpush3.bf16.msra.mxu0 %v3010_v46  ;;  %v1300_v25 = vsel %vm630_vm2, %v1298_v21, %v1299_v12  ;;  %v344_v28 = vrot.slane %v342_v16, 1  ;;  %2699 = vmatprep.subr.bf16.mxu1 %v3264_v31  ;;  %v1303_v36 = vrot.slane %v3195_v32, 1  ;;  %v354_v38 = vshrl.u32 %v3251_v22, 16  ;;  %v3022_v32 = vld [vmem:[%s3671_s1 + $0x68] sm:$0xff]   ;;  %v3347_v21 = vld [vmem:[%s3150_s29 + $0x14] sm:$0xf] }
  0x24   : > { %2779 = vmatprep.subr.bf16.mxu0 %v3016_v2  ;;  %v352_v34 = vrot.slane %v350_v29, 1  ;;  %v358_v39 = vshll.u32 %v3019_v24, 16  ;;  %v1302_v42 = vsel %vm630_vm2, %v1299_v12, %v1301_v35  ;;  %v634_v46 = vrot.slane %v3181_v17, 1  ;;  %v3026_v5 = vld [vmem:[%s3671_s1 + $0x28] sm:$0xff]  }
  0x25   : > { %2668 = vmatmul.mubr.msk.bf16.gmra.mrb[4].mxu1 %vm374_vm1, %v329_v13  ;;  %v348_v33 = vor.u32 %v346_v23, %v344_v28  ;;  %v345_v37 = vsel %vm293_vm0, %v340_v27, %v344_v28  ;;  %v1304_v44 = vsel %vm630_vm2, %v1301_v35, %v1303_v36  ;;  %v636_v48 = vrot.slane %v3191_v30, 1  ;;  %v3351_v23 = vld [vmem:[%s3150_s29 + $0x18] sm:$0xff]  }
  0x26   : > { %2671 = vmatprep.mubr.msk.bf16.mxu1 %vm374_vm1, %v337_v20  ;;  %2748 = vmatmul.mubr.msk.bf16.gmra.mrb[4].mxu0 %vm374_vm1, %v1107_v11  ;;  %v356_v26 = vor.u32 %v354_v38, %v352_v34  ;;  %v360_v45 = vrot.slane %v358_v39, 1  ;;  %v1305_v49 = vrot.slane %v3211_v47, 1  ;;  %v638_v50 = vrot.slane %v3203_v41, 1  ;;  %v1674_v20 = vld [vmem:[%s3150_s29 + $0x10] sm:$0xf] }
  0x27   : > { %2763 = vmatprep.mubr.msk.bf16.mxu0 %vm374_vm1, %v1300_v25  ;;  %v353_v40 = vsel %vm293_vm0, %v348_v33, %v352_v34  ;;  %v1307_v52 = vrot.slane %v3277_v43, 1  ;;  %v3300_v54 = vsel %vm630_vm2, %v634_v46, %v636_v48  ;;  %v640_v55 = vrot.slane %v3220_v56, 1 }
  0x28   : > { %v361_v51 = vsel %vm293_vm0, %v356_v26, %v360_v45  ;;  %v3304_v57 = vsel %vm630_vm2, %v636_v48, %v638_v50  ;;  %v642_v58 = vrot.slane %v3245_v19, 1  ;;  %v644_v61 = vrot.slane %v3251_v22, 1 }
  0x29   : > { %v3311_v60 = vsel %vm630_vm2, %v638_v50, %v640_v55  ;;  %v1306_v62 = vsel %vm630_vm2, %v1303_v36, %v1305_v49  ;;  %v646_v10 = vrot.slane %v3019_v24, 1  ;;  %v1108_v12 = vshrl.u32 %v3211_v47, 16  ;;  %v3372_v36 = vld [vmem:[%s3150_s29 + $0x20] sm:$0xff]  }
  0x2a   : > { %v3320_v0 = vsel %vm630_vm2, %v640_v55, %v642_v58  ;;  %v3327_v4 = vsel %vm630_vm2, %v642_v58, %v644_v61  ;;  %v1309_v13 = vrot.slane %v3308_v59, 1  ;;  %v1112_v15 = vshll.u32 %v3277_v43, 16  ;;  %v621_v50 = vld [vmem:[%s3150_s29] sm:$0xe] }
  0x2b   : > { %v1311_v18 = vrot.slane %v3317_v63, 1  ;;  %v1110_v47 = vor.u32 %v1108_v12, %v3238_v6  ;;  %v2499_v16 = vcombine.low %v1674_v20, %v3347_v21  ;;  %v632_v25 = vrot.slane %v3166_v9, 1  ;;  %v3362_v6 = vld [vmem:[%s3671_s1 + $0x30] sm:$0xff]   ;;  %v3409_v20 = vld [vmem:[%s3150_s29 + $0x40] sm:$0xff]  }
  0x2c   : > { %v3353_v11 = vrot.slane %v1112_v15, 1  ;;  %v1310_v24 = vsel %vm630_vm2, %v1307_v52, %v1309_v13  ;;  %v1747_v29 = vshll.u32 %v3351_v23, 16  ;;  %v1751_v33 = vshrl.u32 %v3351_v23, 16 }
  0x2d   : > { %2672 = vmatmul.mubr.msk.bf16.gmra.mrb[8].mxu1 %vm374_vm1, %v345_v37  ;;  %v1740_v27 = vshrl.u32 %v2499_v16, 16  ;;  %v1742_v28 = vshll.u32 %v2499_v16, 16  ;;  %v1312_v34 = vsel %vm630_vm2, %v1309_v13, %v1311_v18  ;;  %v1313_v35 = vrot.slane %v3333_v14, 1 }
  0x2e   : > { %2675 = vmatprep.mubr.msk.bf16.mxu1 %vm374_vm1, %v353_v40  ;;  %2764 = vmatmul.mubr.msk.bf16.vlgmr.msra.gmra.mrb[0].mxu0 %vm374_vm1, %v1302_v42  ;;  %v3376_v37 = vsel %vm293_vm0, %v1110_v47, %v3353_v11  ;;  %v1749_v39 = vrot.slane %v1747_v29, 1  ;;  %v3379_v40 = vld [vmem:[%s3150_s29 + $0x28] sm:$0xff]   ;;  %v1755_v42 = vshll.u32 %v3372_v36, 16  ;;  %v1787_v29 = vshll.u32 %v3409_v20, 16 }
  0x2f   : > { %2780 = vmatpush3.bf16.msra.mxu0 %v3016_v2  ;;  %2767 = vmatprep.mubr.msk.bf16.mxu0 %vm374_vm1, %v1304_v44  ;;  %v1308_v2 = vsel %vm630_vm2, %v1305_v49, %v1307_v52  ;;  %v1744_v38 = vrot.slane %v1742_v28, 1  ;;  %v1759_v44 = vshrl.u32 %v3372_v36, 16  ;;  %v1767_v48 = vshrl.u32 %v3379_v40, 16  ;;  %v3391_v49 = vld [vmem:[%s3150_s29 + $0x38] sm:$0xff]  }
  0x30   : > { %2781 = vmatprep.subr.bf16.mxu0 %v3022_v32  ;;  %v1753_v45 = vor.u32 %v1751_v33, %v1749_v39  ;;  %v1314_v15 = vsel %vm630_vm2, %v1311_v18, %v1313_v35  ;;  %v1116_v28 = vshrl.u32 %v3277_v43, 16  ;;  %v3424_v33 = vld [vmem:[%s3150_s29 + $0x48] sm:$0xff]   ;;  %v1791_v35 = vshrl.u32 %v3409_v20, 16 }
  0x31   : > { %v1745_v26 = vor.u32 %v1744_v38, %v1740_v27  ;;  %v1783_v27 = vshrl.u32 %v3391_v49, 16  ;;  %v1120_v43 = vshll.u32 %v3308_v59, 16  ;;  %v1795_v38 = vshll.u32 %v3424_v33, 16 }
  0x33   : > { %2782 = vmatpush3.bf16.msra.mxu0 %v3022_v32  ;;  %v1763_v32 = vshll.u32 %v3379_v40, 16  ;;  %v3397_v55 = vsel %vm293_vm0, %v1745_v26, %v1749_v39  ;;  %v3029_v39 = vld [vmem:[%s3150_s29 + $0x18] sm:$0xff]  }
  0x34   : > { %2799 = vmatprep.subr.bf16.mxu0 %v3295_v53 }
  0x35   : > { %2676 = vmatmul.mubr.msk.bf16.gmra.mrb[12].mxu1 %vm374_vm1, %v361_v51  ;;  %v1757_v51 = vrot.slane %v1755_v42, 1  ;;  %v1765_v58 = vrot.slane %v1763_v32, 1  ;;  %v3054_v42 = vld [vmem:[%s3150_s29 + $0x50] ss:$0 sps:$4 sm:$0x11]   ;;  %v1797_v32 = vrot.slane %v1795_v38, 1 }
  0x36   : > { %2683 = vmatprep.mubr.msk.bf16.mxu1 %vm374_vm1, %v3163_v8  ;;  %2768 = vmatmul.mubr.msk.bf16.gmra.mrb[4].mxu0 %vm374_vm1, %v1306_v62  ;;  %v3336_v8 = vsel %vm630_vm2, %v644_v61, %v646_v10  ;;  %v1779_v62 = vshll.u32 %v3391_v49, 16  ;;  %v1980_v38 = vrot.slane %v3054_v42, 1 }
  0x37   : > { %2771 = vmatprep.mubr.msk.bf16.mxu0 %vm374_vm1, %v1308_v2  ;;  %v3027_v2 = vld [vmem:[%s3150_s29 + $0x10] sm:$0xff]   ;;  %v3403_v10 = vsel %vm293_vm0, %v1753_v45, %v1757_v51  ;;  %v1761_v12 = vor.u32 %v1759_v44, %v1757_v51  ;;  %v1799_v44 = vshrl.u32 %v3424_v33, 16 }
  0x38   : > { %v1781_v47 = vrot.slane %v1779_v62, 1 }
  0x39   : > { %v3414_v16 = vsel %vm293_vm0, %v1761_v12, %v1765_v58  ;;  %v1968_v12 = vrot.slane %v3372_v36, 1  ;;  %v1974_v36 = vrot.slane %v3391_v49, 1 }
  0x3d   : > { %2684 = vmatmul.mubr.msk.bf16.vlgmr.msra.gmra.mrb[0].mxu1 %vm374_vm1, %v3166_v9  ;;  %v3038_v9 = vld [vmem:[%s3150_s29 + $0x48] sm:$0xff]  }
  0x3e   : > { %2700 = vmatpush3.bf16.msra.mxu1 %v3264_v31  ;;  %2687 = vmatprep.mubr.msk.bf16.mxu1 %vm374_vm1, %v3181_v17  ;;  %v3382_v31 = vld [vmem:[%s3150_s29 + $0x30] sm:$0xff]   ;;  %v3048_v17 = vld [vmem:[%s3671_s1 + $0x88] sm:$0xff]  }
  0x3f   : > { %2701 = vmatprep.subr.bf16.mxu1 %v3026_v5  ;;  %2772 = vmatmul.mubr.msk.bf16.gmra.mrb[8].mxu0 %vm374_vm1, %v1310_v24  ;;  %v1771_v52 = vshll.u32 %v3382_v31, 16  ;;  %v1775_v61 = vshrl.u32 %v3382_v31, 16 }
  0x40   : > { %2775 = vmatprep.mubr.msk.bf16.mxu0 %vm374_vm1, %v1312_v34  ;;  %v1785_v34 = vor.u32 %v1783_v27, %v1781_v47 }
  0x41   : > { %v1773_v13 = vrot.slane %v1771_v52, 1  ;;  %v1803_v52 = vshll.u32 %v3054_v42, 16 }
  0x42   : > { %2702 = vmatpush3.bf16.msra.mxu1 %v3026_v5  ;;  %v1769_v5 = vor.u32 %v1767_v48, %v1765_v58  ;;  %v1956_v48 = vld [vmem:[%s3150_s29 + $0x10] sm:$0xe] }
  0x43   : > { %2719 = vmatprep.subr.bf16.mxu1 %v3362_v6  ;;  %v1777_v24 = vor.u32 %v1775_v61, %v1773_v13  ;;  %v2522_v58 = vcombine.low %v1956_v48, %v3347_v21  ;;  %v3030_v61 = vld [vmem:[%s3150_s29 + $0x20] sm:$0xff]   ;;  %v1805_v21 = vrot.slane %v1803_v52, 1 }
  0x44   : > { %v3420_v18 = vsel %vm293_vm0, %v1769_v5, %v1773_v13  ;;  %v1118_v13 = vor.u32 %v1116_v28, %v3353_v11  ;;  %v3037_v52 = vld [vmem:[%s3150_s29 + $0x40] sm:$0xff]  }
  0x45   : > { %2688 = vmatmul.mubr.msk.bf16.gmra.mrb[4].mxu1 %vm374_vm1, %v3191_v30  ;;  %v2402_v30 = vcombine.low %v621_v50, %v3159_v7  ;;  %v1789_v7 = vrot.slane %v1787_v29, 1  ;;  %v1966_v50 = vrot.slane %v3351_v23, 1  ;;  %v3035_v23 = vld [vmem:[%s3671_s1 + $0x78] sm:$0xff]   ;;  %v1128_v29 = vshll.u32 %v3317_v63, 16 }
  0x46   : > { %2691 = vmatprep.mubr.msk.bf16.mxu1 %vm374_vm1, %v3203_v41  ;;  %v3428_v41 = vsel %vm293_vm0, %v1777_v24, %v1781_v47  ;;  %v1972_v47 = vrot.slane %v3382_v31, 1  ;;  %v1122_v24 = vrot.slane %v1120_v43, 1 }
  0x47   : > { %2776 = vmatmul.mubr.msk.bf16.gmra.mrb[12].mxu0 %vm374_vm1, %v1314_v15  ;;  %v3438_v26 = vsel %vm293_vm0, %v1785_v34, %v1789_v7  ;;  %v1793_v45 = vor.u32 %v1791_v35, %v1789_v7  ;;  %v631_v51 = vrot.slane %v2402_v30, 1  ;;  %v1965_v15 = vrot.slane %v2522_v58, 1 }
  0x48   : > { %2783 = vmatprep.mubr.msk.bf16.mxu0 %vm374_vm1, %v3027_v2  ;;  %v1801_v2 = vor.u32 %v1799_v44, %v1797_v32  ;;  %v3458_v5 = vsel %vm630_vm2, %v1966_v50, %v1968_v12  ;;  %v3479_v49 = vsel %vm630_vm2, %v1972_v47, %v1974_v36  ;;  %v3482_v28 = vsel %vm293_vm0, %v1118_v13, %v1122_v24 }
  0x49   : > { %v3447_v62 = vsel %vm293_vm0, %v1793_v45, %v1797_v32  ;;  %v3467_v11 = vsel %vm630_vm2, %v1965_v15, %v1966_v50  ;;  %v1124_v30 = vshrl.u32 %v3308_v59, 16  ;;  %v1978_v34 = vrot.slane %v3424_v33, 1  ;;  %v3034_v33 = vld [vmem:[%s3150_s29 + $0x30] sm:$0xff]   ;;  %v3039_v50 = vld [vmem:[%s3671_s1 + $0x38] sm:$0xff]  }
  0x4a   : > { %v1132_v35 = vshrl.u32 %v3317_v63, 16  ;;  %v633_v43 = vsel %vm630_vm2, %v631_v51, %v632_v25  ;;  %v1136_v59 = vshll.u32 %v3333_v14, 16  ;;  %v1130_v44 = vrot.slane %v1128_v29, 1  ;;  %v3036_v51 = vld [vmem:[%s3150_s29 + $0x38] sm:$0xff]  }
  0x4b   : > { %v1126_v7 = vor.u32 %v1124_v30, %v1122_v24  ;;  %v3506_v32 = vsel %vm630_vm2, %v1978_v34, %v1980_v38 }
  0x4c   : > { %v1138_v63 = vrot.slane %v1136_v59, 1  ;;  %v1134_v42 = vor.u32 %v1132_v35, %v1130_v44 }
  0x4d   : > { %2692 = vmatmul.mubr.msk.bf16.gmra.mrb[8].mxu1 %vm374_vm1, %v3220_v56  ;;  %v1970_v56 = vrot.slane %v3379_v40, 1  ;;  %v1976_v40 = vrot.slane %v3409_v20, 1  ;;  %v1131_v14 = vsel %vm293_vm0, %v1126_v7, %v1130_v44 }
  0x4e   : > { %2695 = vmatprep.mubr.msk.bf16.mxu1 %vm374_vm1, %v3245_v19  ;;  %v3464_v19 = vsel %vm293_vm0, %v1801_v2, %v1805_v21  ;;  %v1139_v48 = vsel %vm293_vm0, %v1134_v42, %v1138_v63 }
  0x4f   : > { %2784 = vmatmul.mubr.msk.bf16.vlgmr.msra.gmra.mrb[0].mxu0 %vm374_vm1, %v3029_v39  ;;  %v3470_v27 = vsel %vm630_vm2, %v1968_v12, %v1970_v56  ;;  %v3476_v31 = vsel %vm630_vm2, %v1970_v56, %v1972_v47  ;;  %v3489_v20 = vsel %vm630_vm2, %v1974_v36, %v1976_v40  ;;  %v3031_v39 = vld [vmem:[%s3150_s29 + $0x28] sm:$0xff]   ;;  %v3500_v45 = vsel %vm630_vm2, %v1976_v40, %v1978_v34 }
  0x50   : > { %2800 = vmatpush3.bf16.msra.mxu0 %v3295_v53  ;;  %2787 = vmatprep.mubr.msk.bf16.mxu0 %vm374_vm1, %v3030_v61  ;;  %v3042_v53 = vld [vmem:[%s3671_s1 + $0x80] sm:$0xff]  }
  0x51   : > { %2801 = vmatprep.subr.bf16.mxu0 %v3035_v23 }
  0x54   : > { %2802 = vmatpush3.bf16.msra.mxu0 %v3035_v23 }
  0x55   : > { %2696 = vmatmul.mubr.msk.bf16.gmra.mrb[12].mxu1 %vm374_vm1, %v3251_v22  ;;  %2819 = vmatprep.subr.bf16.mxu0 %v3042_v53  ;;  %v635_v22 = vsel %vm630_vm2, %v632_v25, %v634_v46  ;;  %v3046_v46 = vld [vmem:[%s3150_s29 + $0x8] sm:$0xff]  }
  0x56   : > { %2703 = vmatprep.mubr.msk.bf16.mxu1 %vm374_vm1, %v633_v43 }
  0x57   : > { %2788 = vmatmul.mubr.msk.bf16.gmra.mrb[4].mxu0 %vm374_vm1, %v3031_v39 }
  0x58   : > { %2791 = vmatprep.mubr.msk.bf16.mxu0 %vm374_vm1, %v3034_v33 }
  0x5d   : > { %2704 = vmatmul.mubr.msk.bf16.vlgmr.msra.gmra.mrb[0].mxu1 %vm374_vm1, %v635_v22 }
  0x5e   : > { %2720 = vmatpush3.bf16.msra.mxu1 %v3362_v6  ;;  %2707 = vmatprep.mubr.msk.bf16.mxu1 %vm374_vm1, %v3300_v54  ;;  %v3049_v54 = vld [vmem:[%s3150_s29 + $0x10] sm:$0xff]  }
  0x5f   : > { %2721 = vmatprep.subr.bf16.mxu1 %v3039_v50  ;;  %2792 = vmatmul.mubr.msk.bf16.gmra.mrb[8].mxu0 %vm374_vm1, %v3036_v51 }
  0x60   : > { %2795 = vmatprep.mubr.msk.bf16.mxu0 %vm374_vm1, %v3037_v52 }
  0x62   : > { %2722 = vmatpush3.bf16.msra.mxu1 %v3039_v50 }
  0x63   : > { %2839 = vmatprep.subr.bf16.mxu1 %v3128_v1 }
  0x65   : > { %2708 = vmatmul.mubr.msk.bf16.gmra.mrb[4].mxu1 %vm374_vm1, %v3304_v57  ;;  %v3051_v57 = vld [vmem:[%s3150_s29 + $0x18] sm:$0xff]  }
  0x66   : > { %2711 = vmatprep.mubr.msk.bf16.mxu1 %vm374_vm1, %v3311_v60  ;;  %v3053_v60 = vld [vmem:[%s3150_s29 + $0x20] sm:$0xff]  }
  0x67   : > { %2796 = vmatmul.mubr.msk.bf16.gmra.mrb[12].mxu0 %vm374_vm1, %v3038_v9 }
  0x68   : > { %2803 = vmatprep.mubr.msk.bf16.mxu0 %vm374_vm1, %v3397_v55 }
  0x6d   : > { %2712 = vmatmul.mubr.msk.bf16.gmra.mrb[8].mxu1 %vm374_vm1, %v3320_v0  ;;  %v3055_v0 = vld [vmem:[%s3150_s29 + $0x28] sm:$0xff]  }
  0x6e   : > { %2715 = vmatprep.mubr.msk.bf16.mxu1 %vm374_vm1, %v3327_v4  ;;  %v3058_v4 = vld [vmem:[%s3150_s29 + $0x38] sm:$0xff]  }
  0x6f   : > { %2804 = vmatmul.mubr.msk.bf16.vlgmr.msra.gmra.mrb[0].mxu0 %vm374_vm1, %v3403_v10 }
  0x70   : > { %2820 = vmatpush3.bf16.msra.mxu0 %v3042_v53  ;;  %2807 = vmatprep.mubr.msk.bf16.mxu0 %vm374_vm1, %v3414_v16 }
  0x71   : > { %2821 = vmatprep.subr.bf16.mxu0 %v3048_v17 }
  0x74   : > { %2822 = vmatpush3.bf16.msra.mxu0 %v3048_v17 }
  0x75   : > { %2716 = vmatmul.mubr.msk.bf16.gmra.mrb[12].mxu1 %vm374_vm1, %v3336_v8 }
  0x76   : > { %2723 = vmatprep.mubr.msk.bf16.mxu1 %vm374_vm1, %v3046_v46 }
  0x77   : > { %2808 = vmatmul.mubr.msk.bf16.gmra.mrb[4].mxu0 %vm374_vm1, %v3420_v18 }
  0x78   : > { %2811 = vmatprep.mubr.msk.bf16.mxu0 %vm374_vm1, %v3428_v41  ;;  %v3605_v41 = vld [vmem:[%s3672_s2] ss:$0 sm:$0xff] }
  0x7d   : > { %2724 = vmatmul.mubr.msk.bf16.vlgmr.msra.gmra.mrb[0].mxu1 %vm374_vm1, %v3049_v54 }
  0x7e   : > { %2841 = vmatpush3.bf16.msra.mxu1 %v3128_v1  ;;  %2727 = vmatprep.mubr.msk.bf16.mxu1 %vm374_vm1, %v3051_v57  ;;  %v3057_v1 = vld [vmem:[%s3150_s29 + $0x30] sm:$0xff]  }
  0x7f   : > { %2840 = vmatprep.subr.bf16.mxu1 %v3139_v3  ;;  %2812 = vmatmul.mubr.msk.bf16.gmra.mrb[8].mxu0 %vm374_vm1, %v3438_v26 }
  0x80   : > { %2815 = vmatprep.mubr.msk.bf16.mxu0 %vm374_vm1, %v3447_v62 }
  0x82   : > { %2842 = vmatpush3.bf16.msra.mxu1 %v3139_v3  ;;  %v3059_v3 = vld [vmem:[%s3150_s29 + $0x40] sm:$0xff]  }
  0x85   : > { %2728 = vmatmul.mubr.msk.bf16.gmra.mrb[4].mxu1 %vm374_vm1, %v3053_v60 }
  0x86   : > { %2731 = vmatprep.mubr.msk.bf16.mxu1 %vm374_vm1, %v3055_v0 }
  0x87   : > { %2816 = vmatmul.mubr.msk.bf16.gmra.mrb[12].mxu0 %vm374_vm1, %v3464_v19 }
  0x88   : > { %2823 = vmatprep.mubr.msk.bf16.mxu0 %vm374_vm1, %v3467_v11 }
  0x8d   : > { %2732 = vmatmul.mubr.msk.bf16.gmra.mrb[8].mxu1 %vm374_vm1, %v3057_v1 }
  0x8e   : > { %2735 = vmatprep.mubr.msk.bf16.mxu1 %vm374_vm1, %v3058_v4 }
  0x8f   : > { %2824 = vmatmul.mubr.msk.bf16.vlgmr.msra.gmra.mrb[0].mxu0 %vm374_vm1, %v3458_v5 }
  0x90   : > { %2827 = vmatprep.mubr.msk.bf16.mxu0 %vm374_vm1, %v3470_v27 }
  0x95   : > { %2736 = vmatmul.mubr.msk.bf16.gmra.mrb[12].mxu1 %vm374_vm1, %v3059_v3 }
  0x96   : > { %2751 = vmatprep.mubr.msk.bf16.mxu1 %vm374_vm1, %v3376_v37 }
  0x97   : > { %2828 = vmatmul.mubr.msk.bf16.gmra.mrb[4].mxu0 %vm374_vm1, %v3476_v31 }
  0x98   : > { %2831 = vmatprep.mubr.msk.bf16.mxu0 %vm374_vm1, %v3479_v49 }
  0x9d   : > { %2752 = vmatmul.mubr.msk.bf16.vlgmr.msra.gmra.mrb[8].mxu1 %vm374_vm1, %v3482_v28 }
  0x9e   : > { %2755 = vmatprep.mubr.msk.bf16.mxu1 %vm374_vm1, %v1131_v14 }
  0x9f   : > { %2832 = vmatmul.mubr.msk.bf16.gmra.mrb[8].mxu0 %vm374_vm1, %v3489_v20 }
  0xa0   : > { %2835 = vmatprep.mubr.msk.bf16.mxu0 %vm374_vm1, %v3500_v45 }
  0xa5   : > { %2756 = vmatmul.mubr.msk.bf16.gmra.mrb[12].mxu1 %vm374_vm1, %v1139_v48 }
  0xa7   : > { %2836 = vmatmul.mubr.msk.bf16.gmra.mrb[12].mxu0 %vm374_vm1, %v3506_v32 }
 0x150   : > { %v2725_v8 = vpop.f32.mrb[0].mxu1 }
 0x151   : > { %v928_v25 = vpop.f32.mrb[1].mxu1 }
 0x152   : > { %v2726_v6 = vpop.f32.mrb[2].mxu1 }
 0x153   : > { %v931_v37 = vpop.f32.mrb[3].mxu1 }
 0x158   : > { %v2729_v55 = vpop.f32.mrb[4].mxu1 }
 0x159   : > { %v944_v10 = vpop.f32.mrb[5].mxu1 }
 0x15a   : > { %v2730_v16 = vpop.f32.mrb[6].mxu1 }
 0x15b   : > { %v947_v18 = vpop.f32.mrb[7].mxu1 }
 0x162   : > { %v2825_v26 = vpop.f32.mrb[0].mxu0 }
 0x163   : > { %v2843_v58 = vadd.f32 %v2825_v26, %v2725_v8  ;;  %v2052_v61 = vpop.f32.mrb[1].mxu0 }
 0x164   : > { %v2844_v62 = vadd.f32 %v2052_v61, %v928_v25  ;;  %v2826_v2 = vpop.f32.mrb[2].mxu0 }
 0x165   : > { %v2139_v12 = vadd.f32 %v2843_v58, %v3605_v41  ;;  %v2845_v13 = vadd.f32 %v2826_v2, %v2726_v6  ;;  %v2055_v23 = vpop.f32.mrb[3].mxu0 }
 0x166   : > { %v2137_v21 = vadd.f32 %v2844_v62, %v3605_v41  ;;  %v2846_v15 = vadd.f32 %v2055_v23, %v931_v37 }
 0x167   : > { %v2155_v56 = vmax.f32 %v2139_v12, 0.0  ;;  %v2140_v5 = vadd.f32 %v2845_v13, %v3605_v41 }
 0x168   : > { %v2153_v47 = vmax.f32 %v2137_v21, 0.0  ;;  %v2138_v36 = vadd.f32 %v2846_v15, %v3605_v41 }
 0x169   : > { %v2555_v24 = vpack.c.bf16 %v2155_v56, %v2155_v56  ;;  %v2156_v19 = vmax.f32 %v2140_v5, 0.0 }
 0x16a   : > { %v2553_v11 = vpack.c.bf16 %v2153_v47, %v2153_v47  ;;  %v2154_v27 = vmax.f32 %v2138_v36, 0.0  ;;  %v2829_v40 = vpop.f32.mrb[4].mxu0 }
 0x16b   : > { %2236 = vst.msk [vmem:[%s3614_s11 + $0x8] sm:$0xf] %vm2233_vm3, %v2555_v24  ;;  %v2556_v31 = vpack.c.bf16 %v2156_v19, %v2156_v19  ;;  %v2847_v49 = vadd.f32 %v2829_v40, %v2729_v55  ;;  %v2068_v28 = vpop.f32.mrb[5].mxu0 }
 0x16c   : > { %2234 = vst.msk [vmem:[%s3614_s11] sm:$0xf] %vm2233_vm3, %v2553_v11  ;;  %v2554_v30 = vpack.c.bf16 %v2154_v27, %v2154_v27  ;;  %v2848_v53 = vadd.f32 %v2068_v28, %v944_v10  ;;  %v2830_v20 = vpop.f32.mrb[6].mxu0 }
 0x16d   : > { %2237 = vst.msk [vmem:[%s3614_s11 + $0xc] sm:$0xf] %vm2233_vm3, %v2556_v31  ;;  %v2143_v29 = vadd.f32 %v2847_v49, %v3605_v41  ;;  %v2849_v34 = vadd.f32 %v2830_v20, %v2730_v16  ;;  %v2071_v35 = vpop.f32.mrb[7].mxu0 }
 0x16e   : > { %2235 = vst.msk [vmem:[%s3614_s11 + $0x4] sm:$0xf] %vm2233_vm3, %v2554_v30  ;;  %v2141_v43 = vadd.f32 %v2848_v53, %v3605_v41  ;;  %v2850_v7 = vadd.f32 %v2071_v35, %v947_v18 }
 0x16f   : > { %v2159_v59 = vmax.f32 %v2143_v29, 0.0  ;;  %v2144_v38 = vadd.f32 %v2849_v34, %v3605_v41 }
 0x170   : > { %v2753_v39 = vpop.f32.mrb[8].mxu1  ;;  %v2157_v44 = vmax.f32 %v2141_v43, 0.0  ;;  %v2142_v45 = vadd.f32 %v2850_v7, %v3605_v41 }
 0x171   : > { %v1242_v33 = vpop.f32.mrb[9].mxu1  ;;  %v2559_v63 = vpack.c.bf16 %v2159_v59, %v2159_v59  ;;  %v2160_v32 = vmax.f32 %v2144_v38, 0.0 }
 0x172   : > { %v2754_v14 = vpop.f32.mrb[10].mxu1  ;;  %v2557_v42 = vpack.c.bf16 %v2157_v44, %v2157_v44  ;;  %v2158_v48 = vmax.f32 %v2142_v45, 0.0  ;;  %v2833_v22 = vpop.f32.mrb[8].mxu0 }
 0x173   : > { %v1245_v50 = vpop.f32.mrb[11].mxu1  ;;  %2240 = vst.msk [vmem:[%s3614_s11 + $0x18] sm:$0xf] %vm2233_vm3, %v2559_v63  ;;  %v2560_v51 = vpack.c.bf16 %v2160_v32, %v2160_v32  ;;  %v2851_v52 = vadd.f32 %v2833_v22, %v2753_v39  ;;  %v2084_v9 = vpop.f32.mrb[9].mxu0 }
 0x174   : > { %2238 = vst.msk [vmem:[%s3614_s11 + $0x10] sm:$0xf] %vm2233_vm3, %v2557_v42  ;;  %v2558_v17 = vpack.c.bf16 %v2158_v48, %v2158_v48  ;;  %v2852_v46 = vadd.f32 %v2084_v9, %v1242_v33  ;;  %v2834_v54 = vpop.f32.mrb[10].mxu0 }
 0x175   : > { %2241 = vst.msk [vmem:[%s3614_s11 + $0x1c] sm:$0xf] %vm2233_vm3, %v2560_v51  ;;  %v2147_v57 = vadd.f32 %v2851_v52, %v3605_v41  ;;  %v2853_v60 = vadd.f32 %v2834_v54, %v2754_v14  ;;  %v2087_v0 = vpop.f32.mrb[11].mxu0 }
 0x176   : > { %2239 = vst.msk [vmem:[%s3614_s11 + $0x14] sm:$0xf] %vm2233_vm3, %v2558_v17  ;;  %v2145_v1 = vadd.f32 %v2852_v46, %v3605_v41  ;;  %v2854_v4 = vadd.f32 %v2087_v0, %v1245_v50 }
 0x177   : > { %v2163_v3 = vmax.f32 %v2147_v57, 0.0  ;;  %v2148_v8 = vadd.f32 %v2853_v60, %v3605_v41 }
 0x178   : > { %v2757_v25 = vpop.f32.mrb[12].mxu1  ;;  %v2161_v6 = vmax.f32 %v2145_v1, 0.0  ;;  %v2146_v37 = vadd.f32 %v2854_v4, %v3605_v41 }
 0x179   : > { %v1258_v55 = vpop.f32.mrb[13].mxu1  ;;  %v2563_v10 = vpack.c.bf16 %v2163_v3, %v2163_v3  ;;  %v2164_v16 = vmax.f32 %v2148_v8, 0.0 }
 0x17a   : > { %v2758_v18 = vpop.f32.mrb[14].mxu1  ;;  %v2561_v26 = vpack.c.bf16 %v2161_v6, %v2161_v6  ;;  %v2162_v58 = vmax.f32 %v2146_v37, 0.0  ;;  %v2837_v61 = vpop.f32.mrb[12].mxu0 }
 0x17b   : > { %v1261_v62 = vpop.f32.mrb[15].mxu1  ;;  %2244 = vst.msk [vmem:[%s3614_s11 + $0x28] sm:$0xf] %vm2233_vm3, %v2563_v10  ;;  %v2564_v2 = vpack.c.bf16 %v2164_v16, %v2164_v16  ;;  %v2855_v12 = vadd.f32 %v2837_v61, %v2757_v25  ;;  %v2100_v13 = vpop.f32.mrb[13].mxu0 }
 0x17c   : > { %2242 = vst.msk [vmem:[%s3614_s11 + $0x20] sm:$0xf] %vm2233_vm3, %v2561_v26  ;;  %v2562_v23 = vpack.c.bf16 %v2162_v58, %v2162_v58  ;;  %v2856_v21 = vadd.f32 %v2100_v13, %v1258_v55  ;;  %v2838_v15 = vpop.f32.mrb[14].mxu0 }
 0x17d   : > { %2245 = vst.msk [vmem:[%s3614_s11 + $0x2c] sm:$0xf] %vm2233_vm3, %v2564_v2  ;;  %v2151_v56 = vadd.f32 %v2855_v12, %v3605_v41  ;;  %v2857_v5 = vadd.f32 %v2838_v15, %v2758_v18  ;;  %v2103_v47 = vpop.f32.mrb[15].mxu0 }
 0x17e   : > { %2243 = vst.msk [vmem:[%s3614_s11 + $0x24] sm:$0xf] %vm2233_vm3, %v2562_v23  ;;  %v2149_v36 = vadd.f32 %v2856_v21, %v3605_v41  ;;  %v2858_v24 = vadd.f32 %v2103_v47, %v1261_v62 }
 0x17f   : > { %v2167_v19 = vmax.f32 %v2151_v56, 0.0  ;;  %v2152_v11 = vadd.f32 %v2857_v5, %v3605_v41 }
 0x180   : > { %v2165_v27 = vmax.f32 %v2149_v36, 0.0  ;;  %v2150_v40 = vadd.f32 %v2858_v24, %v3605_v41 }
 0x181   : > { %v2567_v31 = vpack.c.bf16 %v2167_v19, %v2167_v19  ;;  %v2168_v49 = vmax.f32 %v2152_v11, 0.0 }
 0x182   : > { %v2565_v28 = vpack.c.bf16 %v2165_v27, %v2165_v27  ;;  %v2166_v30 = vmax.f32 %v2150_v40, 0.0 }
 0x183   : > { %2248 = vst.msk [vmem:[%s3614_s11 + $0x38] sm:$0xf] %vm2233_vm3, %v2567_v31  ;;  %v2568_v53 = vpack.c.bf16 %v2168_v49, %v2168_v49 }
 0x184   : > { %2246 = vst.msk [vmem:[%s3614_s11 + $0x30] sm:$0xf] %vm2233_vm3, %v2565_v28  ;;  %v2566_v20 = vpack.c.bf16 %v2166_v30, %v2166_v30 }
 0x185   : > { %2249 = vst.msk [vmem:[%s3614_s11 + $0x3c] sm:$0xf] %vm2233_vm3, %v2568_v53 }
 0x186   : > { %2247 = vst.msk [vmem:[%s3614_s11 + $0x34] sm:$0xf] %vm2233_vm3, %v2566_v20 }
 0x187 PF: > { %s13_s14 = sadd.s32 1, %s3082_s14   ;;  %s3674_s12 = smov %s3078_s13 }
 0x188   : > { %p10_p5 = scmp.ge.s32.totalorder %s13_s14, 4   ;;  %s3675_s13 = smov %s3677_s15 }
 0x18a   :  { %12 = sbr.rel (!%p10_p5) target bundleno = 2 (0x2), region = 76 }

</bundles_post_ra>
